<compile_context>
chip_gen: v5e
topology: v5e:2x2
jax: 0.10.0
libtpu: 0.0.40
codegen_flags: <defaults>
</compile_context>

<pallas_src>
import jax
import jax.numpy as jnp
from jax import lax
from jax.experimental import pallas as pl
from jax.experimental.pallas import tpu as pltpu  # noqa: F401  (kept for TPU-specific tuning hooks)

# ---------------- model hyper-parameters (defaults of Transformer_D) --------
DIM = 48            # token feature dim
DEPTH = 2
HEADS = 3
DIM_HEAD = 16
INNER = HEADS * DIM_HEAD     # 48
MLP_DIM = 48
LN_EPS = 1e-5                # nn.LayerNorm default
LEAKY_SLOPE = 0.01           # nn.LeakyReLU default
N_ATTN = DEPTH * 2           # attention sub-layers in the whole stack
SCALE = DIM_HEAD ** (-0.5)   # 0.25 -- exact power of two, folded into Wq at pack time


# ---------------------------- shared math helpers ----------------------------
def _layernorm(x, gamma, beta):
    mu = jnp.mean(x, axis=-1, keepdims=True)
    var = jnp.mean((x - mu) ** 2, axis=-1, keepdims=True)
    return (x - mu) * lax.rsqrt(var + LN_EPS) * gamma + beta


def _mxu(a, b):
    """MXU matmul: bf16 operands, f32 accumulation."""
    return jnp.dot(a.astype(jnp.bfloat16), b.astype(jnp.bfloat16),
                   preferred_element_type=jnp.float32)


# ---------------------------- fused Pallas kernel -----------------------------
def fused_forward_kernel(x_ref,
                         a_g_ref, a_b_ref, qkv_w_ref, wout_ref, bout_ref,
                         f_g_ref, f_b_ref, w1_ref, b1_ref, w2_ref, b2_ref,
                         o_ref):
    """Whole Transformer_D forward for the whole (small) batch in one invocation."""
    B, N, _ = x_ref.shape

    # Flatten batch into rows: all LN / projection / FF matmuls run on (B*N, DIM).
    x = jnp.concatenate([x_ref[b] for b in range(B)], axis=0)     # (B*N, DIM) f32

    for layer in range(DEPTH):                                    # statically unrolled
        # ---- two Residual(PreNorm(Attention)) sub-layers ---------------------
        for sub in range(2):
            a = layer * 2 + sub                                    # attn sub-layer index
            xn = _layernorm(x, a_g_ref[a], a_b_ref[a])             # (B*N, DIM) f32

            # ONE fused QKV projection for the whole batch:
            # (B*N, 48) @ (48, 144) -> (B*N, 144); scale already folded into Wq.
            qkv = _mxu(xn, qkv_w_ref[a])                           # f32

            outs = []
            for b in range(B):                                     # attention is per-batch
                r = b * N
                head_outs = []
                for h in range(HEADS):                             # static lane slices
                    c = h * DIM_HEAD
                    q = qkv[r:r + N, c:c + DIM_HEAD]                       # (N, 16), pre-scaled
                    k = qkv[r:r + N, INNER + c:INNER + c + DIM_HEAD]       # (N, 16)
                    v = qkv[r:r + N, 2 * INNER + c:2 * INNER + c + DIM_HEAD]

                    # q @ k^T without materializing the transpose (NT dot_general).
                    dots = lax.dot_general(
                        q.astype(jnp.bfloat16), k.astype(jnp.bfloat16),
                        (((1,), (1,)), ((), ())),
                        preferred_element_type=jnp.float32)        # (N, N) f32
                    dots = dots - jnp.max(dots, axis=-1, keepdims=True)
                    e = jnp.exp(dots)                              # f32 (EUP)
                    p = e * pl.reciprocal(jnp.sum(e, axis=-1, keepdims=True),
                                          approx=False)
                    head_outs.append(_mxu(p, v))                   # (N, DIM_HEAD)
                outs.append(jnp.concatenate(head_outs, axis=-1))   # (N, INNER)

            cat = jnp.concatenate(outs, axis=0)                    # (B*N, INNER)
            # single fused output projection + residual
            x = x + _mxu(cat, wout_ref[a]) + bout_ref[a]

        # ---- Residual(PreNorm(FeedForward)) ----------------------------------
        xn = _layernorm(x, f_g_ref[layer], f_b_ref[layer])
        h1 = _mxu(xn, w1_ref[layer]) + b1_ref[layer]
        h1 = jnp.where(h1 > 0, h1, LEAKY_SLOPE * h1)               # LeakyReLU (f32)
        x = x + _mxu(h1, w2_ref[layer]) + b2_ref[layer]            # residual

    # write back (B, N, DIM)
    for b in range(B):
        o_ref[b] = x[b * N:(b + 1) * N, :]


# ---------------------------- pallas_call wrapper -----------------------------
def transformer_d_forward(x, packed):
    """x: (B, N, DIM) f32; packed: output of pack_params()."""
    B, N, D = x.shape
    # Grid-free call: whole batch + all weights live in VMEM for one invocation
    # (total footprint << 1 MiB, far under any generation's scoped VMEM limit).
    return pl.pallas_call(
        fused_forward_kernel,
        out_shape=jax.ShapeDtypeStruct((B, N, D), jnp.float32),
    )(x, *packed)


# ---------------------------- parameter handling ------------------------------
def init_params(key):
    """Per-layer parameters in 'natural' (PyTorch-like) shapes, f32."""
    layers = []
    for _ in range(DEPTH):
        key, ka1, ka2, kf = jax.random.split(key, 4)

        def attn_p(k):
            k1, k2, k3, k4, k5 = jax.random.split(k, 5)
            return (1.0 + 0.1 * jax.random.normal(k1, (DIM,), jnp.float32),   # LN gamma
                    0.02 * jax.random.normal(k2, (DIM,), jnp.float32),        # LN beta
                    jax.random.normal(k3, (DIM, 3 * INNER), jnp.float32) * DIM ** -0.5,
                    jax.random.normal(k4, (INNER, DIM), jnp.float32) * INNER ** -0.5,
                    0.02 * jax.random.normal(k5, (DIM,), jnp.float32))        # out bias

        def ff_p(k):
            k1, k2, k3, k4, k5, k6 = jax.random.split(k, 6)
            return (1.0 + 0.1 * jax.random.normal(k1, (DIM,), jnp.float32),
                    0.02 * jax.random.normal(k2, (DIM,), jnp.float32),
                    jax.random.normal(k3, (DIM, MLP_DIM), jnp.float32) * DIM ** -0.5,
                    0.02 * jax.random.normal(k4, (MLP_DIM,), jnp.float32),
                    jax.random.normal(k5, (MLP_DIM, DIM), jnp.float32) * MLP_DIM ** -0.5,
                    0.02 * jax.random.normal(k6, (DIM,), jnp.float32))

        layers.append((attn_p(ka1), attn_p(ka2), ff_p(kf)))
    return layers


def pack_params(layers):
    """Stack all weights into kernel-friendly, lane-dense arrays.

    QKV weights stay in the natural (DIM, 3*INNER) layout (trailing dim 144 ->
    lane-dense, ~8x less VMEM/DMA than a trailing-16 layout).  The attention
    scale dim_head**-0.5 = 0.25 (exact power of two) is folded into the Wq
    columns, which is bit-identical to scaling the scores afterwards.
    Matmul weights are pre-cast to bf16; LN params and biases stay f32.
    """
    a_g, a_b, qkv_w, wouts, bouts = [], [], [], [], []
    f_g, f_b, w1s, b1s, w2s, b2s = [], [], [], [], [], []
    for attn1, attn2, ff in layers:
        for (g, b, wqkv, wout, bout) in (attn1, attn2):
            a_g.append(g.reshape(1, DIM))
            a_b.append(b.reshape(1, DIM))
            w = jnp.concatenate([wqkv[:, :INNER] * SCALE, wqkv[:, INNER:]], axis=1)
            qkv_w.append(w)                          # (DIM, 3*INNER), scale folded
            wouts.append(wout)
            bouts.append(bout.reshape(1, DIM))
        g, b, w1, b1, w2, b2 = ff
        f_g.append(g.reshape(1, DIM))
        f_b.append(b.reshape(1, DIM))
        w1s.append(w1)
        b1s.append(b1.reshape(1, MLP_DIM))
        w2s.append(w2)
        b2s.append(b2.reshape(1, DIM))

    f32 = lambda xs: jnp.stack(xs).astype(jnp.float32)
    bf16 = lambda xs: jnp.stack(xs).astype(jnp.bfloat16)
    return (f32(a_g), f32(a_b),
            bf16(qkv_w),                             # (N_ATTN, DIM, 3*INNER) bf16
            bf16(wouts), f32(bouts),
            f32(f_g), f32(f_b),
            bf16(w1s), f32(b1s), bf16(w2s), f32(b2s))


# ---------------------------- pure-JAX reference ------------------------------
# Mirrors the PyTorch module exactly (scale applied to the scores, per-head view
# via reshape/transpose), using the SAME bf16-operand / f32-accumulate matmul
# convention as the kernel, so the comparison isolates kernel errors.  The
# kernel's Wq-scale fold is bit-identical (0.25 is a power of two).
def _ref_attn(x, p):
    gamma, beta, wqkv, wout, bout = p
    B, N, _ = x.shape
    xn = _layernorm(x, gamma, beta)
    qkv = jnp.dot(xn.astype(jnp.bfloat16), wqkv.astype(jnp.bfloat16),
                  preferred_element_type=jnp.float32)
    q, k, v = jnp.split(qkv, 3, axis=-1)
    split = lambda t: t.reshape(B, N, HEADS, DIM_HEAD).transpose(0, 2, 1, 3)
    q, k, v = map(split, (q, k, v))
    dots = jnp.einsum('bhid,bhjd->bhij', q.astype(jnp.bfloat16),
                      k.astype(jnp.bfloat16),
                      preferred_element_type=jnp.float32) * SCALE
    dots = dots - jnp.max(dots, axis=-1, keepdims=True)
    e = jnp.exp(dots)
    attn = e / jnp.sum(e, axis=-1, keepdims=True)
    out = jnp.einsum('bhij,bhjd->bhid', attn.astype(jnp.bfloat16),
                     v.astype(jnp.bfloat16),
                     preferred_element_type=jnp.float32)
    out = out.transpose(0, 2, 1, 3).reshape(B, N, INNER)
    proj = jnp.dot(out.astype(jnp.bfloat16), wout.astype(jnp.bfloat16),
                   preferred_element_type=jnp.float32)
    return x + proj + bout


def _ref_ff(x, p):
    gamma, beta, w1, b1, w2, b2 = p
    xn = _layernorm(x, gamma, beta)
    h1 = jnp.dot(xn.astype(jnp.bfloat16), w1.astype(jnp.bfloat16),
                 preferred_element_type=jnp.float32) + b1
    h1 = jnp.where(h1 > 0, h1, LEAKY_SLOPE * h1)
    y = jnp.dot(h1.astype(jnp.bfloat16), w2.astype(jnp.bfloat16),
                preferred_element_type=jnp.float32) + b2
    return x + y


def transformer_d_reference(x, layers):
    for attn1, attn2, ff in layers:
        x = _ref_attn(x, attn1)
        x = _ref_attn(x, attn2)
        x = _ref_ff(x, ff)
    return x


# ---------------------------- main --------------------------------------------
if __name__ == "__main__":
    key = jax.random.PRNGKey(0)
    key, kx, kp = jax.random.split(key, 3)

    B, N = 2, 16                       # batch, sequence length (small test shapes)
    x = jax.random.normal(kx, (B, N, DIM), jnp.float32)

    layers = init_params(kp)
    packed = pack_params(layers)

    out = jax.block_until_ready(transformer_d_forward(x, packed))
    ref = transformer_d_reference(x, layers)

    assert out.shape == (B, N, DIM)
    # Kernel and reference share the bf16-operand convention; residual mismatch is
    # only MXU accumulation order / transcendental-impl noise across 6 sub-layers.
    assert jnp.allclose(out, ref, atol=2e-2, rtol=2e-2), "mismatch vs JAX reference"

    print("KERNEL_OK")
</pallas_src>

<mosaic_0001>
module attributes {stable_mosaic.version = 11 : i64} {
  func.func @fused_forward_kernel(%arg0: memref<2x16x48xf32, #tpu.memory_space<vmem>>, %arg1: memref<4x1x48xf32, #tpu.memory_space<vmem>>, %arg2: memref<4x1x48xf32, #tpu.memory_space<vmem>>, %arg3: memref<4x48x144xbf16, #tpu.memory_space<vmem>>, %arg4: memref<4x48x48xbf16, #tpu.memory_space<vmem>>, %arg5: memref<4x1x48xf32, #tpu.memory_space<vmem>>, %arg6: memref<2x1x48xf32, #tpu.memory_space<vmem>>, %arg7: memref<2x1x48xf32, #tpu.memory_space<vmem>>, %arg8: memref<2x48x48xbf16, #tpu.memory_space<vmem>>, %arg9: memref<2x1x48xf32, #tpu.memory_space<vmem>>, %arg10: memref<2x48x48xbf16, #tpu.memory_space<vmem>>, %arg11: memref<2x1x48xf32, #tpu.memory_space<vmem>>, %arg12: memref<2x16x48xf32, #tpu.memory_space<vmem>>) attributes {dimension_semantics = [], scalar_prefetch = 0 : i64, scratch_operands = 0 : i64, tpu.core_type = #tpu.core_type<tc>} {
    %c0 = arith.constant 0 : index
    %c0_0 = arith.constant 0 : index
    %c0_1 = arith.constant 0 : index
    %0 = vector.load %arg0[%c0, %c0_0, %c0_1] : memref<2x16x48xf32, #tpu.memory_space<vmem>>, vector<1x16x48xf32>
    %1 = vector.shape_cast %0 : vector<1x16x48xf32> to vector<16x48xf32>
    %c1 = arith.constant 1 : index
    %c0_2 = arith.constant 0 : index
    %c0_3 = arith.constant 0 : index
    %2 = vector.load %arg0[%c1, %c0_2, %c0_3] : memref<2x16x48xf32, #tpu.memory_space<vmem>>, vector<1x16x48xf32>
    %3 = vector.shape_cast %2 : vector<1x16x48xf32> to vector<16x48xf32>
    %4 = tpu.concatenate %1, %3 in 0 : vector<16x48xf32>, vector<16x48xf32> -> vector<32x48xf32>
    %c0_4 = arith.constant 0 : index
    %c0_5 = arith.constant 0 : index
    %c0_6 = arith.constant 0 : index
    %5 = vector.load %arg1[%c0_4, %c0_5, %c0_6] : memref<4x1x48xf32, #tpu.memory_space<vmem>>, vector<1x1x48xf32>
    %6 = vector.shape_cast %5 : vector<1x1x48xf32> to vector<1x48xf32>
    %c0_7 = arith.constant 0 : index
    %c0_8 = arith.constant 0 : index
    %c0_9 = arith.constant 0 : index
    %7 = vector.load %arg2[%c0_7, %c0_8, %c0_9] : memref<4x1x48xf32, #tpu.memory_space<vmem>>, vector<1x1x48xf32>
    %8 = vector.shape_cast %7 : vector<1x1x48xf32> to vector<1x48xf32>
    %cst = arith.constant dense<0.000000e+00> : vector<32xf32>
    %9 = vector.multi_reduction <add>, %4, %cst [1] : vector<32x48xf32> to vector<32xf32>
    %10 = vector.shape_cast %9 : vector<32xf32> to vector<32x1xf32>
    %cst_10 = arith.constant 4.800000e+01 : f32
    %11 = vector.broadcast %cst_10 : f32 to vector<32x1xf32>
    %12 = arith.divf %10, %11 : vector<32x1xf32>
    %13 = vector.broadcast %12 : vector<32x1xf32> to vector<32x48xf32>
    %14 = arith.subf %4, %13 : vector<32x48xf32>
    %15 = arith.mulf %14, %14 : vector<32x48xf32>
    %cst_11 = arith.constant dense<0.000000e+00> : vector<32xf32>
    %16 = vector.multi_reduction <add>, %15, %cst_11 [1] : vector<32x48xf32> to vector<32xf32>
    %17 = vector.shape_cast %16 : vector<32xf32> to vector<32x1xf32>
    %cst_12 = arith.constant 4.800000e+01 : f32
    %18 = vector.broadcast %cst_12 : f32 to vector<32x1xf32>
    %19 = arith.divf %17, %18 : vector<32x1xf32>
    %20 = vector.broadcast %12 : vector<32x1xf32> to vector<32x48xf32>
    %21 = arith.subf %4, %20 : vector<32x48xf32>
    %cst_13 = arith.constant 9.99999974E-6 : f32
    %22 = vector.broadcast %cst_13 : f32 to vector<32x1xf32>
    %23 = arith.addf %19, %22 : vector<32x1xf32>
    %24 = math.rsqrt %23 : vector<32x1xf32>
    %25 = vector.broadcast %24 : vector<32x1xf32> to vector<32x48xf32>
    %26 = arith.mulf %21, %25 : vector<32x48xf32>
    %27 = vector.broadcast %6 : vector<1x48xf32> to vector<32x48xf32>
    %28 = arith.mulf %26, %27 : vector<32x48xf32>
    %29 = vector.broadcast %8 : vector<1x48xf32> to vector<32x48xf32>
    %30 = arith.addf %28, %29 : vector<32x48xf32>
    %c0_14 = arith.constant 0 : index
    %c0_15 = arith.constant 0 : index
    %c0_16 = arith.constant 0 : index
    %31 = vector.load %arg3[%c0_14, %c0_15, %c0_16] : memref<4x48x144xbf16, #tpu.memory_space<vmem>>, vector<1x48x144xbf16>
    %32 = vector.shape_cast %31 : vector<1x48x144xbf16> to vector<48x144xbf16>
    %33 = arith.truncf %30 : vector<32x48xf32> to vector<32x48xbf16>
    %cst_17 = arith.constant dense<0.000000e+00> : vector<32x144xf32>
    %34 = tpu.matmul %33, %32, %cst_17 {dimension_numbers = #tpu.dot_dimension_numbers<[1], [0], [0], [1], [0, 0, 1, 1], [], []>} : vector<32x48xbf16>, vector<48x144xbf16>, vector<32x144xf32> -> vector<32x144xf32>
    %35 = vector.extract_strided_slice %34 {offsets = [0, 0], sizes = [16, 16], strides = [1, 1]} : vector<32x144xf32> to vector<16x16xf32>
    %36 = vector.extract_strided_slice %34 {offsets = [0, 48], sizes = [16, 16], strides = [1, 1]} : vector<32x144xf32> to vector<16x16xf32>
    %37 = vector.extract_strided_slice %34 {offsets = [0, 96], sizes = [16, 16], strides = [1, 1]} : vector<32x144xf32> to vector<16x16xf32>
    %38 = arith.truncf %35 : vector<16x16xf32> to vector<16x16xbf16>
    %39 = arith.truncf %36 : vector<16x16xf32> to vector<16x16xbf16>
    %cst_18 = arith.constant dense<0.000000e+00> : vector<16x16xf32>
    %40 = tpu.matmul %38, %39, %cst_18 {dimension_numbers = #tpu.dot_dimension_numbers<[1], [1], [0], [0], [0, 0, 1, 0], [], []>} : vector<16x16xbf16>, vector<16x16xbf16>, vector<16x16xf32> -> vector<16x16xf32>
    %cst_19 = arith.constant dense<0xFF800000> : vector<16xf32>
    %41 = vector.multi_reduction <maximumf>, %40, %cst_19 [1] : vector<16x16xf32> to vector<16xf32>
    %42 = vector.shape_cast %41 : vector<16xf32> to vector<16x1xf32>
    %43 = vector.broadcast %42 : vector<16x1xf32> to vector<16x16xf32>
    %44 = arith.subf %40, %43 : vector<16x16xf32>
    %45 = math.exp %44 : vector<16x16xf32>
    %cst_20 = arith.constant dense<0.000000e+00> : vector<16xf32>
    %46 = vector.multi_reduction <add>, %45, %cst_20 [1] : vector<16x16xf32> to vector<16xf32>
    %47 = vector.shape_cast %46 : vector<16xf32> to vector<16x1xf32>
    %48 = tpu.reciprocal %47 : vector<16x1xf32> -> vector<16x1xf32>
    %49 = vector.broadcast %48 : vector<16x1xf32> to vector<16x16xf32>
    %50 = arith.mulf %45, %49 : vector<16x16xf32>
    %51 = arith.truncf %50 : vector<16x16xf32> to vector<16x16xbf16>
    %52 = arith.truncf %37 : vector<16x16xf32> to vector<16x16xbf16>
    %cst_21 = arith.constant dense<0.000000e+00> : vector<16x16xf32>
    %53 = tpu.matmul %51, %52, %cst_21 {dimension_numbers = #tpu.dot_dimension_numbers<[1], [0], [0], [1], [0, 0, 1, 1], [], []>} : vector<16x16xbf16>, vector<16x16xbf16>, vector<16x16xf32> -> vector<16x16xf32>
    %54 = vector.extract_strided_slice %34 {offsets = [0, 16], sizes = [16, 16], strides = [1, 1]} : vector<32x144xf32> to vector<16x16xf32>
    %55 = vector.extract_strided_slice %34 {offsets = [0, 64], sizes = [16, 16], strides = [1, 1]} : vector<32x144xf32> to vector<16x16xf32>
    %56 = vector.extract_strided_slice %34 {offsets = [0, 112], sizes = [16, 16], strides = [1, 1]} : vector<32x144xf32> to vector<16x16xf32>
    %57 = arith.truncf %54 : vector<16x16xf32> to vector<16x16xbf16>
    %58 = arith.truncf %55 : vector<16x16xf32> to vector<16x16xbf16>
    %cst_22 = arith.constant dense<0.000000e+00> : vector<16x16xf32>
    %59 = tpu.matmul %57, %58, %cst_22 {dimension_numbers = #tpu.dot_dimension_numbers<[1], [1], [0], [0], [0, 0, 1, 0], [], []>} : vector<16x16xbf16>, vector<16x16xbf16>, vector<16x16xf32> -> vector<16x16xf32>
    %cst_23 = arith.constant dense<0xFF800000> : vector<16xf32>
    %60 = vector.multi_reduction <maximumf>, %59, %cst_23 [1] : vector<16x16xf32> to vector<16xf32>
    %61 = vector.shape_cast %60 : vector<16xf32> to vector<16x1xf32>
    %62 = vector.broadcast %61 : vector<16x1xf32> to vector<16x16xf32>
    %63 = arith.subf %59, %62 : vector<16x16xf32>
    %64 = math.exp %63 : vector<16x16xf32>
    %cst_24 = arith.constant dense<0.000000e+00> : vector<16xf32>
    %65 = vector.multi_reduction <add>, %64, %cst_24 [1] : vector<16x16xf32> to vector<16xf32>
    %66 = vector.shape_cast %65 : vector<16xf32> to vector<16x1xf32>
    %67 = tpu.reciprocal %66 : vector<16x1xf32> -> vector<16x1xf32>
    %68 = vector.broadcast %67 : vector<16x1xf32> to vector<16x16xf32>
    %69 = arith.mulf %64, %68 : vector<16x16xf32>
    %70 = arith.truncf %69 : vector<16x16xf32> to vector<16x16xbf16>
    %71 = arith.truncf %56 : vector<16x16xf32> to vector<16x16xbf16>
    %cst_25 = arith.constant dense<0.000000e+00> : vector<16x16xf32>
    %72 = tpu.matmul %70, %71, %cst_25 {dimension_numbers = #tpu.dot_dimension_numbers<[1], [0], [0], [1], [0, 0, 1, 1], [], []>} : vector<16x16xbf16>, vector<16x16xbf16>, vector<16x16xf32> -> vector<16x16xf32>
    %73 = vector.extract_strided_slice %34 {offsets = [0, 32], sizes = [16, 16], strides = [1, 1]} : vector<32x144xf32> to vector<16x16xf32>
    %74 = vector.extract_strided_slice %34 {offsets = [0, 80], sizes = [16, 16], strides = [1, 1]} : vector<32x144xf32> to vector<16x16xf32>
    %75 = vector.extract_strided_slice %34 {offsets = [0, 128], sizes = [16, 16], strides = [1, 1]} : vector<32x144xf32> to vector<16x16xf32>
    %76 = arith.truncf %73 : vector<16x16xf32> to vector<16x16xbf16>
    %77 = arith.truncf %74 : vector<16x16xf32> to vector<16x16xbf16>
    %cst_26 = arith.constant dense<0.000000e+00> : vector<16x16xf32>
    %78 = tpu.matmul %76, %77, %cst_26 {dimension_numbers = #tpu.dot_dimension_numbers<[1], [1], [0], [0], [0, 0, 1, 0], [], []>} : vector<16x16xbf16>, vector<16x16xbf16>, vector<16x16xf32> -> vector<16x16xf32>
    %cst_27 = arith.constant dense<0xFF800000> : vector<16xf32>
    %79 = vector.multi_reduction <maximumf>, %78, %cst_27 [1] : vector<16x16xf32> to vector<16xf32>
    %80 = vector.shape_cast %79 : vector<16xf32> to vector<16x1xf32>
    %81 = vector.broadcast %80 : vector<16x1xf32> to vector<16x16xf32>
    %82 = arith.subf %78, %81 : vector<16x16xf32>
    %83 = math.exp %82 : vector<16x16xf32>
    %cst_28 = arith.constant dense<0.000000e+00> : vector<16xf32>
    %84 = vector.multi_reduction <add>, %83, %cst_28 [1] : vector<16x16xf32> to vector<16xf32>
    %85 = vector.shape_cast %84 : vector<16xf32> to vector<16x1xf32>
    %86 = tpu.reciprocal %85 : vector<16x1xf32> -> vector<16x1xf32>
    %87 = vector.broadcast %86 : vector<16x1xf32> to vector<16x16xf32>
    %88 = arith.mulf %83, %87 : vector<16x16xf32>
    %89 = arith.truncf %88 : vector<16x16xf32> to vector<16x16xbf16>
    %90 = arith.truncf %75 : vector<16x16xf32> to vector<16x16xbf16>
    %cst_29 = arith.constant dense<0.000000e+00> : vector<16x16xf32>
    %91 = tpu.matmul %89, %90, %cst_29 {dimension_numbers = #tpu.dot_dimension_numbers<[1], [0], [0], [1], [0, 0, 1, 1], [], []>} : vector<16x16xbf16>, vector<16x16xbf16>, vector<16x16xf32> -> vector<16x16xf32>
    %92 = tpu.concatenate %53, %72, %91 in 1 : vector<16x16xf32>, vector<16x16xf32>, vector<16x16xf32> -> vector<16x48xf32>
    %93 = vector.extract_strided_slice %34 {offsets = [16, 0], sizes = [16, 16], strides = [1, 1]} : vector<32x144xf32> to vector<16x16xf32>
    %94 = vector.extract_strided_slice %34 {offsets = [16, 48], sizes = [16, 16], strides = [1, 1]} : vector<32x144xf32> to vector<16x16xf32>
    %95 = vector.extract_strided_slice %34 {offsets = [16, 96], sizes = [16, 16], strides = [1, 1]} : vector<32x144xf32> to vector<16x16xf32>
    %96 = arith.truncf %93 : vector<16x16xf32> to vector<16x16xbf16>
    %97 = arith.truncf %94 : vector<16x16xf32> to vector<16x16xbf16>
    %cst_30 = arith.constant dense<0.000000e+00> : vector<16x16xf32>
    %98 = tpu.matmul %96, %97, %cst_30 {dimension_numbers = #tpu.dot_dimension_numbers<[1], [1], [0], [0], [0, 0, 1, 0], [], []>} : vector<16x16xbf16>, vector<16x16xbf16>, vector<16x16xf32> -> vector<16x16xf32>
    %cst_31 = arith.constant dense<0xFF800000> : vector<16xf32>
    %99 = vector.multi_reduction <maximumf>, %98, %cst_31 [1] : vector<16x16xf32> to vector<16xf32>
    %100 = vector.shape_cast %99 : vector<16xf32> to vector<16x1xf32>
    %101 = vector.broadcast %100 : vector<16x1xf32> to vector<16x16xf32>
    %102 = arith.subf %98, %101 : vector<16x16xf32>
    %103 = math.exp %102 : vector<16x16xf32>
    %cst_32 = arith.constant dense<0.000000e+00> : vector<16xf32>
    %104 = vector.multi_reduction <add>, %103, %cst_32 [1] : vector<16x16xf32> to vector<16xf32>
    %105 = vector.shape_cast %104 : vector<16xf32> to vector<16x1xf32>
    %106 = tpu.reciprocal %105 : vector<16x1xf32> -> vector<16x1xf32>
    %107 = vector.broadcast %106 : vector<16x1xf32> to vector<16x16xf32>
    %108 = arith.mulf %103, %107 : vector<16x16xf32>
    %109 = arith.truncf %108 : vector<16x16xf32> to vector<16x16xbf16>
    %110 = arith.truncf %95 : vector<16x16xf32> to vector<16x16xbf16>
    %cst_33 = arith.constant dense<0.000000e+00> : vector<16x16xf32>
    %111 = tpu.matmul %109, %110, %cst_33 {dimension_numbers = #tpu.dot_dimension_numbers<[1], [0], [0], [1], [0, 0, 1, 1], [], []>} : vector<16x16xbf16>, vector<16x16xbf16>, vector<16x16xf32> -> vector<16x16xf32>
    %112 = vector.extract_strided_slice %34 {offsets = [16, 16], sizes = [16, 16], strides = [1, 1]} : vector<32x144xf32> to vector<16x16xf32>
    %113 = vector.extract_strided_slice %34 {offsets = [16, 64], sizes = [16, 16], strides = [1, 1]} : vector<32x144xf32> to vector<16x16xf32>
    %114 = vector.extract_strided_slice %34 {offsets = [16, 112], sizes = [16, 16], strides = [1, 1]} : vector<32x144xf32> to vector<16x16xf32>
    %115 = arith.truncf %112 : vector<16x16xf32> to vector<16x16xbf16>
    %116 = arith.truncf %113 : vector<16x16xf32> to vector<16x16xbf16>
    %cst_34 = arith.constant dense<0.000000e+00> : vector<16x16xf32>
    %117 = tpu.matmul %115, %116, %cst_34 {dimension_numbers = #tpu.dot_dimension_numbers<[1], [1], [0], [0], [0, 0, 1, 0], [], []>} : vector<16x16xbf16>, vector<16x16xbf16>, vector<16x16xf32> -> vector<16x16xf32>
    %cst_35 = arith.constant dense<0xFF800000> : vector<16xf32>
    %118 = vector.multi_reduction <maximumf>, %117, %cst_35 [1] : vector<16x16xf32> to vector<16xf32>
    %119 = vector.shape_cast %118 : vector<16xf32> to vector<16x1xf32>
    %120 = vector.broadcast %119 : vector<16x1xf32> to vector<16x16xf32>
    %121 = arith.subf %117, %120 : vector<16x16xf32>
    %122 = math.exp %121 : vector<16x16xf32>
    %cst_36 = arith.constant dense<0.000000e+00> : vector<16xf32>
    %123 = vector.multi_reduction <add>, %122, %cst_36 [1] : vector<16x16xf32> to vector<16xf32>
    %124 = vector.shape_cast %123 : vector<16xf32> to vector<16x1xf32>
    %125 = tpu.reciprocal %124 : vector<16x1xf32> -> vector<16x1xf32>
    %126 = vector.broadcast %125 : vector<16x1xf32> to vector<16x16xf32>
    %127 = arith.mulf %122, %126 : vector<16x16xf32>
    %128 = arith.truncf %127 : vector<16x16xf32> to vector<16x16xbf16>
    %129 = arith.truncf %114 : vector<16x16xf32> to vector<16x16xbf16>
    %cst_37 = arith.constant dense<0.000000e+00> : vector<16x16xf32>
    %130 = tpu.matmul %128, %129, %cst_37 {dimension_numbers = #tpu.dot_dimension_numbers<[1], [0], [0], [1], [0, 0, 1, 1], [], []>} : vector<16x16xbf16>, vector<16x16xbf16>, vector<16x16xf32> -> vector<16x16xf32>
    %131 = vector.extract_strided_slice %34 {offsets = [16, 32], sizes = [16, 16], strides = [1, 1]} : vector<32x144xf32> to vector<16x16xf32>
    %132 = vector.extract_strided_slice %34 {offsets = [16, 80], sizes = [16, 16], strides = [1, 1]} : vector<32x144xf32> to vector<16x16xf32>
    %133 = vector.extract_strided_slice %34 {offsets = [16, 128], sizes = [16, 16], strides = [1, 1]} : vector<32x144xf32> to vector<16x16xf32>
    %134 = arith.truncf %131 : vector<16x16xf32> to vector<16x16xbf16>
    %135 = arith.truncf %132 : vector<16x16xf32> to vector<16x16xbf16>
    %cst_38 = arith.constant dense<0.000000e+00> : vector<16x16xf32>
    %136 = tpu.matmul %134, %135, %cst_38 {dimension_numbers = #tpu.dot_dimension_numbers<[1], [1], [0], [0], [0, 0, 1, 0], [], []>} : vector<16x16xbf16>, vector<16x16xbf16>, vector<16x16xf32> -> vector<16x16xf32>
    %cst_39 = arith.constant dense<0xFF800000> : vector<16xf32>
    %137 = vector.multi_reduction <maximumf>, %136, %cst_39 [1] : vector<16x16xf32> to vector<16xf32>
    %138 = vector.shape_cast %137 : vector<16xf32> to vector<16x1xf32>
    %139 = vector.broadcast %138 : vector<16x1xf32> to vector<16x16xf32>
    %140 = arith.subf %136, %139 : vector<16x16xf32>
    %141 = math.exp %140 : vector<16x16xf32>
    %cst_40 = arith.constant dense<0.000000e+00> : vector<16xf32>
    %142 = vector.multi_reduction <add>, %141, %cst_40 [1] : vector<16x16xf32> to vector<16xf32>
    %143 = vector.shape_cast %142 : vector<16xf32> to vector<16x1xf32>
    %144 = tpu.reciprocal %143 : vector<16x1xf32> -> vector<16x1xf32>
    %145 = vector.broadcast %144 : vector<16x1xf32> to vector<16x16xf32>
    %146 = arith.mulf %141, %145 : vector<16x16xf32>
    %147 = arith.truncf %146 : vector<16x16xf32> to vector<16x16xbf16>
    %148 = arith.truncf %133 : vector<16x16xf32> to vector<16x16xbf16>
    %cst_41 = arith.constant dense<0.000000e+00> : vector<16x16xf32>
    %149 = tpu.matmul %147, %148, %cst_41 {dimension_numbers = #tpu.dot_dimension_numbers<[1], [0], [0], [1], [0, 0, 1, 1], [], []>} : vector<16x16xbf16>, vector<16x16xbf16>, vector<16x16xf32> -> vector<16x16xf32>
    %150 = tpu.concatenate %111, %130, %149 in 1 : vector<16x16xf32>, vector<16x16xf32>, vector<16x16xf32> -> vector<16x48xf32>
    %151 = tpu.concatenate %92, %150 in 0 : vector<16x48xf32>, vector<16x48xf32> -> vector<32x48xf32>
    %c0_42 = arith.constant 0 : index
    %c0_43 = arith.constant 0 : index
    %c0_44 = arith.constant 0 : index
    %152 = vector.load %arg4[%c0_42, %c0_43, %c0_44] : memref<4x48x48xbf16, #tpu.memory_space<vmem>>, vector<1x48x48xbf16>
    %153 = vector.shape_cast %152 : vector<1x48x48xbf16> to vector<48x48xbf16>
    %154 = arith.truncf %151 : vector<32x48xf32> to vector<32x48xbf16>
    %cst_45 = arith.constant dense<0.000000e+00> : vector<32x48xf32>
    %155 = tpu.matmul %154, %153, %cst_45 {dimension_numbers = #tpu.dot_dimension_numbers<[1], [0], [0], [1], [0, 0, 1, 1], [], []>} : vector<32x48xbf16>, vector<48x48xbf16>, vector<32x48xf32> -> vector<32x48xf32>
    %156 = arith.addf %4, %155 : vector<32x48xf32>
    %c0_46 = arith.constant 0 : index
    %c0_47 = arith.constant 0 : index
    %c0_48 = arith.constant 0 : index
    %157 = vector.load %arg5[%c0_46, %c0_47, %c0_48] : memref<4x1x48xf32, #tpu.memory_space<vmem>>, vector<1x1x48xf32>
    %158 = vector.shape_cast %157 : vector<1x1x48xf32> to vector<1x48xf32>
    %159 = vector.broadcast %158 : vector<1x48xf32> to vector<32x48xf32>
    %160 = arith.addf %156, %159 : vector<32x48xf32>
    %c1_49 = arith.constant 1 : index
    %c0_50 = arith.constant 0 : index
    %c0_51 = arith.constant 0 : index
    %161 = vector.load %arg1[%c1_49, %c0_50, %c0_51] : memref<4x1x48xf32, #tpu.memory_space<vmem>>, vector<1x1x48xf32>
    %162 = vector.shape_cast %161 : vector<1x1x48xf32> to vector<1x48xf32>
    %c1_52 = arith.constant 1 : index
    %c0_53 = arith.constant 0 : index
    %c0_54 = arith.constant 0 : index
    %163 = vector.load %arg2[%c1_52, %c0_53, %c0_54] : memref<4x1x48xf32, #tpu.memory_space<vmem>>, vector<1x1x48xf32>
    %164 = vector.shape_cast %163 : vector<1x1x48xf32> to vector<1x48xf32>
    %cst_55 = arith.constant dense<0.000000e+00> : vector<32xf32>
    %165 = vector.multi_reduction <add>, %160, %cst_55 [1] : vector<32x48xf32> to vector<32xf32>
    %166 = vector.shape_cast %165 : vector<32xf32> to vector<32x1xf32>
    %cst_56 = arith.constant 4.800000e+01 : f32
    %167 = vector.broadcast %cst_56 : f32 to vector<32x1xf32>
    %168 = arith.divf %166, %167 : vector<32x1xf32>
    %169 = vector.broadcast %168 : vector<32x1xf32> to vector<32x48xf32>
    %170 = arith.subf %160, %169 : vector<32x48xf32>
    %171 = arith.mulf %170, %170 : vector<32x48xf32>
    %cst_57 = arith.constant dense<0.000000e+00> : vector<32xf32>
    %172 = vector.multi_reduction <add>, %171, %cst_57 [1] : vector<32x48xf32> to vector<32xf32>
    %173 = vector.shape_cast %172 : vector<32xf32> to vector<32x1xf32>
    %cst_58 = arith.constant 4.800000e+01 : f32
    %174 = vector.broadcast %cst_58 : f32 to vector<32x1xf32>
    %175 = arith.divf %173, %174 : vector<32x1xf32>
    %176 = vector.broadcast %168 : vector<32x1xf32> to vector<32x48xf32>
    %177 = arith.subf %160, %176 : vector<32x48xf32>
    %cst_59 = arith.constant 9.99999974E-6 : f32
    %178 = vector.broadcast %cst_59 : f32 to vector<32x1xf32>
    %179 = arith.addf %175, %178 : vector<32x1xf32>
    %180 = math.rsqrt %179 : vector<32x1xf32>
    %181 = vector.broadcast %180 : vector<32x1xf32> to vector<32x48xf32>
    %182 = arith.mulf %177, %181 : vector<32x48xf32>
    %183 = vector.broadcast %162 : vector<1x48xf32> to vector<32x48xf32>
    %184 = arith.mulf %182, %183 : vector<32x48xf32>
    %185 = vector.broadcast %164 : vector<1x48xf32> to vector<32x48xf32>
    %186 = arith.addf %184, %185 : vector<32x48xf32>
    %c1_60 = arith.constant 1 : index
    %c0_61 = arith.constant 0 : index
    %c0_62 = arith.constant 0 : index
    %187 = vector.load %arg3[%c1_60, %c0_61, %c0_62] : memref<4x48x144xbf16, #tpu.memory_space<vmem>>, vector<1x48x144xbf16>
    %188 = vector.shape_cast %187 : vector<1x48x144xbf16> to vector<48x144xbf16>
    %189 = arith.truncf %186 : vector<32x48xf32> to vector<32x48xbf16>
    %cst_63 = arith.constant dense<0.000000e+00> : vector<32x144xf32>
    %190 = tpu.matmul %189, %188, %cst_63 {dimension_numbers = #tpu.dot_dimension_numbers<[1], [0], [0], [1], [0, 0, 1, 1], [], []>} : vector<32x48xbf16>, vector<48x144xbf16>, vector<32x144xf32> -> vector<32x144xf32>
    %191 = vector.extract_strided_slice %190 {offsets = [0, 0], sizes = [16, 16], strides = [1, 1]} : vector<32x144xf32> to vector<16x16xf32>
    %192 = vector.extract_strided_slice %190 {offsets = [0, 48], sizes = [16, 16], strides = [1, 1]} : vector<32x144xf32> to vector<16x16xf32>
    %193 = vector.extract_strided_slice %190 {offsets = [0, 96], sizes = [16, 16], strides = [1, 1]} : vector<32x144xf32> to vector<16x16xf32>
    %194 = arith.truncf %191 : vector<16x16xf32> to vector<16x16xbf16>
    %195 = arith.truncf %192 : vector<16x16xf32> to vector<16x16xbf16>
    %cst_64 = arith.constant dense<0.000000e+00> : vector<16x16xf32>
    %196 = tpu.matmul %194, %195, %cst_64 {dimension_numbers = #tpu.dot_dimension_numbers<[1], [1], [0], [0], [0, 0, 1, 0], [], []>} : vector<16x16xbf16>, vector<16x16xbf16>, vector<16x16xf32> -> vector<16x16xf32>
    %cst_65 = arith.constant dense<0xFF800000> : vector<16xf32>
    %197 = vector.multi_reduction <maximumf>, %196, %cst_65 [1] : vector<16x16xf32> to vector<16xf32>
    %198 = vector.shape_cast %197 : vector<16xf32> to vector<16x1xf32>
    %199 = vector.broadcast %198 : vector<16x1xf32> to vector<16x16xf32>
    %200 = arith.subf %196, %199 : vector<16x16xf32>
    %201 = math.exp %200 : vector<16x16xf32>
    %cst_66 = arith.constant dense<0.000000e+00> : vector<16xf32>
    %202 = vector.multi_reduction <add>, %201, %cst_66 [1] : vector<16x16xf32> to vector<16xf32>
    %203 = vector.shape_cast %202 : vector<16xf32> to vector<16x1xf32>
    %204 = tpu.reciprocal %203 : vector<16x1xf32> -> vector<16x1xf32>
    %205 = vector.broadcast %204 : vector<16x1xf32> to vector<16x16xf32>
    %206 = arith.mulf %201, %205 : vector<16x16xf32>
    %207 = arith.truncf %206 : vector<16x16xf32> to vector<16x16xbf16>
    %208 = arith.truncf %193 : vector<16x16xf32> to vector<16x16xbf16>
    %cst_67 = arith.constant dense<0.000000e+00> : vector<16x16xf32>
    %209 = tpu.matmul %207, %208, %cst_67 {dimension_numbers = #tpu.dot_dimension_numbers<[1], [0], [0], [1], [0, 0, 1, 1], [], []>} : vector<16x16xbf16>, vector<16x16xbf16>, vector<16x16xf32> -> vector<16x16xf32>
    %210 = vector.extract_strided_slice %190 {offsets = [0, 16], sizes = [16, 16], strides = [1, 1]} : vector<32x144xf32> to vector<16x16xf32>
    %211 = vector.extract_strided_slice %190 {offsets = [0, 64], sizes = [16, 16], strides = [1, 1]} : vector<32x144xf32> to vector<16x16xf32>
    %212 = vector.extract_strided_slice %190 {offsets = [0, 112], sizes = [16, 16], strides = [1, 1]} : vector<32x144xf32> to vector<16x16xf32>
    %213 = arith.truncf %210 : vector<16x16xf32> to vector<16x16xbf16>
    %214 = arith.truncf %211 : vector<16x16xf32> to vector<16x16xbf16>
    %cst_68 = arith.constant dense<0.000000e+00> : vector<16x16xf32>
    %215 = tpu.matmul %213, %214, %cst_68 {dimension_numbers = #tpu.dot_dimension_numbers<[1], [1], [0], [0], [0, 0, 1, 0], [], []>} : vector<16x16xbf16>, vector<16x16xbf16>, vector<16x16xf32> -> vector<16x16xf32>
    %cst_69 = arith.constant dense<0xFF800000> : vector<16xf32>
    %216 = vector.multi_reduction <maximumf>, %215, %cst_69 [1] : vector<16x16xf32> to vector<16xf32>
    %217 = vector.shape_cast %216 : vector<16xf32> to vector<16x1xf32>
    %218 = vector.broadcast %217 : vector<16x1xf32> to vector<16x16xf32>
    %219 = arith.subf %215, %218 : vector<16x16xf32>
    %220 = math.exp %219 : vector<16x16xf32>
    %cst_70 = arith.constant dense<0.000000e+00> : vector<16xf32>
    %221 = vector.multi_reduction <add>, %220, %cst_70 [1] : vector<16x16xf32> to vector<16xf32>
    %222 = vector.shape_cast %221 : vector<16xf32> to vector<16x1xf32>
    %223 = tpu.reciprocal %222 : vector<16x1xf32> -> vector<16x1xf32>
    %224 = vector.broadcast %223 : vector<16x1xf32> to vector<16x16xf32>
    %225 = arith.mulf %220, %224 : vector<16x16xf32>
    %226 = arith.truncf %225 : vector<16x16xf32> to vector<16x16xbf16>
    %227 = arith.truncf %212 : vector<16x16xf32> to vector<16x16xbf16>
    %cst_71 = arith.constant dense<0.000000e+00> : vector<16x16xf32>
    %228 = tpu.matmul %226, %227, %cst_71 {dimension_numbers = #tpu.dot_dimension_numbers<[1], [0], [0], [1], [0, 0, 1, 1], [], []>} : vector<16x16xbf16>, vector<16x16xbf16>, vector<16x16xf32> -> vector<16x16xf32>
    %229 = vector.extract_strided_slice %190 {offsets = [0, 32], sizes = [16, 16], strides = [1, 1]} : vector<32x144xf32> to vector<16x16xf32>
    %230 = vector.extract_strided_slice %190 {offsets = [0, 80], sizes = [16, 16], strides = [1, 1]} : vector<32x144xf32> to vector<16x16xf32>
    %231 = vector.extract_strided_slice %190 {offsets = [0, 128], sizes = [16, 16], strides = [1, 1]} : vector<32x144xf32> to vector<16x16xf32>
    %232 = arith.truncf %229 : vector<16x16xf32> to vector<16x16xbf16>
    %233 = arith.truncf %230 : vector<16x16xf32> to vector<16x16xbf16>
    %cst_72 = arith.constant dense<0.000000e+00> : vector<16x16xf32>
    %234 = tpu.matmul %232, %233, %cst_72 {dimension_numbers = #tpu.dot_dimension_numbers<[1], [1], [0], [0], [0, 0, 1, 0], [], []>} : vector<16x16xbf16>, vector<16x16xbf16>, vector<16x16xf32> -> vector<16x16xf32>
    %cst_73 = arith.constant dense<0xFF800000> : vector<16xf32>
    %235 = vector.multi_reduction <maximumf>, %234, %cst_73 [1] : vector<16x16xf32> to vector<16xf32>
    %236 = vector.shape_cast %235 : vector<16xf32> to vector<16x1xf32>
    %237 = vector.broadcast %236 : vector<16x1xf32> to vector<16x16xf32>
    %238 = arith.subf %234, %237 : vector<16x16xf32>
    %239 = math.exp %238 : vector<16x16xf32>
    %cst_74 = arith.constant dense<0.000000e+00> : vector<16xf32>
    %240 = vector.multi_reduction <add>, %239, %cst_74 [1] : vector<16x16xf32> to vector<16xf32>
    %241 = vector.shape_cast %240 : vector<16xf32> to vector<16x1xf32>
    %242 = tpu.reciprocal %241 : vector<16x1xf32> -> vector<16x1xf32>
    %243 = vector.broadcast %242 : vector<16x1xf32> to vector<16x16xf32>
    %244 = arith.mulf %239, %243 : vector<16x16xf32>
    %245 = arith.truncf %244 : vector<16x16xf32> to vector<16x16xbf16>
    %246 = arith.truncf %231 : vector<16x16xf32> to vector<16x16xbf16>
    %cst_75 = arith.constant dense<0.000000e+00> : vector<16x16xf32>
    %247 = tpu.matmul %245, %246, %cst_75 {dimension_numbers = #tpu.dot_dimension_numbers<[1], [0], [0], [1], [0, 0, 1, 1], [], []>} : vector<16x16xbf16>, vector<16x16xbf16>, vector<16x16xf32> -> vector<16x16xf32>
    %248 = tpu.concatenate %209, %228, %247 in 1 : vector<16x16xf32>, vector<16x16xf32>, vector<16x16xf32> -> vector<16x48xf32>
    %249 = vector.extract_strided_slice %190 {offsets = [16, 0], sizes = [16, 16], strides = [1, 1]} : vector<32x144xf32> to vector<16x16xf32>
    %250 = vector.extract_strided_slice %190 {offsets = [16, 48], sizes = [16, 16], strides = [1, 1]} : vector<32x144xf32> to vector<16x16xf32>
    %251 = vector.extract_strided_slice %190 {offsets = [16, 96], sizes = [16, 16], strides = [1, 1]} : vector<32x144xf32> to vector<16x16xf32>
    %252 = arith.truncf %249 : vector<16x16xf32> to vector<16x16xbf16>
    %253 = arith.truncf %250 : vector<16x16xf32> to vector<16x16xbf16>
    %cst_76 = arith.constant dense<0.000000e+00> : vector<16x16xf32>
    %254 = tpu.matmul %252, %253, %cst_76 {dimension_numbers = #tpu.dot_dimension_numbers<[1], [1], [0], [0], [0, 0, 1, 0], [], []>} : vector<16x16xbf16>, vector<16x16xbf16>, vector<16x16xf32> -> vector<16x16xf32>
    %cst_77 = arith.constant dense<0xFF800000> : vector<16xf32>
    %255 = vector.multi_reduction <maximumf>, %254, %cst_77 [1] : vector<16x16xf32> to vector<16xf32>
    %256 = vector.shape_cast %255 : vector<16xf32> to vector<16x1xf32>
    %257 = vector.broadcast %256 : vector<16x1xf32> to vector<16x16xf32>
    %258 = arith.subf %254, %257 : vector<16x16xf32>
    %259 = math.exp %258 : vector<16x16xf32>
    %cst_78 = arith.constant dense<0.000000e+00> : vector<16xf32>
    %260 = vector.multi_reduction <add>, %259, %cst_78 [1] : vector<16x16xf32> to vector<16xf32>
    %261 = vector.shape_cast %260 : vector<16xf32> to vector<16x1xf32>
    %262 = tpu.reciprocal %261 : vector<16x1xf32> -> vector<16x1xf32>
    %263 = vector.broadcast %262 : vector<16x1xf32> to vector<16x16xf32>
    %264 = arith.mulf %259, %263 : vector<16x16xf32>
    %265 = arith.truncf %264 : vector<16x16xf32> to vector<16x16xbf16>
    %266 = arith.truncf %251 : vector<16x16xf32> to vector<16x16xbf16>
    %cst_79 = arith.constant dense<0.000000e+00> : vector<16x16xf32>
    %267 = tpu.matmul %265, %266, %cst_79 {dimension_numbers = #tpu.dot_dimension_numbers<[1], [0], [0], [1], [0, 0, 1, 1], [], []>} : vector<16x16xbf16>, vector<16x16xbf16>, vector<16x16xf32> -> vector<16x16xf32>
    %268 = vector.extract_strided_slice %190 {offsets = [16, 16], sizes = [16, 16], strides = [1, 1]} : vector<32x144xf32> to vector<16x16xf32>
    %269 = vector.extract_strided_slice %190 {offsets = [16, 64], sizes = [16, 16], strides = [1, 1]} : vector<32x144xf32> to vector<16x16xf32>
    %270 = vector.extract_strided_slice %190 {offsets = [16, 112], sizes = [16, 16], strides = [1, 1]} : vector<32x144xf32> to vector<16x16xf32>
    %271 = arith.truncf %268 : vector<16x16xf32> to vector<16x16xbf16>
    %272 = arith.truncf %269 : vector<16x16xf32> to vector<16x16xbf16>
    %cst_80 = arith.constant dense<0.000000e+00> : vector<16x16xf32>
    %273 = tpu.matmul %271, %272, %cst_80 {dimension_numbers = #tpu.dot_dimension_numbers<[1], [1], [0], [0], [0, 0, 1, 0], [], []>} : vector<16x16xbf16>, vector<16x16xbf16>, vector<16x16xf32> -> vector<16x16xf32>
    %cst_81 = arith.constant dense<0xFF800000> : vector<16xf32>
    %274 = vector.multi_reduction <maximumf>, %273, %cst_81 [1] : vector<16x16xf32> to vector<16xf32>
    %275 = vector.shape_cast %274 : vector<16xf32> to vector<16x1xf32>
    %276 = vector.broadcast %275 : vector<16x1xf32> to vector<16x16xf32>
    %277 = arith.subf %273, %276 : vector<16x16xf32>
    %278 = math.exp %277 : vector<16x16xf32>
    %cst_82 = arith.constant dense<0.000000e+00> : vector<16xf32>
    %279 = vector.multi_reduction <add>, %278, %cst_82 [1] : vector<16x16xf32> to vector<16xf32>
    %280 = vector.shape_cast %279 : vector<16xf32> to vector<16x1xf32>
    %281 = tpu.reciprocal %280 : vector<16x1xf32> -> vector<16x1xf32>
    %282 = vector.broadcast %281 : vector<16x1xf32> to vector<16x16xf32>
    %283 = arith.mulf %278, %282 : vector<16x16xf32>
    %284 = arith.truncf %283 : vector<16x16xf32> to vector<16x16xbf16>
    %285 = arith.truncf %270 : vector<16x16xf32> to vector<16x16xbf16>
    %cst_83 = arith.constant dense<0.000000e+00> : vector<16x16xf32>
    %286 = tpu.matmul %284, %285, %cst_83 {dimension_numbers = #tpu.dot_dimension_numbers<[1], [0], [0], [1], [0, 0, 1, 1], [], []>} : vector<16x16xbf16>, vector<16x16xbf16>, vector<16x16xf32> -> vector<16x16xf32>
    %287 = vector.extract_strided_slice %190 {offsets = [16, 32], sizes = [16, 16], strides = [1, 1]} : vector<32x144xf32> to vector<16x16xf32>
    %288 = vector.extract_strided_slice %190 {offsets = [16, 80], sizes = [16, 16], strides = [1, 1]} : vector<32x144xf32> to vector<16x16xf32>
    %289 = vector.extract_strided_slice %190 {offsets = [16, 128], sizes = [16, 16], strides = [1, 1]} : vector<32x144xf32> to vector<16x16xf32>
    %290 = arith.truncf %287 : vector<16x16xf32> to vector<16x16xbf16>
    %291 = arith.truncf %288 : vector<16x16xf32> to vector<16x16xbf16>
    %cst_84 = arith.constant dense<0.000000e+00> : vector<16x16xf32>
    %292 = tpu.matmul %290, %291, %cst_84 {dimension_numbers = #tpu.dot_dimension_numbers<[1], [1], [0], [0], [0, 0, 1, 0], [], []>} : vector<16x16xbf16>, vector<16x16xbf16>, vector<16x16xf32> -> vector<16x16xf32>
    %cst_85 = arith.constant dense<0xFF800000> : vector<16xf32>
    %293 = vector.multi_reduction <maximumf>, %292, %cst_85 [1] : vector<16x16xf32> to vector<16xf32>
    %294 = vector.shape_cast %293 : vector<16xf32> to vector<16x1xf32>
    %295 = vector.broadcast %294 : vector<16x1xf32> to vector<16x16xf32>
    %296 = arith.subf %292, %295 : vector<16x16xf32>
    %297 = math.exp %296 : vector<16x16xf32>
    %cst_86 = arith.constant dense<0.000000e+00> : vector<16xf32>
    %298 = vector.multi_reduction <add>, %297, %cst_86 [1] : vector<16x16xf32> to vector<16xf32>
    %299 = vector.shape_cast %298 : vector<16xf32> to vector<16x1xf32>
    %300 = tpu.reciprocal %299 : vector<16x1xf32> -> vector<16x1xf32>
    %301 = vector.broadcast %300 : vector<16x1xf32> to vector<16x16xf32>
    %302 = arith.mulf %297, %301 : vector<16x16xf32>
    %303 = arith.truncf %302 : vector<16x16xf32> to vector<16x16xbf16>
    %304 = arith.truncf %289 : vector<16x16xf32> to vector<16x16xbf16>
    %cst_87 = arith.constant dense<0.000000e+00> : vector<16x16xf32>
    %305 = tpu.matmul %303, %304, %cst_87 {dimension_numbers = #tpu.dot_dimension_numbers<[1], [0], [0], [1], [0, 0, 1, 1], [], []>} : vector<16x16xbf16>, vector<16x16xbf16>, vector<16x16xf32> -> vector<16x16xf32>
    %306 = tpu.concatenate %267, %286, %305 in 1 : vector<16x16xf32>, vector<16x16xf32>, vector<16x16xf32> -> vector<16x48xf32>
    %307 = tpu.concatenate %248, %306 in 0 : vector<16x48xf32>, vector<16x48xf32> -> vector<32x48xf32>
    %c1_88 = arith.constant 1 : index
    %c0_89 = arith.constant 0 : index
    %c0_90 = arith.constant 0 : index
    %308 = vector.load %arg4[%c1_88, %c0_89, %c0_90] : memref<4x48x48xbf16, #tpu.memory_space<vmem>>, vector<1x48x48xbf16>
    %309 = vector.shape_cast %308 : vector<1x48x48xbf16> to vector<48x48xbf16>
    %310 = arith.truncf %307 : vector<32x48xf32> to vector<32x48xbf16>
    %cst_91 = arith.constant dense<0.000000e+00> : vector<32x48xf32>
    %311 = tpu.matmul %310, %309, %cst_91 {dimension_numbers = #tpu.dot_dimension_numbers<[1], [0], [0], [1], [0, 0, 1, 1], [], []>} : vector<32x48xbf16>, vector<48x48xbf16>, vector<32x48xf32> -> vector<32x48xf32>
    %312 = arith.addf %160, %311 : vector<32x48xf32>
    %c1_92 = arith.constant 1 : index
    %c0_93 = arith.constant 0 : index
    %c0_94 = arith.constant 0 : index
    %313 = vector.load %arg5[%c1_92, %c0_93, %c0_94] : memref<4x1x48xf32, #tpu.memory_space<vmem>>, vector<1x1x48xf32>
    %314 = vector.shape_cast %313 : vector<1x1x48xf32> to vector<1x48xf32>
    %315 = vector.broadcast %314 : vector<1x48xf32> to vector<32x48xf32>
    %316 = arith.addf %312, %315 : vector<32x48xf32>
    %c0_95 = arith.constant 0 : index
    %c0_96 = arith.constant 0 : index
    %c0_97 = arith.constant 0 : index
    %317 = vector.load %arg6[%c0_95, %c0_96, %c0_97] : memref<2x1x48xf32, #tpu.memory_space<vmem>>, vector<1x1x48xf32>
    %318 = vector.shape_cast %317 : vector<1x1x48xf32> to vector<1x48xf32>
    %c0_98 = arith.constant 0 : index
    %c0_99 = arith.constant 0 : index
    %c0_100 = arith.constant 0 : index
    %319 = vector.load %arg7[%c0_98, %c0_99, %c0_100] : memref<2x1x48xf32, #tpu.memory_space<vmem>>, vector<1x1x48xf32>
    %320 = vector.shape_cast %319 : vector<1x1x48xf32> to vector<1x48xf32>
    %cst_101 = arith.constant dense<0.000000e+00> : vector<32xf32>
    %321 = vector.multi_reduction <add>, %316, %cst_101 [1] : vector<32x48xf32> to vector<32xf32>
    %322 = vector.shape_cast %321 : vector<32xf32> to vector<32x1xf32>
    %cst_102 = arith.constant 4.800000e+01 : f32
    %323 = vector.broadcast %cst_102 : f32 to vector<32x1xf32>
    %324 = arith.divf %322, %323 : vector<32x1xf32>
    %325 = vector.broadcast %324 : vector<32x1xf32> to vector<32x48xf32>
    %326 = arith.subf %316, %325 : vector<32x48xf32>
    %327 = arith.mulf %326, %326 : vector<32x48xf32>
    %cst_103 = arith.constant dense<0.000000e+00> : vector<32xf32>
    %328 = vector.multi_reduction <add>, %327, %cst_103 [1] : vector<32x48xf32> to vector<32xf32>
    %329 = vector.shape_cast %328 : vector<32xf32> to vector<32x1xf32>
    %cst_104 = arith.constant 4.800000e+01 : f32
    %330 = vector.broadcast %cst_104 : f32 to vector<32x1xf32>
    %331 = arith.divf %329, %330 : vector<32x1xf32>
    %332 = vector.broadcast %324 : vector<32x1xf32> to vector<32x48xf32>
    %333 = arith.subf %316, %332 : vector<32x48xf32>
    %cst_105 = arith.constant 9.99999974E-6 : f32
    %334 = vector.broadcast %cst_105 : f32 to vector<32x1xf32>
    %335 = arith.addf %331, %334 : vector<32x1xf32>
    %336 = math.rsqrt %335 : vector<32x1xf32>
    %337 = vector.broadcast %336 : vector<32x1xf32> to vector<32x48xf32>
    %338 = arith.mulf %333, %337 : vector<32x48xf32>
    %339 = vector.broadcast %318 : vector<1x48xf32> to vector<32x48xf32>
    %340 = arith.mulf %338, %339 : vector<32x48xf32>
    %341 = vector.broadcast %320 : vector<1x48xf32> to vector<32x48xf32>
    %342 = arith.addf %340, %341 : vector<32x48xf32>
    %c0_106 = arith.constant 0 : index
    %c0_107 = arith.constant 0 : index
    %c0_108 = arith.constant 0 : index
    %343 = vector.load %arg8[%c0_106, %c0_107, %c0_108] : memref<2x48x48xbf16, #tpu.memory_space<vmem>>, vector<1x48x48xbf16>
    %344 = vector.shape_cast %343 : vector<1x48x48xbf16> to vector<48x48xbf16>
    %345 = arith.truncf %342 : vector<32x48xf32> to vector<32x48xbf16>
    %cst_109 = arith.constant dense<0.000000e+00> : vector<32x48xf32>
    %346 = tpu.matmul %345, %344, %cst_109 {dimension_numbers = #tpu.dot_dimension_numbers<[1], [0], [0], [1], [0, 0, 1, 1], [], []>} : vector<32x48xbf16>, vector<48x48xbf16>, vector<32x48xf32> -> vector<32x48xf32>
    %c0_110 = arith.constant 0 : index
    %c0_111 = arith.constant 0 : index
    %c0_112 = arith.constant 0 : index
    %347 = vector.load %arg9[%c0_110, %c0_111, %c0_112] : memref<2x1x48xf32, #tpu.memory_space<vmem>>, vector<1x1x48xf32>
    %348 = vector.shape_cast %347 : vector<1x1x48xf32> to vector<1x48xf32>
    %349 = vector.broadcast %348 : vector<1x48xf32> to vector<32x48xf32>
    %350 = arith.addf %346, %349 : vector<32x48xf32>
    %cst_113 = arith.constant 0.000000e+00 : f32
    %351 = vector.broadcast %cst_113 : f32 to vector<32x48xf32>
    %352 = arith.cmpf ogt, %350, %351 : vector<32x48xf32>
    %cst_114 = arith.constant 0.00999999977 : f32
    %353 = vector.broadcast %cst_114 : f32 to vector<32x48xf32>
    %354 = arith.mulf %353, %350 : vector<32x48xf32>
    %355 = arith.select %352, %350, %354 : vector<32x48xi1>, vector<32x48xf32>
    %c0_115 = arith.constant 0 : index
    %c0_116 = arith.constant 0 : index
    %c0_117 = arith.constant 0 : index
    %356 = vector.load %arg10[%c0_115, %c0_116, %c0_117] : memref<2x48x48xbf16, #tpu.memory_space<vmem>>, vector<1x48x48xbf16>
    %357 = vector.shape_cast %356 : vector<1x48x48xbf16> to vector<48x48xbf16>
    %358 = arith.truncf %355 : vector<32x48xf32> to vector<32x48xbf16>
    %cst_118 = arith.constant dense<0.000000e+00> : vector<32x48xf32>
    %359 = tpu.matmul %358, %357, %cst_118 {dimension_numbers = #tpu.dot_dimension_numbers<[1], [0], [0], [1], [0, 0, 1, 1], [], []>} : vector<32x48xbf16>, vector<48x48xbf16>, vector<32x48xf32> -> vector<32x48xf32>
    %360 = arith.addf %316, %359 : vector<32x48xf32>
    %c0_119 = arith.constant 0 : index
    %c0_120 = arith.constant 0 : index
    %c0_121 = arith.constant 0 : index
    %361 = vector.load %arg11[%c0_119, %c0_120, %c0_121] : memref<2x1x48xf32, #tpu.memory_space<vmem>>, vector<1x1x48xf32>
    %362 = vector.shape_cast %361 : vector<1x1x48xf32> to vector<1x48xf32>
    %363 = vector.broadcast %362 : vector<1x48xf32> to vector<32x48xf32>
    %364 = arith.addf %360, %363 : vector<32x48xf32>
    %c2 = arith.constant 2 : index
    %c0_122 = arith.constant 0 : index
    %c0_123 = arith.constant 0 : index
    %365 = vector.load %arg1[%c2, %c0_122, %c0_123] : memref<4x1x48xf32, #tpu.memory_space<vmem>>, vector<1x1x48xf32>
    %366 = vector.shape_cast %365 : vector<1x1x48xf32> to vector<1x48xf32>
    %c2_124 = arith.constant 2 : index
    %c0_125 = arith.constant 0 : index
    %c0_126 = arith.constant 0 : index
    %367 = vector.load %arg2[%c2_124, %c0_125, %c0_126] : memref<4x1x48xf32, #tpu.memory_space<vmem>>, vector<1x1x48xf32>
    %368 = vector.shape_cast %367 : vector<1x1x48xf32> to vector<1x48xf32>
    %cst_127 = arith.constant dense<0.000000e+00> : vector<32xf32>
    %369 = vector.multi_reduction <add>, %364, %cst_127 [1] : vector<32x48xf32> to vector<32xf32>
    %370 = vector.shape_cast %369 : vector<32xf32> to vector<32x1xf32>
    %cst_128 = arith.constant 4.800000e+01 : f32
    %371 = vector.broadcast %cst_128 : f32 to vector<32x1xf32>
    %372 = arith.divf %370, %371 : vector<32x1xf32>
    %373 = vector.broadcast %372 : vector<32x1xf32> to vector<32x48xf32>
    %374 = arith.subf %364, %373 : vector<32x48xf32>
    %375 = arith.mulf %374, %374 : vector<32x48xf32>
    %cst_129 = arith.constant dense<0.000000e+00> : vector<32xf32>
    %376 = vector.multi_reduction <add>, %375, %cst_129 [1] : vector<32x48xf32> to vector<32xf32>
    %377 = vector.shape_cast %376 : vector<32xf32> to vector<32x1xf32>
    %cst_130 = arith.constant 4.800000e+01 : f32
    %378 = vector.broadcast %cst_130 : f32 to vector<32x1xf32>
    %379 = arith.divf %377, %378 : vector<32x1xf32>
    %380 = vector.broadcast %372 : vector<32x1xf32> to vector<32x48xf32>
    %381 = arith.subf %364, %380 : vector<32x48xf32>
    %cst_131 = arith.constant 9.99999974E-6 : f32
    %382 = vector.broadcast %cst_131 : f32 to vector<32x1xf32>
    %383 = arith.addf %379, %382 : vector<32x1xf32>
    %384 = math.rsqrt %383 : vector<32x1xf32>
    %385 = vector.broadcast %384 : vector<32x1xf32> to vector<32x48xf32>
    %386 = arith.mulf %381, %385 : vector<32x48xf32>
    %387 = vector.broadcast %366 : vector<1x48xf32> to vector<32x48xf32>
    %388 = arith.mulf %386, %387 : vector<32x48xf32>
    %389 = vector.broadcast %368 : vector<1x48xf32> to vector<32x48xf32>
    %390 = arith.addf %388, %389 : vector<32x48xf32>
    %c2_132 = arith.constant 2 : index
    %c0_133 = arith.constant 0 : index
    %c0_134 = arith.constant 0 : index
    %391 = vector.load %arg3[%c2_132, %c0_133, %c0_134] : memref<4x48x144xbf16, #tpu.memory_space<vmem>>, vector<1x48x144xbf16>
    %392 = vector.shape_cast %391 : vector<1x48x144xbf16> to vector<48x144xbf16>
    %393 = arith.truncf %390 : vector<32x48xf32> to vector<32x48xbf16>
    %cst_135 = arith.constant dense<0.000000e+00> : vector<32x144xf32>
    %394 = tpu.matmul %393, %392, %cst_135 {dimension_numbers = #tpu.dot_dimension_numbers<[1], [0], [0], [1], [0, 0, 1, 1], [], []>} : vector<32x48xbf16>, vector<48x144xbf16>, vector<32x144xf32> -> vector<32x144xf32>
    %395 = vector.extract_strided_slice %394 {offsets = [0, 0], sizes = [16, 16], strides = [1, 1]} : vector<32x144xf32> to vector<16x16xf32>
    %396 = vector.extract_strided_slice %394 {offsets = [0, 48], sizes = [16, 16], strides = [1, 1]} : vector<32x144xf32> to vector<16x16xf32>
    %397 = vector.extract_strided_slice %394 {offsets = [0, 96], sizes = [16, 16], strides = [1, 1]} : vector<32x144xf32> to vector<16x16xf32>
    %398 = arith.truncf %395 : vector<16x16xf32> to vector<16x16xbf16>
    %399 = arith.truncf %396 : vector<16x16xf32> to vector<16x16xbf16>
    %cst_136 = arith.constant dense<0.000000e+00> : vector<16x16xf32>
    %400 = tpu.matmul %398, %399, %cst_136 {dimension_numbers = #tpu.dot_dimension_numbers<[1], [1], [0], [0], [0, 0, 1, 0], [], []>} : vector<16x16xbf16>, vector<16x16xbf16>, vector<16x16xf32> -> vector<16x16xf32>
    %cst_137 = arith.constant dense<0xFF800000> : vector<16xf32>
    %401 = vector.multi_reduction <maximumf>, %400, %cst_137 [1] : vector<16x16xf32> to vector<16xf32>
    %402 = vector.shape_cast %401 : vector<16xf32> to vector<16x1xf32>
    %403 = vector.broadcast %402 : vector<16x1xf32> to vector<16x16xf32>
    %404 = arith.subf %400, %403 : vector<16x16xf32>
    %405 = math.exp %404 : vector<16x16xf32>
    %cst_138 = arith.constant dense<0.000000e+00> : vector<16xf32>
    %406 = vector.multi_reduction <add>, %405, %cst_138 [1] : vector<16x16xf32> to vector<16xf32>
    %407 = vector.shape_cast %406 : vector<16xf32> to vector<16x1xf32>
    %408 = tpu.reciprocal %407 : vector<16x1xf32> -> vector<16x1xf32>
    %409 = vector.broadcast %408 : vector<16x1xf32> to vector<16x16xf32>
    %410 = arith.mulf %405, %409 : vector<16x16xf32>
    %411 = arith.truncf %410 : vector<16x16xf32> to vector<16x16xbf16>
    %412 = arith.truncf %397 : vector<16x16xf32> to vector<16x16xbf16>
    %cst_139 = arith.constant dense<0.000000e+00> : vector<16x16xf32>
    %413 = tpu.matmul %411, %412, %cst_139 {dimension_numbers = #tpu.dot_dimension_numbers<[1], [0], [0], [1], [0, 0, 1, 1], [], []>} : vector<16x16xbf16>, vector<16x16xbf16>, vector<16x16xf32> -> vector<16x16xf32>
    %414 = vector.extract_strided_slice %394 {offsets = [0, 16], sizes = [16, 16], strides = [1, 1]} : vector<32x144xf32> to vector<16x16xf32>
    %415 = vector.extract_strided_slice %394 {offsets = [0, 64], sizes = [16, 16], strides = [1, 1]} : vector<32x144xf32> to vector<16x16xf32>
    %416 = vector.extract_strided_slice %394 {offsets = [0, 112], sizes = [16, 16], strides = [1, 1]} : vector<32x144xf32> to vector<16x16xf32>
    %417 = arith.truncf %414 : vector<16x16xf32> to vector<16x16xbf16>
    %418 = arith.truncf %415 : vector<16x16xf32> to vector<16x16xbf16>
    %cst_140 = arith.constant dense<0.000000e+00> : vector<16x16xf32>
    %419 = tpu.matmul %417, %418, %cst_140 {dimension_numbers = #tpu.dot_dimension_numbers<[1], [1], [0], [0], [0, 0, 1, 0], [], []>} : vector<16x16xbf16>, vector<16x16xbf16>, vector<16x16xf32> -> vector<16x16xf32>
    %cst_141 = arith.constant dense<0xFF800000> : vector<16xf32>
    %420 = vector.multi_reduction <maximumf>, %419, %cst_141 [1] : vector<16x16xf32> to vector<16xf32>
    %421 = vector.shape_cast %420 : vector<16xf32> to vector<16x1xf32>
    %422 = vector.broadcast %421 : vector<16x1xf32> to vector<16x16xf32>
    %423 = arith.subf %419, %422 : vector<16x16xf32>
    %424 = math.exp %423 : vector<16x16xf32>
    %cst_142 = arith.constant dense<0.000000e+00> : vector<16xf32>
    %425 = vector.multi_reduction <add>, %424, %cst_142 [1] : vector<16x16xf32> to vector<16xf32>
    %426 = vector.shape_cast %425 : vector<16xf32> to vector<16x1xf32>
    %427 = tpu.reciprocal %426 : vector<16x1xf32> -> vector<16x1xf32>
    %428 = vector.broadcast %427 : vector<16x1xf32> to vector<16x16xf32>
    %429 = arith.mulf %424, %428 : vector<16x16xf32>
    %430 = arith.truncf %429 : vector<16x16xf32> to vector<16x16xbf16>
    %431 = arith.truncf %416 : vector<16x16xf32> to vector<16x16xbf16>
    %cst_143 = arith.constant dense<0.000000e+00> : vector<16x16xf32>
    %432 = tpu.matmul %430, %431, %cst_143 {dimension_numbers = #tpu.dot_dimension_numbers<[1], [0], [0], [1], [0, 0, 1, 1], [], []>} : vector<16x16xbf16>, vector<16x16xbf16>, vector<16x16xf32> -> vector<16x16xf32>
    %433 = vector.extract_strided_slice %394 {offsets = [0, 32], sizes = [16, 16], strides = [1, 1]} : vector<32x144xf32> to vector<16x16xf32>
    %434 = vector.extract_strided_slice %394 {offsets = [0, 80], sizes = [16, 16], strides = [1, 1]} : vector<32x144xf32> to vector<16x16xf32>
    %435 = vector.extract_strided_slice %394 {offsets = [0, 128], sizes = [16, 16], strides = [1, 1]} : vector<32x144xf32> to vector<16x16xf32>
    %436 = arith.truncf %433 : vector<16x16xf32> to vector<16x16xbf16>
    %437 = arith.truncf %434 : vector<16x16xf32> to vector<16x16xbf16>
    %cst_144 = arith.constant dense<0.000000e+00> : vector<16x16xf32>
    %438 = tpu.matmul %436, %437, %cst_144 {dimension_numbers = #tpu.dot_dimension_numbers<[1], [1], [0], [0], [0, 0, 1, 0], [], []>} : vector<16x16xbf16>, vector<16x16xbf16>, vector<16x16xf32> -> vector<16x16xf32>
    %cst_145 = arith.constant dense<0xFF800000> : vector<16xf32>
    %439 = vector.multi_reduction <maximumf>, %438, %cst_145 [1] : vector<16x16xf32> to vector<16xf32>
    %440 = vector.shape_cast %439 : vector<16xf32> to vector<16x1xf32>
    %441 = vector.broadcast %440 : vector<16x1xf32> to vector<16x16xf32>
    %442 = arith.subf %438, %441 : vector<16x16xf32>
    %443 = math.exp %442 : vector<16x16xf32>
    %cst_146 = arith.constant dense<0.000000e+00> : vector<16xf32>
    %444 = vector.multi_reduction <add>, %443, %cst_146 [1] : vector<16x16xf32> to vector<16xf32>
    %445 = vector.shape_cast %444 : vector<16xf32> to vector<16x1xf32>
    %446 = tpu.reciprocal %445 : vector<16x1xf32> -> vector<16x1xf32>
    %447 = vector.broadcast %446 : vector<16x1xf32> to vector<16x16xf32>
    %448 = arith.mulf %443, %447 : vector<16x16xf32>
    %449 = arith.truncf %448 : vector<16x16xf32> to vector<16x16xbf16>
    %450 = arith.truncf %435 : vector<16x16xf32> to vector<16x16xbf16>
    %cst_147 = arith.constant dense<0.000000e+00> : vector<16x16xf32>
    %451 = tpu.matmul %449, %450, %cst_147 {dimension_numbers = #tpu.dot_dimension_numbers<[1], [0], [0], [1], [0, 0, 1, 1], [], []>} : vector<16x16xbf16>, vector<16x16xbf16>, vector<16x16xf32> -> vector<16x16xf32>
    %452 = tpu.concatenate %413, %432, %451 in 1 : vector<16x16xf32>, vector<16x16xf32>, vector<16x16xf32> -> vector<16x48xf32>
    %453 = vector.extract_strided_slice %394 {offsets = [16, 0], sizes = [16, 16], strides = [1, 1]} : vector<32x144xf32> to vector<16x16xf32>
    %454 = vector.extract_strided_slice %394 {offsets = [16, 48], sizes = [16, 16], strides = [1, 1]} : vector<32x144xf32> to vector<16x16xf32>
    %455 = vector.extract_strided_slice %394 {offsets = [16, 96], sizes = [16, 16], strides = [1, 1]} : vector<32x144xf32> to vector<16x16xf32>
    %456 = arith.truncf %453 : vector<16x16xf32> to vector<16x16xbf16>
    %457 = arith.truncf %454 : vector<16x16xf32> to vector<16x16xbf16>
    %cst_148 = arith.constant dense<0.000000e+00> : vector<16x16xf32>
    %458 = tpu.matmul %456, %457, %cst_148 {dimension_numbers = #tpu.dot_dimension_numbers<[1], [1], [0], [0], [0, 0, 1, 0], [], []>} : vector<16x16xbf16>, vector<16x16xbf16>, vector<16x16xf32> -> vector<16x16xf32>
    %cst_149 = arith.constant dense<0xFF800000> : vector<16xf32>
    %459 = vector.multi_reduction <maximumf>, %458, %cst_149 [1] : vector<16x16xf32> to vector<16xf32>
    %460 = vector.shape_cast %459 : vector<16xf32> to vector<16x1xf32>
    %461 = vector.broadcast %460 : vector<16x1xf32> to vector<16x16xf32>
    %462 = arith.subf %458, %461 : vector<16x16xf32>
    %463 = math.exp %462 : vector<16x16xf32>
    %cst_150 = arith.constant dense<0.000000e+00> : vector<16xf32>
    %464 = vector.multi_reduction <add>, %463, %cst_150 [1] : vector<16x16xf32> to vector<16xf32>
    %465 = vector.shape_cast %464 : vector<16xf32> to vector<16x1xf32>
    %466 = tpu.reciprocal %465 : vector<16x1xf32> -> vector<16x1xf32>
    %467 = vector.broadcast %466 : vector<16x1xf32> to vector<16x16xf32>
    %468 = arith.mulf %463, %467 : vector<16x16xf32>
    %469 = arith.truncf %468 : vector<16x16xf32> to vector<16x16xbf16>
    %470 = arith.truncf %455 : vector<16x16xf32> to vector<16x16xbf16>
    %cst_151 = arith.constant dense<0.000000e+00> : vector<16x16xf32>
    %471 = tpu.matmul %469, %470, %cst_151 {dimension_numbers = #tpu.dot_dimension_numbers<[1], [0], [0], [1], [0, 0, 1, 1], [], []>} : vector<16x16xbf16>, vector<16x16xbf16>, vector<16x16xf32> -> vector<16x16xf32>
    %472 = vector.extract_strided_slice %394 {offsets = [16, 16], sizes = [16, 16], strides = [1, 1]} : vector<32x144xf32> to vector<16x16xf32>
    %473 = vector.extract_strided_slice %394 {offsets = [16, 64], sizes = [16, 16], strides = [1, 1]} : vector<32x144xf32> to vector<16x16xf32>
    %474 = vector.extract_strided_slice %394 {offsets = [16, 112], sizes = [16, 16], strides = [1, 1]} : vector<32x144xf32> to vector<16x16xf32>
    %475 = arith.truncf %472 : vector<16x16xf32> to vector<16x16xbf16>
    %476 = arith.truncf %473 : vector<16x16xf32> to vector<16x16xbf16>
    %cst_152 = arith.constant dense<0.000000e+00> : vector<16x16xf32>
    %477 = tpu.matmul %475, %476, %cst_152 {dimension_numbers = #tpu.dot_dimension_numbers<[1], [1], [0], [0], [0, 0, 1, 0], [], []>} : vector<16x16xbf16>, vector<16x16xbf16>, vector<16x16xf32> -> vector<16x16xf32>
    %cst_153 = arith.constant dense<0xFF800000> : vector<16xf32>
    %478 = vector.multi_reduction <maximumf>, %477, %cst_153 [1] : vector<16x16xf32> to vector<16xf32>
    %479 = vector.shape_cast %478 : vector<16xf32> to vector<16x1xf32>
    %480 = vector.broadcast %479 : vector<16x1xf32> to vector<16x16xf32>
    %481 = arith.subf %477, %480 : vector<16x16xf32>
    %482 = math.exp %481 : vector<16x16xf32>
    %cst_154 = arith.constant dense<0.000000e+00> : vector<16xf32>
    %483 = vector.multi_reduction <add>, %482, %cst_154 [1] : vector<16x16xf32> to vector<16xf32>
    %484 = vector.shape_cast %483 : vector<16xf32> to vector<16x1xf32>
    %485 = tpu.reciprocal %484 : vector<16x1xf32> -> vector<16x1xf32>
    %486 = vector.broadcast %485 : vector<16x1xf32> to vector<16x16xf32>
    %487 = arith.mulf %482, %486 : vector<16x16xf32>
    %488 = arith.truncf %487 : vector<16x16xf32> to vector<16x16xbf16>
    %489 = arith.truncf %474 : vector<16x16xf32> to vector<16x16xbf16>
    %cst_155 = arith.constant dense<0.000000e+00> : vector<16x16xf32>
    %490 = tpu.matmul %488, %489, %cst_155 {dimension_numbers = #tpu.dot_dimension_numbers<[1], [0], [0], [1], [0, 0, 1, 1], [], []>} : vector<16x16xbf16>, vector<16x16xbf16>, vector<16x16xf32> -> vector<16x16xf32>
    %491 = vector.extract_strided_slice %394 {offsets = [16, 32], sizes = [16, 16], strides = [1, 1]} : vector<32x144xf32> to vector<16x16xf32>
    %492 = vector.extract_strided_slice %394 {offsets = [16, 80], sizes = [16, 16], strides = [1, 1]} : vector<32x144xf32> to vector<16x16xf32>
    %493 = vector.extract_strided_slice %394 {offsets = [16, 128], sizes = [16, 16], strides = [1, 1]} : vector<32x144xf32> to vector<16x16xf32>
    %494 = arith.truncf %491 : vector<16x16xf32> to vector<16x16xbf16>
    %495 = arith.truncf %492 : vector<16x16xf32> to vector<16x16xbf16>
    %cst_156 = arith.constant dense<0.000000e+00> : vector<16x16xf32>
    %496 = tpu.matmul %494, %495, %cst_156 {dimension_numbers = #tpu.dot_dimension_numbers<[1], [1], [0], [0], [0, 0, 1, 0], [], []>} : vector<16x16xbf16>, vector<16x16xbf16>, vector<16x16xf32> -> vector<16x16xf32>
    %cst_157 = arith.constant dense<0xFF800000> : vector<16xf32>
    %497 = vector.multi_reduction <maximumf>, %496, %cst_157 [1] : vector<16x16xf32> to vector<16xf32>
    %498 = vector.shape_cast %497 : vector<16xf32> to vector<16x1xf32>
    %499 = vector.broadcast %498 : vector<16x1xf32> to vector<16x16xf32>
    %500 = arith.subf %496, %499 : vector<16x16xf32>
    %501 = math.exp %500 : vector<16x16xf32>
    %cst_158 = arith.constant dense<0.000000e+00> : vector<16xf32>
    %502 = vector.multi_reduction <add>, %501, %cst_158 [1] : vector<16x16xf32> to vector<16xf32>
    %503 = vector.shape_cast %502 : vector<16xf32> to vector<16x1xf32>
    %504 = tpu.reciprocal %503 : vector<16x1xf32> -> vector<16x1xf32>
    %505 = vector.broadcast %504 : vector<16x1xf32> to vector<16x16xf32>
    %506 = arith.mulf %501, %505 : vector<16x16xf32>
    %507 = arith.truncf %506 : vector<16x16xf32> to vector<16x16xbf16>
    %508 = arith.truncf %493 : vector<16x16xf32> to vector<16x16xbf16>
    %cst_159 = arith.constant dense<0.000000e+00> : vector<16x16xf32>
    %509 = tpu.matmul %507, %508, %cst_159 {dimension_numbers = #tpu.dot_dimension_numbers<[1], [0], [0], [1], [0, 0, 1, 1], [], []>} : vector<16x16xbf16>, vector<16x16xbf16>, vector<16x16xf32> -> vector<16x16xf32>
    %510 = tpu.concatenate %471, %490, %509 in 1 : vector<16x16xf32>, vector<16x16xf32>, vector<16x16xf32> -> vector<16x48xf32>
    %511 = tpu.concatenate %452, %510 in 0 : vector<16x48xf32>, vector<16x48xf32> -> vector<32x48xf32>
    %c2_160 = arith.constant 2 : index
    %c0_161 = arith.constant 0 : index
    %c0_162 = arith.constant 0 : index
    %512 = vector.load %arg4[%c2_160, %c0_161, %c0_162] : memref<4x48x48xbf16, #tpu.memory_space<vmem>>, vector<1x48x48xbf16>
    %513 = vector.shape_cast %512 : vector<1x48x48xbf16> to vector<48x48xbf16>
    %514 = arith.truncf %511 : vector<32x48xf32> to vector<32x48xbf16>
    %cst_163 = arith.constant dense<0.000000e+00> : vector<32x48xf32>
    %515 = tpu.matmul %514, %513, %cst_163 {dimension_numbers = #tpu.dot_dimension_numbers<[1], [0], [0], [1], [0, 0, 1, 1], [], []>} : vector<32x48xbf16>, vector<48x48xbf16>, vector<32x48xf32> -> vector<32x48xf32>
    %516 = arith.addf %364, %515 : vector<32x48xf32>
    %c2_164 = arith.constant 2 : index
    %c0_165 = arith.constant 0 : index
    %c0_166 = arith.constant 0 : index
    %517 = vector.load %arg5[%c2_164, %c0_165, %c0_166] : memref<4x1x48xf32, #tpu.memory_space<vmem>>, vector<1x1x48xf32>
    %518 = vector.shape_cast %517 : vector<1x1x48xf32> to vector<1x48xf32>
    %519 = vector.broadcast %518 : vector<1x48xf32> to vector<32x48xf32>
    %520 = arith.addf %516, %519 : vector<32x48xf32>
    %c3 = arith.constant 3 : index
    %c0_167 = arith.constant 0 : index
    %c0_168 = arith.constant 0 : index
    %521 = vector.load %arg1[%c3, %c0_167, %c0_168] : memref<4x1x48xf32, #tpu.memory_space<vmem>>, vector<1x1x48xf32>
    %522 = vector.shape_cast %521 : vector<1x1x48xf32> to vector<1x48xf32>
    %c3_169 = arith.constant 3 : index
    %c0_170 = arith.constant 0 : index
    %c0_171 = arith.constant 0 : index
    %523 = vector.load %arg2[%c3_169, %c0_170, %c0_171] : memref<4x1x48xf32, #tpu.memory_space<vmem>>, vector<1x1x48xf32>
    %524 = vector.shape_cast %523 : vector<1x1x48xf32> to vector<1x48xf32>
    %cst_172 = arith.constant dense<0.000000e+00> : vector<32xf32>
    %525 = vector.multi_reduction <add>, %520, %cst_172 [1] : vector<32x48xf32> to vector<32xf32>
    %526 = vector.shape_cast %525 : vector<32xf32> to vector<32x1xf32>
    %cst_173 = arith.constant 4.800000e+01 : f32
    %527 = vector.broadcast %cst_173 : f32 to vector<32x1xf32>
    %528 = arith.divf %526, %527 : vector<32x1xf32>
    %529 = vector.broadcast %528 : vector<32x1xf32> to vector<32x48xf32>
    %530 = arith.subf %520, %529 : vector<32x48xf32>
    %531 = arith.mulf %530, %530 : vector<32x48xf32>
    %cst_174 = arith.constant dense<0.000000e+00> : vector<32xf32>
    %532 = vector.multi_reduction <add>, %531, %cst_174 [1] : vector<32x48xf32> to vector<32xf32>
    %533 = vector.shape_cast %532 : vector<32xf32> to vector<32x1xf32>
    %cst_175 = arith.constant 4.800000e+01 : f32
    %534 = vector.broadcast %cst_175 : f32 to vector<32x1xf32>
    %535 = arith.divf %533, %534 : vector<32x1xf32>
    %536 = vector.broadcast %528 : vector<32x1xf32> to vector<32x48xf32>
    %537 = arith.subf %520, %536 : vector<32x48xf32>
    %cst_176 = arith.constant 9.99999974E-6 : f32
    %538 = vector.broadcast %cst_176 : f32 to vector<32x1xf32>
    %539 = arith.addf %535, %538 : vector<32x1xf32>
    %540 = math.rsqrt %539 : vector<32x1xf32>
    %541 = vector.broadcast %540 : vector<32x1xf32> to vector<32x48xf32>
    %542 = arith.mulf %537, %541 : vector<32x48xf32>
    %543 = vector.broadcast %522 : vector<1x48xf32> to vector<32x48xf32>
    %544 = arith.mulf %542, %543 : vector<32x48xf32>
    %545 = vector.broadcast %524 : vector<1x48xf32> to vector<32x48xf32>
    %546 = arith.addf %544, %545 : vector<32x48xf32>
    %c3_177 = arith.constant 3 : index
    %c0_178 = arith.constant 0 : index
    %c0_179 = arith.constant 0 : index
    %547 = vector.load %arg3[%c3_177, %c0_178, %c0_179] : memref<4x48x144xbf16, #tpu.memory_space<vmem>>, vector<1x48x144xbf16>
    %548 = vector.shape_cast %547 : vector<1x48x144xbf16> to vector<48x144xbf16>
    %549 = arith.truncf %546 : vector<32x48xf32> to vector<32x48xbf16>
    %cst_180 = arith.constant dense<0.000000e+00> : vector<32x144xf32>
    %550 = tpu.matmul %549, %548, %cst_180 {dimension_numbers = #tpu.dot_dimension_numbers<[1], [0], [0], [1], [0, 0, 1, 1], [], []>} : vector<32x48xbf16>, vector<48x144xbf16>, vector<32x144xf32> -> vector<32x144xf32>
    %551 = vector.extract_strided_slice %550 {offsets = [0, 0], sizes = [16, 16], strides = [1, 1]} : vector<32x144xf32> to vector<16x16xf32>
    %552 = vector.extract_strided_slice %550 {offsets = [0, 48], sizes = [16, 16], strides = [1, 1]} : vector<32x144xf32> to vector<16x16xf32>
    %553 = vector.extract_strided_slice %550 {offsets = [0, 96], sizes = [16, 16], strides = [1, 1]} : vector<32x144xf32> to vector<16x16xf32>
    %554 = arith.truncf %551 : vector<16x16xf32> to vector<16x16xbf16>
    %555 = arith.truncf %552 : vector<16x16xf32> to vector<16x16xbf16>
    %cst_181 = arith.constant dense<0.000000e+00> : vector<16x16xf32>
    %556 = tpu.matmul %554, %555, %cst_181 {dimension_numbers = #tpu.dot_dimension_numbers<[1], [1], [0], [0], [0, 0, 1, 0], [], []>} : vector<16x16xbf16>, vector<16x16xbf16>, vector<16x16xf32> -> vector<16x16xf32>
    %cst_182 = arith.constant dense<0xFF800000> : vector<16xf32>
    %557 = vector.multi_reduction <maximumf>, %556, %cst_182 [1] : vector<16x16xf32> to vector<16xf32>
    %558 = vector.shape_cast %557 : vector<16xf32> to vector<16x1xf32>
    %559 = vector.broadcast %558 : vector<16x1xf32> to vector<16x16xf32>
    %560 = arith.subf %556, %559 : vector<16x16xf32>
    %561 = math.exp %560 : vector<16x16xf32>
    %cst_183 = arith.constant dense<0.000000e+00> : vector<16xf32>
    %562 = vector.multi_reduction <add>, %561, %cst_183 [1] : vector<16x16xf32> to vector<16xf32>
    %563 = vector.shape_cast %562 : vector<16xf32> to vector<16x1xf32>
    %564 = tpu.reciprocal %563 : vector<16x1xf32> -> vector<16x1xf32>
    %565 = vector.broadcast %564 : vector<16x1xf32> to vector<16x16xf32>
    %566 = arith.mulf %561, %565 : vector<16x16xf32>
    %567 = arith.truncf %566 : vector<16x16xf32> to vector<16x16xbf16>
    %568 = arith.truncf %553 : vector<16x16xf32> to vector<16x16xbf16>
    %cst_184 = arith.constant dense<0.000000e+00> : vector<16x16xf32>
    %569 = tpu.matmul %567, %568, %cst_184 {dimension_numbers = #tpu.dot_dimension_numbers<[1], [0], [0], [1], [0, 0, 1, 1], [], []>} : vector<16x16xbf16>, vector<16x16xbf16>, vector<16x16xf32> -> vector<16x16xf32>
    %570 = vector.extract_strided_slice %550 {offsets = [0, 16], sizes = [16, 16], strides = [1, 1]} : vector<32x144xf32> to vector<16x16xf32>
    %571 = vector.extract_strided_slice %550 {offsets = [0, 64], sizes = [16, 16], strides = [1, 1]} : vector<32x144xf32> to vector<16x16xf32>
    %572 = vector.extract_strided_slice %550 {offsets = [0, 112], sizes = [16, 16], strides = [1, 1]} : vector<32x144xf32> to vector<16x16xf32>
    %573 = arith.truncf %570 : vector<16x16xf32> to vector<16x16xbf16>
    %574 = arith.truncf %571 : vector<16x16xf32> to vector<16x16xbf16>
    %cst_185 = arith.constant dense<0.000000e+00> : vector<16x16xf32>
    %575 = tpu.matmul %573, %574, %cst_185 {dimension_numbers = #tpu.dot_dimension_numbers<[1], [1], [0], [0], [0, 0, 1, 0], [], []>} : vector<16x16xbf16>, vector<16x16xbf16>, vector<16x16xf32> -> vector<16x16xf32>
    %cst_186 = arith.constant dense<0xFF800000> : vector<16xf32>
    %576 = vector.multi_reduction <maximumf>, %575, %cst_186 [1] : vector<16x16xf32> to vector<16xf32>
    %577 = vector.shape_cast %576 : vector<16xf32> to vector<16x1xf32>
    %578 = vector.broadcast %577 : vector<16x1xf32> to vector<16x16xf32>
    %579 = arith.subf %575, %578 : vector<16x16xf32>
    %580 = math.exp %579 : vector<16x16xf32>
    %cst_187 = arith.constant dense<0.000000e+00> : vector<16xf32>
    %581 = vector.multi_reduction <add>, %580, %cst_187 [1] : vector<16x16xf32> to vector<16xf32>
    %582 = vector.shape_cast %581 : vector<16xf32> to vector<16x1xf32>
    %583 = tpu.reciprocal %582 : vector<16x1xf32> -> vector<16x1xf32>
    %584 = vector.broadcast %583 : vector<16x1xf32> to vector<16x16xf32>
    %585 = arith.mulf %580, %584 : vector<16x16xf32>
    %586 = arith.truncf %585 : vector<16x16xf32> to vector<16x16xbf16>
    %587 = arith.truncf %572 : vector<16x16xf32> to vector<16x16xbf16>
    %cst_188 = arith.constant dense<0.000000e+00> : vector<16x16xf32>
    %588 = tpu.matmul %586, %587, %cst_188 {dimension_numbers = #tpu.dot_dimension_numbers<[1], [0], [0], [1], [0, 0, 1, 1], [], []>} : vector<16x16xbf16>, vector<16x16xbf16>, vector<16x16xf32> -> vector<16x16xf32>
    %589 = vector.extract_strided_slice %550 {offsets = [0, 32], sizes = [16, 16], strides = [1, 1]} : vector<32x144xf32> to vector<16x16xf32>
    %590 = vector.extract_strided_slice %550 {offsets = [0, 80], sizes = [16, 16], strides = [1, 1]} : vector<32x144xf32> to vector<16x16xf32>
    %591 = vector.extract_strided_slice %550 {offsets = [0, 128], sizes = [16, 16], strides = [1, 1]} : vector<32x144xf32> to vector<16x16xf32>
    %592 = arith.truncf %589 : vector<16x16xf32> to vector<16x16xbf16>
    %593 = arith.truncf %590 : vector<16x16xf32> to vector<16x16xbf16>
    %cst_189 = arith.constant dense<0.000000e+00> : vector<16x16xf32>
    %594 = tpu.matmul %592, %593, %cst_189 {dimension_numbers = #tpu.dot_dimension_numbers<[1], [1], [0], [0], [0, 0, 1, 0], [], []>} : vector<16x16xbf16>, vector<16x16xbf16>, vector<16x16xf32> -> vector<16x16xf32>
    %cst_190 = arith.constant dense<0xFF800000> : vector<16xf32>
    %595 = vector.multi_reduction <maximumf>, %594, %cst_190 [1] : vector<16x16xf32> to vector<16xf32>
    %596 = vector.shape_cast %595 : vector<16xf32> to vector<16x1xf32>
    %597 = vector.broadcast %596 : vector<16x1xf32> to vector<16x16xf32>
    %598 = arith.subf %594, %597 : vector<16x16xf32>
    %599 = math.exp %598 : vector<16x16xf32>
    %cst_191 = arith.constant dense<0.000000e+00> : vector<16xf32>
    %600 = vector.multi_reduction <add>, %599, %cst_191 [1] : vector<16x16xf32> to vector<16xf32>
    %601 = vector.shape_cast %600 : vector<16xf32> to vector<16x1xf32>
    %602 = tpu.reciprocal %601 : vector<16x1xf32> -> vector<16x1xf32>
    %603 = vector.broadcast %602 : vector<16x1xf32> to vector<16x16xf32>
    %604 = arith.mulf %599, %603 : vector<16x16xf32>
    %605 = arith.truncf %604 : vector<16x16xf32> to vector<16x16xbf16>
    %606 = arith.truncf %591 : vector<16x16xf32> to vector<16x16xbf16>
    %cst_192 = arith.constant dense<0.000000e+00> : vector<16x16xf32>
    %607 = tpu.matmul %605, %606, %cst_192 {dimension_numbers = #tpu.dot_dimension_numbers<[1], [0], [0], [1], [0, 0, 1, 1], [], []>} : vector<16x16xbf16>, vector<16x16xbf16>, vector<16x16xf32> -> vector<16x16xf32>
    %608 = tpu.concatenate %569, %588, %607 in 1 : vector<16x16xf32>, vector<16x16xf32>, vector<16x16xf32> -> vector<16x48xf32>
    %609 = vector.extract_strided_slice %550 {offsets = [16, 0], sizes = [16, 16], strides = [1, 1]} : vector<32x144xf32> to vector<16x16xf32>
    %610 = vector.extract_strided_slice %550 {offsets = [16, 48], sizes = [16, 16], strides = [1, 1]} : vector<32x144xf32> to vector<16x16xf32>
    %611 = vector.extract_strided_slice %550 {offsets = [16, 96], sizes = [16, 16], strides = [1, 1]} : vector<32x144xf32> to vector<16x16xf32>
    %612 = arith.truncf %609 : vector<16x16xf32> to vector<16x16xbf16>
    %613 = arith.truncf %610 : vector<16x16xf32> to vector<16x16xbf16>
    %cst_193 = arith.constant dense<0.000000e+00> : vector<16x16xf32>
    %614 = tpu.matmul %612, %613, %cst_193 {dimension_numbers = #tpu.dot_dimension_numbers<[1], [1], [0], [0], [0, 0, 1, 0], [], []>} : vector<16x16xbf16>, vector<16x16xbf16>, vector<16x16xf32> -> vector<16x16xf32>
    %cst_194 = arith.constant dense<0xFF800000> : vector<16xf32>
    %615 = vector.multi_reduction <maximumf>, %614, %cst_194 [1] : vector<16x16xf32> to vector<16xf32>
    %616 = vector.shape_cast %615 : vector<16xf32> to vector<16x1xf32>
    %617 = vector.broadcast %616 : vector<16x1xf32> to vector<16x16xf32>
    %618 = arith.subf %614, %617 : vector<16x16xf32>
    %619 = math.exp %618 : vector<16x16xf32>
    %cst_195 = arith.constant dense<0.000000e+00> : vector<16xf32>
    %620 = vector.multi_reduction <add>, %619, %cst_195 [1] : vector<16x16xf32> to vector<16xf32>
    %621 = vector.shape_cast %620 : vector<16xf32> to vector<16x1xf32>
    %622 = tpu.reciprocal %621 : vector<16x1xf32> -> vector<16x1xf32>
    %623 = vector.broadcast %622 : vector<16x1xf32> to vector<16x16xf32>
    %624 = arith.mulf %619, %623 : vector<16x16xf32>
    %625 = arith.truncf %624 : vector<16x16xf32> to vector<16x16xbf16>
    %626 = arith.truncf %611 : vector<16x16xf32> to vector<16x16xbf16>
    %cst_196 = arith.constant dense<0.000000e+00> : vector<16x16xf32>
    %627 = tpu.matmul %625, %626, %cst_196 {dimension_numbers = #tpu.dot_dimension_numbers<[1], [0], [0], [1], [0, 0, 1, 1], [], []>} : vector<16x16xbf16>, vector<16x16xbf16>, vector<16x16xf32> -> vector<16x16xf32>
    %628 = vector.extract_strided_slice %550 {offsets = [16, 16], sizes = [16, 16], strides = [1, 1]} : vector<32x144xf32> to vector<16x16xf32>
    %629 = vector.extract_strided_slice %550 {offsets = [16, 64], sizes = [16, 16], strides = [1, 1]} : vector<32x144xf32> to vector<16x16xf32>
    %630 = vector.extract_strided_slice %550 {offsets = [16, 112], sizes = [16, 16], strides = [1, 1]} : vector<32x144xf32> to vector<16x16xf32>
    %631 = arith.truncf %628 : vector<16x16xf32> to vector<16x16xbf16>
    %632 = arith.truncf %629 : vector<16x16xf32> to vector<16x16xbf16>
    %cst_197 = arith.constant dense<0.000000e+00> : vector<16x16xf32>
    %633 = tpu.matmul %631, %632, %cst_197 {dimension_numbers = #tpu.dot_dimension_numbers<[1], [1], [0], [0], [0, 0, 1, 0], [], []>} : vector<16x16xbf16>, vector<16x16xbf16>, vector<16x16xf32> -> vector<16x16xf32>
    %cst_198 = arith.constant dense<0xFF800000> : vector<16xf32>
    %634 = vector.multi_reduction <maximumf>, %633, %cst_198 [1] : vector<16x16xf32> to vector<16xf32>
    %635 = vector.shape_cast %634 : vector<16xf32> to vector<16x1xf32>
    %636 = vector.broadcast %635 : vector<16x1xf32> to vector<16x16xf32>
    %637 = arith.subf %633, %636 : vector<16x16xf32>
    %638 = math.exp %637 : vector<16x16xf32>
    %cst_199 = arith.constant dense<0.000000e+00> : vector<16xf32>
    %639 = vector.multi_reduction <add>, %638, %cst_199 [1] : vector<16x16xf32> to vector<16xf32>
    %640 = vector.shape_cast %639 : vector<16xf32> to vector<16x1xf32>
    %641 = tpu.reciprocal %640 : vector<16x1xf32> -> vector<16x1xf32>
    %642 = vector.broadcast %641 : vector<16x1xf32> to vector<16x16xf32>
    %643 = arith.mulf %638, %642 : vector<16x16xf32>
    %644 = arith.truncf %643 : vector<16x16xf32> to vector<16x16xbf16>
    %645 = arith.truncf %630 : vector<16x16xf32> to vector<16x16xbf16>
    %cst_200 = arith.constant dense<0.000000e+00> : vector<16x16xf32>
    %646 = tpu.matmul %644, %645, %cst_200 {dimension_numbers = #tpu.dot_dimension_numbers<[1], [0], [0], [1], [0, 0, 1, 1], [], []>} : vector<16x16xbf16>, vector<16x16xbf16>, vector<16x16xf32> -> vector<16x16xf32>
    %647 = vector.extract_strided_slice %550 {offsets = [16, 32], sizes = [16, 16], strides = [1, 1]} : vector<32x144xf32> to vector<16x16xf32>
    %648 = vector.extract_strided_slice %550 {offsets = [16, 80], sizes = [16, 16], strides = [1, 1]} : vector<32x144xf32> to vector<16x16xf32>
    %649 = vector.extract_strided_slice %550 {offsets = [16, 128], sizes = [16, 16], strides = [1, 1]} : vector<32x144xf32> to vector<16x16xf32>
    %650 = arith.truncf %647 : vector<16x16xf32> to vector<16x16xbf16>
    %651 = arith.truncf %648 : vector<16x16xf32> to vector<16x16xbf16>
    %cst_201 = arith.constant dense<0.000000e+00> : vector<16x16xf32>
    %652 = tpu.matmul %650, %651, %cst_201 {dimension_numbers = #tpu.dot_dimension_numbers<[1], [1], [0], [0], [0, 0, 1, 0], [], []>} : vector<16x16xbf16>, vector<16x16xbf16>, vector<16x16xf32> -> vector<16x16xf32>
    %cst_202 = arith.constant dense<0xFF800000> : vector<16xf32>
    %653 = vector.multi_reduction <maximumf>, %652, %cst_202 [1] : vector<16x16xf32> to vector<16xf32>
    %654 = vector.shape_cast %653 : vector<16xf32> to vector<16x1xf32>
    %655 = vector.broadcast %654 : vector<16x1xf32> to vector<16x16xf32>
    %656 = arith.subf %652, %655 : vector<16x16xf32>
    %657 = math.exp %656 : vector<16x16xf32>
    %cst_203 = arith.constant dense<0.000000e+00> : vector<16xf32>
    %658 = vector.multi_reduction <add>, %657, %cst_203 [1] : vector<16x16xf32> to vector<16xf32>
    %659 = vector.shape_cast %658 : vector<16xf32> to vector<16x1xf32>
    %660 = tpu.reciprocal %659 : vector<16x1xf32> -> vector<16x1xf32>
    %661 = vector.broadcast %660 : vector<16x1xf32> to vector<16x16xf32>
    %662 = arith.mulf %657, %661 : vector<16x16xf32>
    %663 = arith.truncf %662 : vector<16x16xf32> to vector<16x16xbf16>
    %664 = arith.truncf %649 : vector<16x16xf32> to vector<16x16xbf16>
    %cst_204 = arith.constant dense<0.000000e+00> : vector<16x16xf32>
    %665 = tpu.matmul %663, %664, %cst_204 {dimension_numbers = #tpu.dot_dimension_numbers<[1], [0], [0], [1], [0, 0, 1, 1], [], []>} : vector<16x16xbf16>, vector<16x16xbf16>, vector<16x16xf32> -> vector<16x16xf32>
    %666 = tpu.concatenate %627, %646, %665 in 1 : vector<16x16xf32>, vector<16x16xf32>, vector<16x16xf32> -> vector<16x48xf32>
    %667 = tpu.concatenate %608, %666 in 0 : vector<16x48xf32>, vector<16x48xf32> -> vector<32x48xf32>
    %c3_205 = arith.constant 3 : index
    %c0_206 = arith.constant 0 : index
    %c0_207 = arith.constant 0 : index
    %668 = vector.load %arg4[%c3_205, %c0_206, %c0_207] : memref<4x48x48xbf16, #tpu.memory_space<vmem>>, vector<1x48x48xbf16>
    %669 = vector.shape_cast %668 : vector<1x48x48xbf16> to vector<48x48xbf16>
    %670 = arith.truncf %667 : vector<32x48xf32> to vector<32x48xbf16>
    %cst_208 = arith.constant dense<0.000000e+00> : vector<32x48xf32>
    %671 = tpu.matmul %670, %669, %cst_208 {dimension_numbers = #tpu.dot_dimension_numbers<[1], [0], [0], [1], [0, 0, 1, 1], [], []>} : vector<32x48xbf16>, vector<48x48xbf16>, vector<32x48xf32> -> vector<32x48xf32>
    %672 = arith.addf %520, %671 : vector<32x48xf32>
    %c3_209 = arith.constant 3 : index
    %c0_210 = arith.constant 0 : index
    %c0_211 = arith.constant 0 : index
    %673 = vector.load %arg5[%c3_209, %c0_210, %c0_211] : memref<4x1x48xf32, #tpu.memory_space<vmem>>, vector<1x1x48xf32>
    %674 = vector.shape_cast %673 : vector<1x1x48xf32> to vector<1x48xf32>
    %675 = vector.broadcast %674 : vector<1x48xf32> to vector<32x48xf32>
    %676 = arith.addf %672, %675 : vector<32x48xf32>
    %c1_212 = arith.constant 1 : index
    %c0_213 = arith.constant 0 : index
    %c0_214 = arith.constant 0 : index
    %677 = vector.load %arg6[%c1_212, %c0_213, %c0_214] : memref<2x1x48xf32, #tpu.memory_space<vmem>>, vector<1x1x48xf32>
    %678 = vector.shape_cast %677 : vector<1x1x48xf32> to vector<1x48xf32>
    %c1_215 = arith.constant 1 : index
    %c0_216 = arith.constant 0 : index
    %c0_217 = arith.constant 0 : index
    %679 = vector.load %arg7[%c1_215, %c0_216, %c0_217] : memref<2x1x48xf32, #tpu.memory_space<vmem>>, vector<1x1x48xf32>
    %680 = vector.shape_cast %679 : vector<1x1x48xf32> to vector<1x48xf32>
    %cst_218 = arith.constant dense<0.000000e+00> : vector<32xf32>
    %681 = vector.multi_reduction <add>, %676, %cst_218 [1] : vector<32x48xf32> to vector<32xf32>
    %682 = vector.shape_cast %681 : vector<32xf32> to vector<32x1xf32>
    %cst_219 = arith.constant 4.800000e+01 : f32
    %683 = vector.broadcast %cst_219 : f32 to vector<32x1xf32>
    %684 = arith.divf %682, %683 : vector<32x1xf32>
    %685 = vector.broadcast %684 : vector<32x1xf32> to vector<32x48xf32>
    %686 = arith.subf %676, %685 : vector<32x48xf32>
    %687 = arith.mulf %686, %686 : vector<32x48xf32>
    %cst_220 = arith.constant dense<0.000000e+00> : vector<32xf32>
    %688 = vector.multi_reduction <add>, %687, %cst_220 [1] : vector<32x48xf32> to vector<32xf32>
    %689 = vector.shape_cast %688 : vector<32xf32> to vector<32x1xf32>
    %cst_221 = arith.constant 4.800000e+01 : f32
    %690 = vector.broadcast %cst_221 : f32 to vector<32x1xf32>
    %691 = arith.divf %689, %690 : vector<32x1xf32>
    %692 = vector.broadcast %684 : vector<32x1xf32> to vector<32x48xf32>
    %693 = arith.subf %676, %692 : vector<32x48xf32>
    %cst_222 = arith.constant 9.99999974E-6 : f32
    %694 = vector.broadcast %cst_222 : f32 to vector<32x1xf32>
    %695 = arith.addf %691, %694 : vector<32x1xf32>
    %696 = math.rsqrt %695 : vector<32x1xf32>
    %697 = vector.broadcast %696 : vector<32x1xf32> to vector<32x48xf32>
    %698 = arith.mulf %693, %697 : vector<32x48xf32>
    %699 = vector.broadcast %678 : vector<1x48xf32> to vector<32x48xf32>
    %700 = arith.mulf %698, %699 : vector<32x48xf32>
    %701 = vector.broadcast %680 : vector<1x48xf32> to vector<32x48xf32>
    %702 = arith.addf %700, %701 : vector<32x48xf32>
    %c1_223 = arith.constant 1 : index
    %c0_224 = arith.constant 0 : index
    %c0_225 = arith.constant 0 : index
    %703 = vector.load %arg8[%c1_223, %c0_224, %c0_225] : memref<2x48x48xbf16, #tpu.memory_space<vmem>>, vector<1x48x48xbf16>
    %704 = vector.shape_cast %703 : vector<1x48x48xbf16> to vector<48x48xbf16>
    %705 = arith.truncf %702 : vector<32x48xf32> to vector<32x48xbf16>
    %cst_226 = arith.constant dense<0.000000e+00> : vector<32x48xf32>
    %706 = tpu.matmul %705, %704, %cst_226 {dimension_numbers = #tpu.dot_dimension_numbers<[1], [0], [0], [1], [0, 0, 1, 1], [], []>} : vector<32x48xbf16>, vector<48x48xbf16>, vector<32x48xf32> -> vector<32x48xf32>
    %c1_227 = arith.constant 1 : index
    %c0_228 = arith.constant 0 : index
    %c0_229 = arith.constant 0 : index
    %707 = vector.load %arg9[%c1_227, %c0_228, %c0_229] : memref<2x1x48xf32, #tpu.memory_space<vmem>>, vector<1x1x48xf32>
    %708 = vector.shape_cast %707 : vector<1x1x48xf32> to vector<1x48xf32>
    %709 = vector.broadcast %708 : vector<1x48xf32> to vector<32x48xf32>
    %710 = arith.addf %706, %709 : vector<32x48xf32>
    %cst_230 = arith.constant 0.000000e+00 : f32
    %711 = vector.broadcast %cst_230 : f32 to vector<32x48xf32>
    %712 = arith.cmpf ogt, %710, %711 : vector<32x48xf32>
    %cst_231 = arith.constant 0.00999999977 : f32
    %713 = vector.broadcast %cst_231 : f32 to vector<32x48xf32>
    %714 = arith.mulf %713, %710 : vector<32x48xf32>
    %715 = arith.select %712, %710, %714 : vector<32x48xi1>, vector<32x48xf32>
    %c1_232 = arith.constant 1 : index
    %c0_233 = arith.constant 0 : index
    %c0_234 = arith.constant 0 : index
    %716 = vector.load %arg10[%c1_232, %c0_233, %c0_234] : memref<2x48x48xbf16, #tpu.memory_space<vmem>>, vector<1x48x48xbf16>
    %717 = vector.shape_cast %716 : vector<1x48x48xbf16> to vector<48x48xbf16>
    %718 = arith.truncf %715 : vector<32x48xf32> to vector<32x48xbf16>
    %cst_235 = arith.constant dense<0.000000e+00> : vector<32x48xf32>
    %719 = tpu.matmul %718, %717, %cst_235 {dimension_numbers = #tpu.dot_dimension_numbers<[1], [0], [0], [1], [0, 0, 1, 1], [], []>} : vector<32x48xbf16>, vector<48x48xbf16>, vector<32x48xf32> -> vector<32x48xf32>
    %720 = arith.addf %676, %719 : vector<32x48xf32>
    %c1_236 = arith.constant 1 : index
    %c0_237 = arith.constant 0 : index
    %c0_238 = arith.constant 0 : index
    %721 = vector.load %arg11[%c1_236, %c0_237, %c0_238] : memref<2x1x48xf32, #tpu.memory_space<vmem>>, vector<1x1x48xf32>
    %722 = vector.shape_cast %721 : vector<1x1x48xf32> to vector<1x48xf32>
    %723 = vector.broadcast %722 : vector<1x48xf32> to vector<32x48xf32>
    %724 = arith.addf %720, %723 : vector<32x48xf32>
    %725 = vector.extract_strided_slice %724 {offsets = [0, 0], sizes = [16, 48], strides = [1, 1]} : vector<32x48xf32> to vector<16x48xf32>
    %c0_239 = arith.constant 0 : index
    %c0_240 = arith.constant 0 : index
    %c0_241 = arith.constant 0 : index
    %726 = vector.load %arg12[%c0_239, %c0_240, %c0_241] : memref<2x16x48xf32, #tpu.memory_space<vmem>>, vector<1x16x48xf32>
    %727 = vector.shape_cast %726 : vector<1x16x48xf32> to vector<16x48xf32>
    %728 = vector.shape_cast %725 : vector<16x48xf32> to vector<1x16x48xf32>
    tpu.vector_store %arg12[%c0_239, %c0_240, %c0_241], %728 {strides = array<i32>} : memref<2x16x48xf32, #tpu.memory_space<vmem>>, vector<1x16x48xf32>,
    %729 = vector.extract_strided_slice %724 {offsets = [16, 0], sizes = [16, 48], strides = [1, 1]} : vector<32x48xf32> to vector<16x48xf32>
    %c1_242 = arith.constant 1 : index
    %c0_243 = arith.constant 0 : index
    %c0_244 = arith.constant 0 : index
    %730 = vector.load %arg12[%c1_242, %c0_243, %c0_244] : memref<2x16x48xf32, #tpu.memory_space<vmem>>, vector<1x16x48xf32>
    %731 = vector.shape_cast %730 : vector<1x16x48xf32> to vector<16x48xf32>
    %732 = vector.shape_cast %729 : vector<16x48xf32> to vector<1x16x48xf32>
    tpu.vector_store %arg12[%c1_242, %c0_243, %c0_244], %732 {strides = array<i32>} : memref<2x16x48xf32, #tpu.memory_space<vmem>>, vector<1x16x48xf32>,
    return
  }
}

</mosaic_0001>

<bundles_post_ra>
// kernel: tpu_custom_call.1
= control target key start
LH: loop header
LB: loop body
LE: loop exit
PB: predicated region body
PF: predicated region fallthrough
CT: control target
= control target key end

     0   :  { %17 = vsyncpa [#allocation3], 0  ;;  %s6392_s0 = inlined_call_operand.hbm [shape: f32[2,16,48], index: 0, kind: input, shape index: {}]   ;;  %s6393_s1 = inlined_call_operand.hbm [shape: f32[4,1,48], index: 1, kind: input, shape index: {}]   ;;  %s6394_s2 = inlined_call_operand.hbm [shape: f32[4,1,48], index: 2, kind: input, shape index: {}]   ;;  %s6395_s3 = inlined_call_operand.hbm [shape: bf16[4,48,144], index: 3, kind: input, shape index: {}]   ;;  %s6396_s4 = inlined_call_operand.hbm [shape: bf16[4,48,48], index: 4, kind: input, shape index: {}]   ;;  %s6397_s5 = inlined_call_operand.vmem [shape: f32[4,1,48], index: 5, kind: input, shape index: {}]   ;;  %s6398_s6 = inlined_call_operand.hbm [shape: f32[2,1,48], index: 6, kind: input, shape index: {}]   ;;  %s6399_s7 = inlined_call_operand.vmem [shape: f32[2,1,48], index: 7, kind: input, shape index: {}]   ;;  %s6400_s8 = inlined_call_operand.hbm [shape: bf16[2,48,48], index: 8, kind: input, shape index: {}]   ;;  %s6401_s9 = inlined_call_operand.vmem [shape: f32[2,1,48], index: 9, kind: input, shape index: {}]   ;;  %s6402_s10 = inlined_call_operand.hbm [shape: bf16[2,48,48], index: 10, kind: input, shape index: {}]   ;;  %s6403_s11 = inlined_call_operand.vmem [shape: f32[2,1,48], index: 11, kind: input, shape index: {}]   ;;  %s6404_s12 = inlined_call_operand.hbm [shape: f32[2,16,48], index: 12, kind: output, shape index: {}]  }
   0x1   :  { %18 = vsyncpa [#allocation6], 0 }
   0x2   :  { %19 = vsyncpa [#allocation9], 0 }
   0x3   :  { %20 = vsyncpa [#allocation12], 0 }
   0x4   :  { %21 = vsyncpa [#allocation15], 0  ;;  %s40_s23 = sshll.u32 %s6393_s1, 4  ;;  %s41_s23 = int_to_ptr.hbm [resolvable:$true] %s40_s23 }
   0x5   :  { %22 = vsyncpa [#allocation4], 0  ;;  %s4993_s24 = smov [#allocation5]   ;;  %s4994_s26 = smov 16  }
   0x6   :  { %s42_s25 = sshll.u32 %s4993_s24, 4  ;;  %s4995_s27 = smov 1   ;;  %s43_s25 = int_to_ptr.vmem [resolvable:$true] %s42_s25 }
   0x7   :  { %48 = dma.hbm_to_vmem [thread:$0]  %s41_s23, 64, %s43_s25, [#allocation6], %s4994_s26, %s4994_s26, %s4995_s27  }
   0x8   :  { %s66_s30 = sshll.u32 %s6395_s3, 4  ;;  %s4996_s13 = smov [#allocation8]   ;;  %s67_s30 = int_to_ptr.hbm [resolvable:$true] %s66_s30 }
   0x9   :  { %s68_s14 = sshll.u32 %s4996_s13, 4  ;;  %s94_s16 = sshll.u32 %s6398_s6, 4  ;;  %s69_s14 = int_to_ptr.vmem [resolvable:$true] %s68_s14  ;;  %s95_s16 = int_to_ptr.hbm [resolvable:$true] %s94_s16 }
   0xa   :  { %s4997_s17 = smov 128   ;;  %s4998_s18 = smov 8  }
   0xb   :  { %74 = dma.hbm_to_vmem [thread:$0]  %s67_s30, 3072, %s69_s14, [#allocation9], %s4997_s17, %s4997_s17, %s4998_s18  }
   0xc   :  { %s27_s21 = sshll.u32 %s6392_s0, 4  ;;  %s4999_s3 = smov [#allocation11]   ;;  %s28_s21 = int_to_ptr.hbm [resolvable:$true] %s27_s21 }
   0xd   :  { %s96_s22 = sshll.u32 %s4999_s3, 4  ;;  %s5000_s6 = smov [#allocation2]   ;;  %s97_s22 = int_to_ptr.vmem [resolvable:$true] %s96_s22 }
   0xe   :  { %102 = dma.hbm_to_vmem [thread:$0]  %s95_s16, 32, %s97_s22, [#allocation12], %s4994_s26, %s4994_s26, %s4995_s27  }
   0xf   :  { %s29_s23 = sshll.u32 %s5000_s6, 4  ;;  %s53_s28 = sshll.u32 %s6394_s2, 4  ;;  %s30_s23 = int_to_ptr.vmem [resolvable:$true] %s29_s23  ;;  %s54_s28 = int_to_ptr.hbm [resolvable:$true] %s53_s28 }
  0x10   :  { %35 = dma.hbm_to_vmem [thread:$0]  %s28_s21, 512, %s30_s23, [#allocation3], %s4997_s17, %s4997_s17, %s4998_s18  }
  0x11   :  { %s79_s30 = sshll.u32 %s6396_s4, 4  ;;  %s5001_s13 = smov [#allocation7]   ;;  %s80_s30 = int_to_ptr.hbm [resolvable:$true] %s79_s30 }
  0x12   :  { %s55_s14 = sshll.u32 %s5001_s13, 4  ;;  %s5002_s15 = smov [#allocation10]   ;;  %s56_s14 = int_to_ptr.vmem [resolvable:$true] %s55_s14 }
  0x13   :  { %61 = dma.hbm_to_vmem [thread:$0]  %s54_s28, 64, %s56_s14, [#allocation6], %s4994_s26, %s4994_s26, %s4995_s27  }
  0x14   :  { %s81_s2 = sshll.u32 %s5002_s15, 4  ;;  %s5003_s1 = smov 64   ;;  %s82_s2 = int_to_ptr.vmem [resolvable:$true] %s81_s2 }
  0x15   :  { %s5004_s16 = smov 4   ;;  %s109_s4 = sshll.u32 %s6400_s8, 4  ;;  %s110_s4 = int_to_ptr.hbm [resolvable:$true] %s109_s4 }
  0x16   :  { %87 = dma.hbm_to_vmem [thread:$0]  %s80_s30, 1536, %s82_s2, [#allocation9], %s5003_s1, %s5003_s1, %s5004_s16  }
  0x17   :  { %s5005_s21 = smov [#allocation13]   ;;  %s124_s27 = sshll.u32 %s6402_s10, 4  ;;  %s125_s27 = int_to_ptr.hbm [resolvable:$true] %s124_s27 }
  0x18   :  { %s111_s3 = sshll.u32 %s5005_s21, 4  ;;  %s5006_s23 = smov [#allocation14]   ;;  %s112_s3 = int_to_ptr.vmem [resolvable:$true] %s111_s3 }
  0x19   :  { %117 = dma.hbm_to_vmem [thread:$0]  %s110_s4, 768, %s112_s3, [#allocation12], %s5003_s1, %s5003_s1, %s5004_s16  }
  0x1a   :  { %s126_s24 = sshll.u32 %s5006_s23, 4  ;;  %s127_s24 = int_to_ptr.vmem [resolvable:$true] %s126_s24 }
  0x1b   :  { %132 = dma.hbm_to_vmem [thread:$0]  %s125_s27, 768, %s127_s24, [#allocation15], %s5003_s1, %s5003_s1, %s5004_s16  }
  0x1c   :  { %4981 = dma.done.wait [#allocation3], 512  }
  0x1d   :  { %4982 = vsyncadd [#allocation3], 4294966784 }
  0x1e   :  { %4983 = dma.done.wait [#allocation6], 128  }
  0x1f   :  { %4984 = vsyncadd [#allocation6], 4294967168 }
  0x20   :  { %4985 = dma.done.wait [#allocation9], 4608  }
  0x21   :  { %4986 = vsyncadd [#allocation9], 4294962688 }
  0x22   :  { %4987 = dma.done.wait [#allocation12], 800  }
  0x23   :  { %4988 = vsyncadd [#allocation12], 4294966496 }
  0x24   :  { %4989 = dma.done.wait [#allocation15], 768  }
  0x25   :  { %4990 = vsyncadd [#allocation15], 4294966528  ;;  %vm175_vm0 = vcmask 392192   ;;  %v168_v0 = vld [vmem:[#allocation2] sm:$0xff]  ;;  %v169_v1 = vld [vmem:[#allocation2 + $0x8] sm:$0xff]  ;;  %v5007_v8 = vmov 48.0  }
  0x26   :  { %v171_v2 = vld [vmem:[#allocation2 + $0x10] sm:$0xff]  ;;  %v176_v3 = vsel %vm175_vm0, %v168_v0, 0.0  ;;  %v172_v5 = vld [vmem:[#allocation2 + $0x18] sm:$0xff]  ;;  %v179_v6 = vsel %vm175_vm0, %v169_v1, 0.0  ;;  %4519 = vrcp.f32 %v5007_v8  ;;  %v4090_v35 = vld [vmem:[#allocation8 + $0x20] sm:$0xf] }
  0x27   :  { %v182_v4 = vsel %vm175_vm0, %v171_v2, 0.0  ;;  %177 = vadd.xlane.f32.xlu0 %v176_v3  ;;  %v185_v7 = vsel %vm175_vm0, %v172_v5, 0.0  ;;  %v4355_v36 = vld [vmem:[#allocation8 + $0x24] sm:$0xf0]  ;;  %v4354_v37 = vld [vmem:[#allocation8 + $0x24] sm:$0xf] }
  0x28   :  { %183 = vadd.xlane.f32.xlu2 %v182_v4  ;;  %v4091_v38 = vor.u32 %v4355_v36, %v4090_v35  ;;  %v4092_v39 = vld [vmem:[#allocation8 + $0x28] sm:$0xf0]  ;;  %v4082_v41 = vld [vmem:[#allocation8 + $0x10] sm:$0xf]  ;;  %v4353_v42 = vld [vmem:[#allocation8 + $0x14] sm:$0xf0] }
  0x29   :  { %v4095_v40 = vor.u32 %v4354_v37, %v4092_v39  ;;  %v4352_v43 = vld [vmem:[#allocation8 + $0x14] sm:$0xf]  ;;  %v4083_v44 = vor.u32 %v4353_v42, %v4082_v41  ;;  %v4084_v45 = vld [vmem:[#allocation8 + $0x18] sm:$0xf0]  ;;  %v4074_v49 = vld [vmem:[#allocation8] sm:$0xf] }
  0x2a   :  { %334 = vmatpush.bf16.msra.mxu0 %v4091_v38  ;;  %v4087_v46 = vor.u32 %v4352_v43, %v4084_v45  ;;  %v4351_v50 = vld [vmem:[#allocation8 + $0x4] sm:$0xf0]  ;;  %v4350_v51 = vld [vmem:[#allocation8 + $0x4] sm:$0xf]  ;;  %v4076_v53 = vld [vmem:[#allocation8 + $0x8] sm:$0xf0] }
  0x2b   :  { %353 = vmatpush.bf16.msra.mxu1 %v4095_v40  ;;  %v4075_v52 = vor.u32 %v4351_v50, %v4074_v49  ;;  %v4079_v55 = vor.u32 %v4350_v51, %v4076_v53  ;;  %s5008_s8 = smov 112   ;;  %s5009_s10 = smov 80   ;;  %vm371_vm14 = vcmask 130048  }
  0x2c   :  { %v4520_v9 = vpop.eup %4519  ;;  %s5010_s25 = smov 48   ;;  %s5011_s28 = smov 96  }
  0x2d   :  { %v189_v10 = vmul.f32 48.0, %v4520_v9  ;;  %vm193_vm1 = vweird.f32 %v4520_v9  ;;  %s5012_s0 = smov 32  }
  0x2e   :  { %335 = vmatpush.bf16.msra.mxu0 %v4083_v44 }
  0x2f   :  { %180 = vadd.xlane.f32.xlu0 %v179_v6  ;;  %v190_v11 = vsub.f32 1.0, %v189_v10  ;;  %354 = vmatpush.bf16.msra.mxu1 %v4087_v46 }
  0x30   :  { %186 = vadd.xlane.f32.xlu2 %v185_v7 }
  0x31   :  { %v191_v12 = vmul.f32 %v4520_v9, %v190_v11 }
  0x32   :  { %336 = vmatpush.bf16.msra.mxu0 %v4075_v52 }
  0x33   :  { %v192_v13 = vadd.f32 %v4520_v9, %v191_v12  ;;  %355 = vmatpush.bf16.msra.mxu1 %v4079_v55 }
  0x35   :  { %v5128_v14 = vsel %vm193_vm1, %v4520_v9, %v192_v13 }
  0x9a   :  { %v178_v15 = vpop.xlane.xlu0 %177 }
  0x9b   :  { %v184_v16 = vpop.xlane.xlu2 %183  ;;  %v195_v17 = vmul.f32 %v5128_v14, %v178_v15 }
  0x9c   :  { %v197_v24 = vmul.f32 %v5128_v14, %v184_v16 }
  0x9d   :  { %v5131_v18 = vsub.f32 %v168_v0, %v195_v17 }
  0x9e   :  { %v5143_v28 = vsub.f32 %v171_v2, %v197_v24 }
  0x9f   :  { %v203_v19 = vmul.f32 %v5131_v18, %v5131_v18 }
  0xa0   :  { %v205_v33 = vmul.f32 %v5143_v28, %v5143_v28 }
  0xa1   :  { %v207_v20 = vsel %vm175_vm0, %v203_v19, 0.0 }
  0xa2   :  { %208 = vadd.xlane.f32.xlu1 %v207_v20  ;;  %v181_v21 = vpop.xlane.xlu0 %180  ;;  %v213_v34 = vsel %vm175_vm0, %v205_v33, 0.0 }
  0xa3   :  { %v187_v22 = vpop.xlane.xlu2 %186  ;;  %v196_v23 = vmul.f32 %v5128_v14, %v181_v21  ;;  %v4499_v21 = vld [vmem:[#allocation5] ss:$0 sm:$0xff] }
  0xa4   :  { %v198_v25 = vmul.f32 %v5128_v14, %v187_v22 }
  0xa5   :  { %v5139_v26 = vsub.f32 %v169_v1, %v196_v23 }
  0xa6   :  { %v5141_v27 = vsub.f32 %v172_v5, %v198_v25 }
  0xa7   :  { %v204_v29 = vmul.f32 %v5139_v26, %v5139_v26 }
  0xa8   :  { %v206_v30 = vmul.f32 %v5141_v27, %v5141_v27 }
  0xa9   :  { %v210_v31 = vsel %vm175_vm0, %v204_v29, 0.0 }
  0xaa   :  { %v216_v32 = vsel %vm175_vm0, %v206_v30, 0.0  ;;  %211 = vadd.xlane.f32.xlu1 %v210_v31 }
  0xab   :  { %217 = vadd.xlane.f32.xlu2 %v216_v32  ;;  %v4500_v32 = vld [vmem:[#allocation7] ss:$0 sm:$0xff] }
  0xb2   :  { %214 = vadd.xlane.f32.xlu1 %v213_v34 }
 0x115   :  { %v209_v47 = vpop.xlane.xlu1 %208 }
 0x116   :  { %v219_v48 = vmul.f32 %v209_v47, %v5128_v14 }
 0x118   :  { %v223_v54 = vadd.f32 1e-05, %v219_v48 }
 0x11a   :  { %4521 = vrsqrt.f32 %v223_v54  ;;  %vm233_vm3 = vweird.f32 %v223_v54 }
 0x11d   :  { %v212_v56 = vpop.xlane.xlu1 %211 }
 0x11e   :  { %v218_v57 = vpop.xlane.xlu2 %217  ;;  %v220_v58 = vmul.f32 %v212_v56, %v5128_v14 }
 0x11f   :  { %v222_v59 = vmul.f32 %v218_v57, %v5128_v14 }
 0x120   :  { %v4522_v60 = vpop.eup %4521  ;;  %v224_v61 = vadd.f32 1e-05, %v220_v58 }
 0x121   :  { %v226_v62 = vadd.f32 1e-05, %v222_v59  ;;  %v228_v63 = vmul.f32 %v4522_v60, %v223_v54  ;;  %vm234_vm2 = vweird.f32 %v4522_v60 }
 0x122   :  { %4523 = vrsqrt.f32 %v224_v61  ;;  %vm235_vm4 = vmor %vm233_vm3, %vm234_vm2  ;;  %vm243_vm6 = vweird.f32 %v224_v61 }
 0x123   :  { %v229_v0 = vmul.f32 %v4522_v60, %v228_v63  ;;  %4525 = vrsqrt.f32 %v226_v62  ;;  %vm263_vm8 = vweird.f32 %v226_v62 }
 0x125   :  { %v230_v1 = vmul.f32 0.5, %v229_v0  ;;  %v215_v2 = vpop.xlane.xlu1 %214 }
 0x126   :  { %v221_v3 = vmul.f32 %v215_v2, %v5128_v14 }
 0x127   :  { %v231_v4 = vsub.f32 1.5, %v230_v1 }
 0x128   :  { %v4524_v5 = vpop.eup %4523  ;;  %v225_v6 = vadd.f32 1e-05, %v221_v3 }
 0x129   :  { %v4526_v7 = vpop.eup %4525  ;;  %v232_v8 = vmul.f32 %v4522_v60, %v231_v4  ;;  %v238_v9 = vmul.f32 %v4524_v5, %v224_v61  ;;  %vm244_vm5 = vweird.f32 %v4524_v5 }
 0x12a   :  { %v258_v10 = vmul.f32 %v4526_v7, %v226_v62  ;;  %4527 = vrsqrt.f32 %v225_v6  ;;  %vm245_vm7 = vmor %vm243_vm6, %vm244_vm5  ;;  %vm264_vm9 = vweird.f32 %v4526_v7  ;;  %vm253_vm10 = vweird.f32 %v225_v6 }
 0x12b   :  { %v239_v11 = vmul.f32 %v4524_v5, %v238_v9  ;;  %v236_v13 = vsel %vm235_vm4, %v4522_v60, %v232_v8  ;;  %vm265_vm12 = vmor %vm263_vm8, %vm264_vm9 }
 0x12c   :  { %v259_v12 = vmul.f32 %v4526_v7, %v258_v10  ;;  %v267_v20 = vmul.f32 %v236_v13, %v5131_v18 }
 0x12d   :  { %v240_v15 = vmul.f32 0.5, %v239_v11 }
 0x12e   :  { %v260_v16 = vmul.f32 0.5, %v259_v12  ;;  %v274_v31 = vmul.f32 %v4499_v21, %v267_v20 }
 0x12f   :  { %v241_v17 = vsub.f32 1.5, %v240_v15 }
 0x130   :  { %v4528_v19 = vpop.eup %4527  ;;  %v261_v23 = vsub.f32 1.5, %v260_v16  ;;  %v281_v36 = vadd.f32 %v4500_v32, %v274_v31 }
 0x131   :  { %v242_v22 = vmul.f32 %v4524_v5, %v241_v17  ;;  %v248_v24 = vmul.f32 %v4528_v19, %v225_v6  ;;  %vm254_vm11 = vweird.f32 %v4528_v19 }
 0x132   :  { %v262_v33 = vmul.f32 %v4526_v7, %v261_v23  ;;  %vm255_vm13 = vmor %vm253_vm10, %vm254_vm11 }
 0x133   :  { %v246_v25 = vsel %vm245_vm7, %v4524_v5, %v242_v22  ;;  %v249_v29 = vmul.f32 %v4528_v19, %v248_v24 }
 0x134   :  { %v268_v30 = vmul.f32 %v246_v25, %v5139_v26  ;;  %v266_v38 = vsel %vm265_vm12, %v4526_v7, %v262_v33 }
 0x135   :  { %v250_v34 = vmul.f32 0.5, %v249_v29  ;;  %v270_v42 = vmul.f32 %v266_v38, %v5141_v27 }
 0x136   :  { %v275_v18 = vmul.f32 %v4499_v21, %v268_v30 }
 0x137   :  { %v251_v35 = vsub.f32 1.5, %v250_v34  ;;  %v277_v44 = vmul.f32 %v4499_v21, %v270_v42 }
 0x138   :  { %v282_v37 = vadd.f32 %v4500_v32, %v275_v18 }
 0x139   :  { %v252_v39 = vmul.f32 %v4528_v19, %v251_v35  ;;  %v284_v46 = vadd.f32 %v4500_v32, %v277_v44 }
 0x13a   :  { %v291_v40 = vpack.c.bf16 %v282_v37, %v281_v36 }
 0x13b   :  { %v256_v41 = vsel %vm255_vm13, %v4528_v19, %v252_v39 }
 0x13c   :  { %4096 = vmatmul.msk.bf16.vlgmr.msra.gmra.mxu0 %vm175_vm0, %v291_v40  ;;  %4098 = vmatmul.msk.bf16.vlgmr.msra.gmra.mxu1 %vm175_vm0, %v291_v40  ;;  %v269_v26 = vmul.f32 %v256_v41, %v5143_v28 }
 0x13e   :  { %v276_v43 = vmul.f32 %v4499_v21, %v269_v26 }
 0x140   :  { %v283_v45 = vadd.f32 %v4500_v32, %v276_v43 }
 0x142   :  { %v292_v47 = vpack.c.bf16 %v284_v46, %v283_v45 }
 0x14c   :  { %4097 = vmatmul.msk.bf16.gmra.mxu0 %vm175_vm0, %v292_v47  ;;  %4099 = vmatmul.msk.bf16.gmra.mxu1 %vm175_vm0, %v292_v47 }
 0x1b9   :  { %v338_v48 = vpop.f32.mrf.mxu0 }
 0x1c1   :  { %v340_v49 = vpop.f32.mrf.mxu0 }
 0x1c2   :  { %v5166_v50 = vpack.c.bf16 %v340_v49, %v338_v48 }
 0x1c4   :  { %461 = vrot.lane.b32.xlu2 %v5166_v50, %s5008_s8  ;;  %463 = vrot.lane.b32.xlu1 %v5166_v50, %s5003_s1 }
 0x1c5   :  { %369 = vrot.lane.b32.xlu0 %v5166_v50, %s5009_s10 }
 0x1c9   :  { %v343_v27 = vpop.f32.mrf.mxu0 }
 0x1cd   :  { %556 = vrot.lane.b32.xlu0 %v5166_v50, %s5010_s25 }
 0x1d1   :  { %v345_v28 = vpop.f32.mrf.mxu0 }
 0x1d2   :  { %v5176_v51 = vpack.c.bf16 %v345_v28, %v343_v27 }
 0x1d4   :  { %668 = vrot.lane.b32.xlu1 %v5176_v51, %s5009_s10  ;;  %759 = vrot.lane.b32.xlu2 %v5176_v51, %s5008_s8 }
 0x1d5   :  { %554 = vrot.lane.b32.xlu0 %v5166_v50, %s5011_s28 }
 0x1dd   :  { %761 = vrot.lane.b32.xlu0 %v5176_v51, %s5003_s1 }
 0x21e   :  { %v462_v56 = vpop.permute.xlu2 %461 }
 0x22e   :  { %v760_v0 = vpop.permute.xlu2 %759 }
 0x236   :  { %v464_v52 = vpop.permute.xlu1 %463 }
 0x237   :  { %v370_v53 = vpop.permute.xlu0 %369  ;;  %v469_v54 = vsel %vm371_vm14, %v464_v52, 0 }
 0x238   :  { %v376_v55 = vsel %vm371_vm14, %v370_v53, 0  ;;  %478 = vmatpush.bf16.xpose.msra.mxu3 %v469_v54 }
 0x239   :  { %385 = vmatpush.bf16.xpose.msra.mxu2 %v376_v55 }
 0x23f   :  { %v557_v57 = vpop.permute.xlu0 %556  ;;  %4102 = vmatmul.msk.bf16.vlgmr.msra.gmra.mxu3 %vm371_vm14, %v462_v56 }
 0x240   :  { %4100 = vmatmul.msk.bf16.vlgmr.msra.gmra.mxu2 %vm371_vm14, %v5166_v50  ;;  %v562_v58 = vsel %vm371_vm14, %v557_v57, 0 }
 0x241   :  { %571 = vmatpush.bf16.xpose.msrb.mxu3 %v562_v58 }
 0x246   :  { %v669_v59 = vpop.permute.xlu1 %668 }
 0x247   :  { %v555_v60 = vpop.permute.xlu0 %554  ;;  %v674_v61 = vsel %vm371_vm14, %v669_v59, 0 }
 0x248   :  { %683 = vmatpush.bf16.xpose.msrb.mxu0 %v674_v61 }
 0x24f   :  { %4104 = vmatmul.msk.bf16.vlgmr.msrb.gmra.mxu3 %vm371_vm14, %v555_v60  ;;  %4106 = vmatmul.msk.bf16.vlgmr.msrb.gmra.mxu0 %vm371_vm14, %v5176_v51  ;;  %v762_v62 = vpop.permute.xlu0 %761 }
 0x250   :  { %v767_v63 = vsel %vm371_vm14, %v762_v62, 0 }
 0x251   :  { %776 = vmatpush.bf16.xpose.msra.mxu3 %v767_v63 }
 0x25f   :  { %4108 = vmatmul.msk.bf16.vlgmr.msra.gmra.mxu3 %vm371_vm14, %v760_v0 }
 0x2c2   :  { %v480_v1 = vpop.f32.mrf.mxu3 }
 0x2c3   :  { %v387_v2 = vpop.f32.mrf.mxu2  ;;  %v485_v3 = vsel %vm371_vm14, %v480_v1, -inf }
 0x2c4   :  { %v392_v4 = vsel %vm371_vm14, %v387_v2, -inf  ;;  %486 = vmax.xlane.f32.xlu0 %v485_v3 }
 0x2c5   :  { %393 = vmax.xlane.f32.xlu2 %v392_v4 }
 0x2ca   :  { %v482_v5 = vpop.f32.mrf.mxu3 }
 0x2cb   :  { %v389_v6 = vpop.f32.mrf.mxu2  ;;  %v488_v7 = vsel %vm371_vm14, %v482_v5, -inf }
 0x2cc   :  { %v395_v8 = vsel %vm371_vm14, %v389_v6, -inf  ;;  %v5233_v48 = vpop.f32.mrf.mxu0 }
 0x2cd   :  { %396 = vmax.xlane.f32.xlu1 %v395_v8  ;;  %489 = vmax.xlane.f32.xlu2 %v488_v7  ;;  %v690_v27 = vsel %vm371_vm14, %v5233_v48, -inf }
 0x2d2   :  { %v573_v9 = vpop.f32.mrf.mxu3 }
 0x2d3   :  { %v578_v10 = vsel %vm371_vm14, %v573_v9, -inf }
 0x2d4   :  { %579 = vmax.xlane.f32.xlu0 %v578_v10  ;;  %v5246_v53 = vpop.f32.mrf.mxu0 }
 0x2d5   :  { %v693_v55 = vsel %vm371_vm14, %v5246_v53, -inf }
 0x2da   :  { %v575_v11 = vpop.f32.mrf.mxu3 }
 0x2db   :  { %v581_v12 = vsel %vm371_vm14, %v575_v11, -inf }
 0x2dc   :  { %582 = vmax.xlane.f32.xlu2 %v581_v12 }
 0x2e2   :  { %v5240_v28 = vpop.f32.mrf.mxu3 }
 0x2e3   :  { %v783_v52 = vsel %vm371_vm14, %v5240_v28, -inf }
 0x2e6   :  { %854 = vrot.lane.b32.xlu1 %v5176_v51, %s5010_s25 }
 0x2ea   :  { %v5248_v54 = vpop.f32.mrf.mxu3 }
 0x2eb   :  { %v786_v56 = vsel %vm371_vm14, %v5248_v54, -inf }
 0x2f4   :  { %852 = vrot.lane.b32.xlu2 %v5176_v51, %s5011_s28 }
 0x337   :  { %v487_v13 = vpop.xlane.xlu0 %486 }
 0x338   :  { %v394_v15 = vpop.xlane.xlu2 %393  ;;  %v491_v16 = vsub.f32 %v480_v1, %v487_v13 }
 0x339   :  { %v398_v17 = vsub.f32 %v387_v2, %v394_v15 }
 0x33a   :  { %v493_v19 = vmul.f32 1.442695, %v491_v16 }
 0x33b   :  { %v400_v20 = vmul.f32 1.442695, %v398_v17 }
 0x33c   :  { %4529 = vpow2.f32 %v493_v19 }
 0x33d   :  { %4531 = vpow2.f32 %v400_v20 }
 0x340   :  { %v490_v21 = vpop.xlane.xlu2 %489  ;;  %v397_v22 = vpop.xlane.xlu1 %396 }
 0x341   :  { %v492_v23 = vsub.f32 %v482_v5, %v490_v21  ;;  %v399_v24 = vsub.f32 %v389_v6, %v397_v22  ;;  %v357_v6 = vpop.f32.mrf.mxu1 }
 0x342   :  { %v5208_v25 = vpop.eup %4529 }
 0x343   :  { %v5210_v29 = vpop.eup %4531  ;;  %v495_v30 = vmul.f32 1.442695, %v492_v23  ;;  %v402_v31 = vmul.f32 1.442695, %v399_v24  ;;  %v497_v32 = vsel %vm371_vm14, %v5208_v25, 0.0 }
 0x344   :  { %v404_v33 = vsel %vm371_vm14, %v5210_v29, 0.0  ;;  %498 = vadd.xlane.f32.xlu2 %v497_v32 }
 0x345   :  { %4533 = vpow2.f32 %v495_v30  ;;  %405 = vadd.xlane.f32.xlu0 %v404_v33 }
 0x346   :  { %4535 = vpow2.f32 %v402_v31 }
 0x347   :  { %v580_v34 = vpop.xlane.xlu0 %579 }
 0x348   :  { %v584_v18 = vsub.f32 %v573_v9, %v580_v34 }
 0x349   :  { %v359_v33 = vpop.f32.mrf.mxu1 }
 0x34a   :  { %v586_v35 = vmul.f32 1.442695, %v584_v18 }
 0x34b   :  { %v5216_v36 = vpop.eup %4533 }
 0x34c   :  { %v5218_v37 = vpop.eup %4535  ;;  %4537 = vpow2.f32 %v586_v35  ;;  %v500_v38 = vsel %vm371_vm14, %v5216_v36, 0.0 }
 0x34d   :  { %501 = vadd.xlane.f32.xlu0 %v500_v38  ;;  %v407_v39 = vsel %vm371_vm14, %v5218_v37, 0.0 }
 0x34e   :  { %408 = vadd.xlane.f32.xlu1 %v407_v39 }
 0x34f   :  { %v583_v40 = vpop.xlane.xlu2 %582 }
 0x350   :  { %v585_v41 = vsub.f32 %v575_v11, %v583_v40 }
 0x352   :  { %v5224_v26 = vpop.eup %4537  ;;  %v588_v42 = vmul.f32 1.442695, %v585_v41 }
 0x353   :  { %v590_v43 = vsel %vm371_vm14, %v5224_v26, 0.0 }
 0x354   :  { %4539 = vpow2.f32 %v588_v42  ;;  %v627_v42 = vpack.c.bf16 %v359_v33, %v357_v6 }
 0x355   :  { %591 = vadd.xlane.f32.xlu0 %v590_v43 }
 0x357   :  { %v853_v49 = vpop.permute.xlu2 %852 }
 0x358   :  { %v855_v44 = vpop.permute.xlu1 %854 }
 0x359   :  { %v860_v45 = vsel %vm371_vm14, %v855_v44, 0 }
 0x35a   :  { %v5229_v46 = vpop.eup %4539  ;;  %869 = vmatpush.bf16.xpose.msra.mxu0 %v860_v45 }
 0x35b   :  { %v593_v47 = vsel %vm371_vm14, %v5229_v46, 0.0 }
 0x35c   :  { %594 = vadd.xlane.f32.xlu2 %v593_v47 }
 0x361   :  { %4110 = vmatmul.msk.bf16.vlgmr.msra.gmra.mxu0 %vm371_vm14, %v853_v49 }
 0x364   :  { %691 = vmax.xlane.f32.xlu2 %v690_v27 }
 0x367   :  { %441 = vrot.lane.b32.xlu1 %v5166_v50, %s5012_s0 }
 0x369   :  { %534 = vrot.lane.b32.xlu0 %v5166_v50, %s4994_s26 }
 0x36c   :  { %784 = vmax.xlane.f32.xlu2 %v783_v52 }
 0x391   :  { %694 = vmax.xlane.f32.xlu1 %v693_v55 }
 0x393   :  { %787 = vmax.xlane.f32.xlu0 %v786_v56 }
 0x3b7   :  { %v5256_v62 = vpop.xlane.xlu2 %498 }
 0x3b8   :  { %v406_v57 = vpop.xlane.xlu0 %405  ;;  %v514_v55 = vand.u32 2147483648, %v5256_v62  ;;  %vm508_vm12 = vweird.f32 %v5256_v62 }
 0x3b9   :  { %4541 = vrcp.f32 %v406_v57  ;;  %v421_v11 = vand.u32 2147483648, %v406_v57  ;;  %vm415_vm3 = vweird.f32 %v406_v57  ;;  %v419_v12 = vand.u32 2147483647, %v406_v57 }
 0x3bb   :  { %v422_v22 = vor.u32 1.1754944e-38, %v421_v11  ;;  %vm420_vm7 = vcmp.eq.f32.partialorder %v419_v12, 8.507059e+37 }
 0x3bf   :  { %v4542_v58 = vpop.eup %4541 }
 0x3c0   :  { %v411_v59 = vmul.f32 %v4542_v58, %v406_v57  ;;  %v5254_v60 = vpop.xlane.xlu0 %501  ;;  %vm416_vm1 = vweird.f32 %v4542_v58 }
 0x3c1   :  { %v409_v50 = vpop.xlane.xlu1 %408  ;;  %vm417_vm5 = vmor %vm415_vm3, %vm416_vm1  ;;  %vm522_vm10 = vweird.f32 %v5254_v60  ;;  %v526_v49 = vand.u32 2147483647, %v5254_v60 }
 0x3c2   :  { %4543 = vrcp.f32 %v409_v50  ;;  %v412_v61 = vsub.f32 1.0, %v411_v59  ;;  %v435_v5 = vand.u32 2147483648, %v409_v50  ;;  %v433_v9 = vand.u32 2147483647, %v409_v50 }
 0x3c3   :  { %4545 = vrcp.f32 %v5254_v60  ;;  %vm429_vm2 = vweird.f32 %v409_v50 }
 0x3c4   :  { %4547 = vrcp.f32 %v5256_v62  ;;  %v413_v1 = vmul.f32 %v4542_v58, %v412_v61  ;;  %v436_v16 = vor.u32 1.1754944e-38, %v435_v5  ;;  %vm434_vm6 = vcmp.eq.f32.partialorder %v433_v9, 8.507059e+37 }
 0x3c5   :  { %v515_v61 = vor.u32 1.1754944e-38, %v514_v55 }
 0x3c6   :  { %v414_v7 = vadd.f32 %v4542_v58, %v413_v1 }
 0x3c8   :  { %v4544_v63 = vpop.eup %4543  ;;  %v5270_v20 = vpop.xlane.xlu0 %591  ;;  %v418_v21 = vsel %vm417_vm5, %v4542_v58, %v414_v7 }
 0x3c9   :  { %v425_v0 = vmul.f32 %v4544_v63, %v409_v50  ;;  %v5260_v4 = vpop.eup %4545  ;;  %vm430_vm15 = vweird.f32 %v4544_v63  ;;  %v423_v30 = vsel %vm420_vm7, %v422_v22, %v418_v21 }
 0x3ca   :  { %v5262_v10 = vpop.eup %4547  ;;  %v518_v13 = vmul.f32 %v5260_v4, %v5254_v60  ;;  %vm431_vm4 = vmor %vm429_vm2, %vm430_vm15  ;;  %v438_v35 = vmul.f32 %v5210_v29, %v423_v30  ;;  %vm523_vm8 = vweird.f32 %v5260_v4  ;;  %v528_v29 = vand.u32 2147483648, %v5254_v60 }
 0x3cb   :  { %v426_v2 = vsub.f32 1.0, %v425_v0  ;;  %v504_v19 = vmul.f32 %v5262_v10, %v5256_v62  ;;  %vm509_vm9 = vweird.f32 %v5262_v10  ;;  %vm524_vm11 = vmor %vm522_vm10, %vm523_vm8  ;;  %vm527_vm15 = vcmp.eq.f32.partialorder %v526_v49, 8.507059e+37 }
 0x3cc   :  { %v519_v24 = vsub.f32 1.0, %v518_v13  ;;  %vm510_vm13 = vmor %vm508_vm12, %vm509_vm9  ;;  %v529_v58 = vor.u32 1.1754944e-38, %v528_v29 }
 0x3cd   :  { %v427_v3 = vmul.f32 %v4544_v63, %v426_v2  ;;  %v505_v31 = vsub.f32 1.0, %v504_v19 }
 0x3ce   :  { %v520_v34 = vmul.f32 %v5260_v4, %v519_v24 }
 0x3cf   :  { %v428_v8 = vadd.f32 %v4544_v63, %v427_v3  ;;  %v5266_v15 = vpop.xlane.xlu2 %594  ;;  %v506_v38 = vmul.f32 %v5262_v10, %v505_v31 }
 0x3d0   :  { %4549 = vrcp.f32 %v5266_v15  ;;  %v621_v11 = vand.u32 2147483648, %v5266_v15 }
 0x3d1   :  { %v432_v17 = vsel %vm431_vm4, %v4544_v63, %v428_v8  ;;  %4551 = vrcp.f32 %v5270_v20  ;;  %v507_v47 = vadd.f32 %v5262_v10, %v506_v38  ;;  %vm615_vm4 = vweird.f32 %v5266_v15 }
 0x3d2   :  { %v437_v23 = vsel %vm434_vm6, %v436_v16, %v432_v17  ;;  %vm601_vm6 = vweird.f32 %v5270_v20  ;;  %v605_v16 = vand.u32 2147483647, %v5270_v20  ;;  %v622_v19 = vor.u32 1.1754944e-38, %v621_v11 }
 0x3d3   :  { %v439_v32 = vmul.f32 %v5218_v37, %v437_v23  ;;  %v521_v37 = vadd.f32 %v5260_v4, %v520_v34  ;;  %v511_v59 = vsel %vm510_vm13, %v5262_v10, %v507_v47 }
 0x3d4   :  { %vm606_vm9 = vcmp.eq.f32.partialorder %v605_v16, 8.507059e+37 }
 0x3d5   :  { %v440_v41 = vpack.c.bf16 %v439_v32, %v438_v35  ;;  %v525_v56 = vsel %vm524_vm11, %v5260_v4, %v521_v37 }
 0x3d6   :  { %v4550_v43 = vpop.eup %4549  ;;  %v530_v63 = vsel %vm527_vm15, %v529_v58, %v525_v56 }
 0x3d7   :  { %v692_v39 = vpop.xlane.xlu2 %691  ;;  %v4552_v52 = vpop.eup %4551  ;;  %v611_v57 = vmul.f32 %v4550_v43, %v5266_v15  ;;  %v532_v4 = vmul.f32 %v5216_v36, %v530_v63  ;;  %vm616_vm2 = vweird.f32 %v4550_v43  ;;  %v619_v36 = vand.u32 2147483647, %v5266_v15 }
 0x3d8   :  { %v696_v44 = vsub.f32 %v5233_v48, %v692_v39  ;;  %v512_v48 = vand.u32 2147483647, %v5256_v62  ;;  %v597_v60 = vmul.f32 %v4552_v52, %v5270_v20  ;;  %vm602_vm3 = vweird.f32 %v4552_v52  ;;  %vm617_vm5 = vmor %vm615_vm4, %vm616_vm2 }
 0x3d9   :  { %v442_v18 = vpop.permute.xlu1 %441  ;;  %v612_v0 = vsub.f32 1.0, %v611_v57  ;;  %vm603_vm7 = vmor %vm601_vm6, %vm602_vm3  ;;  %vm620_vm8 = vcmp.eq.f32.partialorder %v619_v36, 8.507059e+37 }
 0x3da   :  { %454 = vmatpush.bf16.msrb.mxu2 %v442_v18  ;;  %v698_v50 = vmul.f32 1.442695, %v696_v44  ;;  %vm513_vm1 = vcmp.eq.f32.partialorder %v512_v48, 8.507059e+37  ;;  %v598_v2 = vsub.f32 1.0, %v597_v60 }
 0x3db   :  { %v535_v40 = vpop.permute.xlu0 %534  ;;  %v516_v1 = vsel %vm513_vm1, %v515_v61, %v511_v59  ;;  %v613_v5 = vmul.f32 %v4550_v43, %v612_v0  ;;  %v362_v59 = vpop.f32.mrf.mxu1 }
 0x3dc   :  { %4553 = vpow2.f32 %v698_v50  ;;  %v531_v6 = vmul.f32 %v5208_v25, %v516_v1  ;;  %v599_v7 = vmul.f32 %v4552_v52, %v598_v2  ;;  %v607_v25 = vand.u32 2147483648, %v5270_v20 }
 0x3dd   :  { %4101 = vmatmul.msk.bf16.vlgmr.msrb.gmra.mxu2 %vm371_vm14, %v440_v41  ;;  %v614_v10 = vadd.f32 %v4550_v43, %v613_v5 }
 0x3de   :  { %547 = vmatpush.bf16.msra.mxu2 %v535_v40  ;;  %v5284_v45 = vpop.f32.mrf.mxu0  ;;  %v533_v8 = vpack.c.bf16 %v532_v4, %v531_v6  ;;  %v600_v12 = vadd.f32 %v4552_v52, %v599_v7  ;;  %v608_v22 = vor.u32 1.1754944e-38, %v607_v25 }
 0x3df   :  { %v876_v27 = vsel %vm371_vm14, %v5284_v45, -inf  ;;  %v618_v17 = vsel %vm617_vm5, %v4550_v43, %v614_v10  ;;  %v785_v38 = vpop.xlane.xlu2 %784 }
 0x3e0   :  { %877 = vmax.xlane.f32.xlu2 %v876_v27  ;;  %v604_v21 = vsel %vm603_vm7, %v4552_v52, %v600_v12  ;;  %v623_v23 = vsel %vm620_vm8, %v622_v19, %v618_v17 }
 0x3e1   :  { %v609_v15 = vsel %vm606_vm9, %v608_v22, %v604_v21  ;;  %v625_v24 = vmul.f32 %v5229_v46, %v623_v23 }
 0x3e2   :  { %638 = vmatpush.bf16.msrb.mxu2 %v627_v42  ;;  %v5306_v9 = vpop.eup %4553  ;;  %v624_v30 = vmul.f32 %v5224_v26, %v609_v15  ;;  %v789_v42 = vsub.f32 %v5240_v28, %v785_v38 }
 0x3e3   :  { %v702_v13 = vsel %vm371_vm14, %v5306_v9, 0.0 }
 0x3e4   :  { %v626_v31 = vpack.c.bf16 %v625_v24, %v624_v30  ;;  %v791_v43 = vmul.f32 1.442695, %v789_v42 }
 0x3e6   :  { %v5300_v62 = vpop.f32.mrf.mxu0 }
 0x3e7   :  { %v879_v3 = vsel %vm371_vm14, %v5300_v62, -inf }
 0x3e8   :  { %880 = vmax.xlane.f32.xlu2 %v879_v3  ;;  %v364_v3 = vpop.f32.mrf.mxu1 }
 0x3ed   :  { %4103 = vmatmul.msk.bf16.vlgmr.msra.gmra.mxu2 %vm371_vm14, %v533_v8 }
 0x3f0   :  { %703 = vadd.xlane.f32.xlu2 %v702_v13 }
 0x3fd   :  { %4105 = vmatmul.msk.bf16.vlgmr.msrb.gmra.mxu2 %vm371_vm14, %v626_v31 }
 0x404   :  { %v695_v32 = vpop.xlane.xlu1 %694 }
 0x405   :  { %v697_v33 = vsub.f32 %v5246_v53, %v695_v32 }
 0x406   :  { %v788_v46 = vpop.xlane.xlu0 %787 }
 0x407   :  { %v700_v20 = vmul.f32 1.442695, %v697_v33  ;;  %v790_v26 = vsub.f32 %v5248_v54, %v788_v46 }
 0x409   :  { %4555 = vpow2.f32 %v700_v20  ;;  %v793_v35 = vmul.f32 1.442695, %v790_v26  ;;  %v4358_v26 = vld [vmem:[#allocation10 + $0x10] sm:$0xff] }
 0x40a   :  { %1000 = vmatpush.bf16.msrb.mxu3 %v4358_v26 }
 0x40b   :  { %4557 = vpow2.f32 %v793_v35  ;;  %v4357_v35 = vld [vmem:[#allocation10 + $0x8] sm:$0xff] }
 0x40e   :  { %1001 = vmatpush.bf16.msrb.mxu3 %v4357_v35 }
 0x40f   :  { %v5321_v34 = vpop.eup %4555 }
 0x410   :  { %v705_v18 = vsel %vm371_vm14, %v5321_v34, 0.0 }
 0x411   :  { %706 = vadd.xlane.f32.xlu2 %v705_v18  ;;  %v5328_v39 = vpop.eup %4557 }
 0x412   :  { %v798_v53 = vsel %vm371_vm14, %v5328_v39, 0.0 }
 0x429   :  { %739 = vrot.lane.b32.xlu2 %v5176_v51, %s5012_s0 }
 0x452   :  { %799 = vadd.xlane.f32.xlu2 %v798_v53 }
 0x453   :  { %v878_v40 = vpop.xlane.xlu2 %877 }
 0x454   :  { %v882_v41 = vsub.f32 %v5284_v45, %v878_v40 }
 0x456   :  { %v884_v37 = vmul.f32 1.442695, %v882_v41 }
 0x458   :  { %4559 = vpow2.f32 %v884_v37 }
 0x459   :  { %4561 = vpow2.f32 %v791_v43  ;;  %v4356_v43 = vld [vmem:[#allocation10] sm:$0xff] }
 0x45a   :  { %1002 = vmatpush.bf16.msrb.mxu3 %v4356_v43  ;;  %v4761_v43 = vld [vmem:[#allocation2] sm:$0xff] }
 0x45b   :  { %v881_v29 = vpop.xlane.xlu2 %880 }
 0x45c   :  { %v883_v54 = vsub.f32 %v5300_v62, %v881_v29 }
 0x45e   :  { %v5335_v44 = vpop.eup %4559  ;;  %v886_v47 = vmul.f32 1.442695, %v883_v54 }
 0x45f   :  { %v888_v49 = vsel %vm371_vm14, %v5335_v44, 0.0  ;;  %v5341_v45 = vpop.eup %4561 }
 0x460   :  { %4563 = vpow2.f32 %v886_v47  ;;  %v5339_v27 = vpop.f32.mrf.mxu2  ;;  %889 = vadd.xlane.f32.xlu1 %v888_v49  ;;  %v795_v52 = vsel %vm371_vm14, %v5341_v45, 0.0 }
 0x463   :  { %v704_v57 = vpop.xlane.xlu2 %703 }
 0x464   :  { %4565 = vrcp.f32 %v704_v57  ;;  %v719_v10 = vand.u32 2147483648, %v704_v57  ;;  %vm713_vm11 = vweird.f32 %v704_v57  ;;  %v717_v11 = vand.u32 2147483647, %v704_v57 }
 0x466   :  { %v5343_v28 = vpop.eup %4563  ;;  %v720_v17 = vor.u32 1.1754944e-38, %v719_v10  ;;  %vm718_vm15 = vcmp.eq.f32.partialorder %v717_v11, 8.507059e+37 }
 0x467   :  { %v891_v55 = vsel %vm371_vm14, %v5343_v28, 0.0 }
 0x468   :  { %v5349_v48 = vpop.f32.mrf.mxu2  ;;  %796 = vadd.xlane.f32.xlu1 %v795_v52  ;;  %892 = vadd.xlane.f32.xlu0 %v891_v55 }
 0x46a   :  { %832 = vrot.lane.b32.xlu2 %v5176_v51, %s4994_s26  ;;  %v4566_v50 = vpop.eup %4565  ;;  %v925_v51 = vpack.c.bf16 %v364_v3, %v362_v59 }
 0x46b   :  { %v709_v61 = vmul.f32 %v4566_v50, %v704_v57  ;;  %vm714_vm10 = vweird.f32 %v4566_v50 }
 0x46c   :  { %vm715_vm12 = vmor %vm713_vm11, %vm714_vm10 }
 0x46d   :  { %v710_v0 = vsub.f32 1.0, %v709_v61 }
 0x46f   :  { %v711_v62 = vmul.f32 %v4566_v50, %v710_v0 }
 0x470   :  { %v549_v56 = vpop.f32.mrf.mxu2 }
 0x471   :  { %v712_v6 = vadd.f32 %v4566_v50, %v711_v62 }
 0x473   :  { %v716_v16 = vsel %vm715_vm12, %v4566_v50, %v712_v6 }
 0x474   :  { %v721_v22 = vsel %vm718_vm15, %v720_v17, %v716_v16 }
 0x475   :  { %v736_v24 = vmul.f32 %v5306_v9, %v721_v22 }
 0x478   :  { %v551_v58 = vpop.f32.mrf.mxu2 }
 0x479   :  { %v4419_v60 = vpack.i.bf16 %v551_v58, %v549_v56 }
 0x480   :  { %v640_v63 = vpop.f32.mrf.mxu2 }
 0x481   :  { %4420 = vrot.lane.b32.xlu1 %v4419_v60, %s4994_s26 }
 0x484   :  { %v707_v1 = vpop.xlane.xlu2 %706 }
 0x485   :  { %4567 = vrcp.f32 %v707_v1  ;;  %v733_v36 = vand.u32 2147483648, %v707_v1  ;;  %v731_v25 = vand.u32 2147483647, %v707_v1  ;;  %vm727_vm1 = vweird.f32 %v707_v1 }
 0x487   :  { %v734_v21 = vor.u32 1.1754944e-38, %v733_v36  ;;  %vm732_vm3 = vcmp.eq.f32.partialorder %v731_v25, 8.507059e+37 }
 0x488   :  { %v642_v2 = vpop.f32.mrf.mxu2 }
 0x489   :  { %v4424_v4 = vpack.i.bf16 %v642_v2, %v640_v63 }
 0x48b   :  { %v4568_v5 = vpop.eup %4567  ;;  %4425 = vrot.lane.b32.xlu0 %v4424_v4, %s5012_s0 }
 0x48c   :  { %v723_v7 = vmul.f32 %v4568_v5, %v707_v1  ;;  %v740_v8 = vpop.permute.xlu2 %739  ;;  %vm728_vm13 = vweird.f32 %v4568_v5 }
 0x48d   :  { %752 = vmatpush.bf16.msrb.mxu1 %v740_v8  ;;  %vm729_vm2 = vmor %vm727_vm1, %vm728_vm13 }
 0x48e   :  { %v724_v12 = vsub.f32 1.0, %v723_v7 }
 0x490   :  { %v725_v13 = vmul.f32 %v4568_v5, %v724_v12 }
 0x491   :  { %936 = vmatpush.bf16.msra.mxu1 %v925_v51 }
 0x492   :  { %v726_v19 = vadd.f32 %v4568_v5, %v725_v13 }
 0x494   :  { %v730_v23 = vsel %vm729_vm2, %v4568_v5, %v726_v19 }
 0x495   :  { %v735_v15 = vsel %vm732_vm3, %v734_v21, %v730_v23 }
 0x496   :  { %v737_v30 = vmul.f32 %v5321_v34, %v735_v15 }
 0x498   :  { %v738_v31 = vpack.c.bf16 %v737_v30, %v736_v24 }
 0x49a   :  { %4107 = vmatmul.msk.bf16.vlgmr.msrb.gmra.mxu1 %vm371_vm14, %v738_v31 }
 0x4c5   :  { %v800_v32 = vpop.xlane.xlu2 %799 }
 0x4c6   :  { %4569 = vrcp.f32 %v800_v32  ;;  %v824_v29 = vand.u32 2147483647, %v800_v32  ;;  %vm820_vm6 = vweird.f32 %v800_v32  ;;  %v826_v56 = vand.u32 2147483648, %v800_v32 }
 0x4c8   :  { %vm5362_vm8 = vcmp.eq.f32.partialorder %v824_v29, 8.507059e+37  ;;  %v827_v8 = vor.u32 1.1754944e-38, %v826_v56 }
 0x4cc   :  { %v4570_v20 = vpop.eup %4569 }
 0x4cd   :  { %v833_v33 = vpop.permute.xlu2 %832  ;;  %v816_v46 = vmul.f32 %v4570_v20, %v800_v32  ;;  %vm821_vm4 = vweird.f32 %v4570_v20 }
 0x4ce   :  { %845 = vmatpush.bf16.msra.mxu2 %v833_v33  ;;  %vm5358_vm7 = vmor %vm820_vm6, %vm821_vm4  ;;  %vm663_vm6 = vcmask 261120  }
 0x4cf   :  { %v817_v53 = vsub.f32 1.0, %v816_v46 }
 0x4d1   :  { %v818_v42 = vmul.f32 %v4570_v20, %v817_v53 }
 0x4d3   :  { %v890_v18 = vpop.xlane.xlu1 %889  ;;  %v819_v47 = vadd.f32 %v4570_v20, %v818_v42 }
 0x4d4   :  { %4571 = vrcp.f32 %v890_v18  ;;  %v905_v57 = vand.u32 2147483648, %v890_v18  ;;  %vm899_vm9 = vweird.f32 %v890_v18  ;;  %v903_v60 = vand.u32 2147483647, %v890_v18 }
 0x4d5   :  { %v823_v63 = vsel %vm5358_vm7, %v4570_v20, %v819_v47 }
 0x4d6   :  { %v906_v51 = vor.u32 1.1754944e-38, %v905_v57  ;;  %vm904_vm13 = vcmp.eq.f32.partialorder %v903_v60, 8.507059e+37  ;;  %v828_v13 = vsel %vm5362_vm8, %v827_v8, %v823_v63 }
 0x4d7   :  { %v830_v24 = vmul.f32 %v5328_v39, %v828_v13 }
 0x4da   :  { %v4572_v38 = vpop.eup %4571 }
 0x4db   :  { %v895_v40 = vmul.f32 %v4572_v38, %v890_v18  ;;  %v893_v9 = vpop.xlane.xlu0 %892  ;;  %v797_v41 = vpop.xlane.xlu1 %796  ;;  %vm900_vm5 = vweird.f32 %v4572_v38 }
 0x4dc   :  { %4573 = vrcp.f32 %v893_v9  ;;  %vm5368_vm10 = vmor %vm899_vm9, %vm900_vm5  ;;  %v917_v1 = vand.u32 2147483647, %v893_v9  ;;  %v919_v62 = vand.u32 2147483648, %v893_v9  ;;  %v812_v5 = vand.u32 2147483648, %v797_v41 }
 0x4dd   :  { %v896_v34 = vsub.f32 1.0, %v895_v40  ;;  %4575 = vrcp.f32 %v797_v41  ;;  %v810_v7 = vand.u32 2147483647, %v797_v41  ;;  %vm913_vm15 = vweird.f32 %v893_v9 }
 0x4de   :  { %v920_v12 = vor.u32 1.1754944e-38, %v919_v62  ;;  %vm806_vm2 = vweird.f32 %v797_v41  ;;  %vm918_vm3 = vcmp.eq.f32.partialorder %v917_v1, 8.507059e+37  ;;  %v813_v16 = vor.u32 1.1754944e-38, %v812_v5 }
 0x4df   :  { %v897_v37 = vmul.f32 %v4572_v38, %v896_v34  ;;  %vm811_vm5 = vcmp.eq.f32.partialorder %v810_v7, 8.507059e+37 }
 0x4e1   :  { %v898_v52 = vadd.f32 %v4572_v38, %v897_v37 }
 0x4e2   :  { %v4574_v54 = vpop.eup %4573 }
 0x4e3   :  { %v4576_v49 = vpop.eup %4575  ;;  %v909_v55 = vmul.f32 %v4574_v54, %v893_v9  ;;  %v902_v3 = vsel %vm5368_vm10, %v4572_v38, %v898_v52  ;;  %vm914_vm11 = vweird.f32 %v4574_v54  ;;  %v4762_v52 = vld [vmem:[#allocation2 + $0x8] sm:$0xff] }
 0x4e4   :  { %v802_v58 = vmul.f32 %v4576_v49, %v797_v41  ;;  %vm807_vm12 = vweird.f32 %v4576_v49  ;;  %v907_v11 = vsel %vm904_vm13, %v906_v51, %v902_v3  ;;  %vm915_vm1 = vmor %vm913_vm15, %vm914_vm11 }
 0x4e5   :  { %v910_v61 = vsub.f32 1.0, %v909_v55  ;;  %vm808_vm4 = vmor %vm806_vm2, %vm807_vm12  ;;  %v922_v22 = vmul.f32 %v5335_v44, %v907_v11 }
 0x4e6   :  { %v803_v2 = vsub.f32 1.0, %v802_v58 }
 0x4e7   :  { %v911_v4 = vmul.f32 %v4574_v54, %v910_v61 }
 0x4e8   :  { %v804_v6 = vmul.f32 %v4576_v49, %v803_v2 }
 0x4e9   :  { %v912_v10 = vadd.f32 %v4574_v54, %v911_v4 }
 0x4ea   :  { %v805_v36 = vadd.f32 %v4576_v49, %v804_v6 }
 0x4eb   :  { %v916_v25 = vsel %vm915_vm1, %v4574_v54, %v912_v10 }
 0x4ec   :  { %v921_v17 = vsel %vm918_vm3, %v920_v12, %v916_v25  ;;  %v809_v19 = vsel %vm808_vm4, %v4576_v49, %v805_v36  ;;  %v4763_v25 = vld [vmem:[#allocation2 + $0x10] sm:$0xff] }
 0x4ed   :  { %v814_v21 = vsel %vm811_vm5, %v813_v16, %v809_v19  ;;  %v923_v23 = vmul.f32 %v5343_v28, %v921_v17 }
 0x4ee   :  { %v829_v15 = vmul.f32 %v5341_v45, %v814_v21 }
 0x4ef   :  { %v924_v30 = vpack.c.bf16 %v923_v23, %v922_v22  ;;  %v4764_v22 = vld [vmem:[#allocation2 + $0x18] sm:$0xff] }
 0x4f0   :  { %v831_v31 = vpack.c.bf16 %v830_v24, %v829_v15  ;;  %v4144_v15 = vld [vmem:[#allocation8 + $0x50] sm:$0xf]  ;;  %v4364_v24 = vld [vmem:[#allocation8 + $0x54] sm:$0xf0] }
 0x4f1   :  { %4111 = vmatmul.msk.bf16.vlgmr.msra.gmra.mxu1 %vm371_vm14, %v924_v30  ;;  %v4363_v30 = vld [vmem:[#allocation8 + $0x54] sm:$0xf] }
 0x4f2   :  { %4109 = vmatmul.msk.bf16.vlgmr.msra.gmra.mxu2 %vm371_vm14, %v831_v31  ;;  %v4145_v31 = vor.u32 %v4364_v24, %v4144_v15 }
 0x4f3   :  { %v4421_v32 = vpop.permute.xlu1 %4420 }
 0x4f4   :  { %v4423_v33 = vunpack.i.h.bf16 %v4421_v32  ;;  %v4422_v20 = vunpack.i.l.bf16 %v4421_v32  ;;  %v4146_v32 = vld [vmem:[#allocation8 + $0x58] sm:$0xf0]  ;;  %1182 = vmatpush.bf16.msrb.mxu2 %v4145_v31 }
 0x4f6   :  { %v662_v44 = vsel %vm371_vm14, %v5349_v48, %v4423_v33  ;;  %v661_v45 = vsel %vm371_vm14, %v5339_v27, %v4422_v20  ;;  %v4501_v27 = vld [vmem:[%s6397_s5] ss:$0 sm:$0xff]  ;;  %v4149_v20 = vor.u32 %v4363_v30, %v4146_v32 }
 0x4f8   :  { %1201 = vmatpush.bf16.msrb.mxu0 %v4149_v20 }
 0x4fd   :  { %v4426_v18 = vpop.permute.xlu0 %4425 }
 0x4fe   :  { %v4428_v46 = vunpack.i.h.bf16 %v4426_v18  ;;  %v4427_v26 = vunpack.i.l.bf16 %v4426_v18 }
 0x500   :  { %v664_v39 = vsel %vm663_vm6, %v661_v45, %v4427_v26  ;;  %v665_v28 = vsel %vm663_vm6, %v662_v44, %v4428_v46  ;;  %v4136_v46 = vld [vmem:[#allocation8 + $0x40] sm:$0xf]  ;;  %v4362_v26 = vld [vmem:[#allocation8 + $0x44] sm:$0xf0]  ;;  %v4361_v45 = vld [vmem:[#allocation8 + $0x44] sm:$0xf] }
 0x501   :  { %v969_v35 = vpack.c.bf16 %v665_v28, %v664_v39  ;;  %v4137_v44 = vor.u32 %v4362_v26, %v4136_v46  ;;  %v4138_v39 = vld [vmem:[#allocation8 + $0x48] sm:$0xf0] }
 0x503   :  { %4124 = vmatmul.msk.bf16.vlgmr.msrb.gmra.mxu3 %vm175_vm0, %v969_v35  ;;  %v4141_v35 = vor.u32 %v4361_v45, %v4138_v39  ;;  %1183 = vmatpush.bf16.msrb.mxu2 %v4137_v44 }
 0x505   :  { %1202 = vmatpush.bf16.msrb.mxu0 %v4141_v35 }
 0x517   :  { %v754_v38 = vpop.f32.mrf.mxu1 }
 0x51f   :  { %v756_v53 = vpop.f32.mrf.mxu1 }
 0x56e   :  { %v938_v9 = vpop.f32.mrf.mxu1 }
 0x575   :  { %v847_v40 = vpop.f32.mrf.mxu2 }
 0x576   :  { %v940_v42 = vpop.f32.mrf.mxu1 }
 0x577   :  { %v4434_v48 = vpack.i.bf16 %v940_v42, %v938_v9  ;;  %v4359_v9 = vld [vmem:[#allocation8 + $0x34] sm:$0xf] }
 0x57d   :  { %v849_v41 = vpop.f32.mrf.mxu2 }
 0x57e   :  { %v4429_v34 = vpack.i.bf16 %v849_v41, %v847_v40  ;;  %v4360_v40 = vld [vmem:[#allocation8 + $0x34] sm:$0xf0] }
 0x580   :  { %4430 = vrot.lane.b32.xlu2 %v4429_v34, %s4994_s26  ;;  %v4130_v34 = vld [vmem:[#allocation8 + $0x38] sm:$0xf0] }
 0x586   :  { %v1004_v37 = vpop.f32.mrf.mxu3 }
 0x587   :  { %v1014_v29 = vadd.f32 %v4761_v43, %v1004_v37 }
 0x588   :  { %4435 = vrot.lane.b32.xlu2 %v4434_v48, %s5012_s0 }
 0x589   :  { %v5394_v54 = vadd.f32 %v4501_v27, %v1014_v29 }
 0x58b   :  { %v1030_v47 = vsel %vm175_vm0, %v5394_v54, 0.0 }
 0x58c   :  { %1031 = vadd.xlane.f32.xlu0 %v1030_v47 }
 0x58e   :  { %v1006_v49 = vpop.f32.mrf.mxu3 }
 0x58f   :  { %v1015_v55 = vadd.f32 %v4762_v52, %v1006_v49 }
 0x591   :  { %v5398_v56 = vadd.f32 %v4501_v27, %v1015_v55 }
 0x593   :  { %v1033_v57 = vsel %vm175_vm0, %v5398_v56, 0.0 }
 0x594   :  { %1034 = vadd.xlane.f32.xlu1 %v1033_v57 }
 0x5da   :  { %v4431_v58 = vpop.permute.xlu2 %4430 }
 0x5db   :  { %v4433_v50 = vunpack.i.h.bf16 %v4431_v58  ;;  %v4432_v59 = vunpack.i.l.bf16 %v4431_v58 }
 0x5dd   :  { %v959_v0 = vsel %vm371_vm14, %v754_v38, %v4432_v59  ;;  %v960_v1 = vsel %vm371_vm14, %v756_v53, %v4433_v50  ;;  %v4128_v53 = vld [vmem:[#allocation8 + $0x30] sm:$0xf] }
 0x5de   :  { %v4129_v41 = vor.u32 %v4360_v40, %v4128_v53 }
 0x5e0   :  { %1184 = vmatpush.bf16.msrb.mxu2 %v4129_v41 }
 0x5e2   :  { %v4436_v60 = vpop.permute.xlu2 %4435 }
 0x5e3   :  { %v4438_v61 = vunpack.i.h.bf16 %v4436_v60  ;;  %v4437_v63 = vunpack.i.l.bf16 %v4436_v60 }
 0x5e5   :  { %v961_v62 = vsel %vm663_vm6, %v959_v0, %v4437_v63  ;;  %v962_v2 = vsel %vm663_vm6, %v960_v1, %v4438_v61  ;;  %v5431_v0 = vld [vmem:[#allocation5 + $0x1] ss:$0 sm:$0xff] }
 0x5e6   :  { %v970_v3 = vpack.c.bf16 %v962_v2, %v961_v62 }
 0x5e8   :  { %4125 = vmatmul.msk.bf16.gmra.mxu3 %vm175_vm0, %v970_v3 }
 0x5ff   :  { %v1032_v4 = vpop.xlane.xlu0 %1031 }
 0x600   :  { %v1042_v5 = vmul.f32 %v1032_v4, %v5128_v14 }
 0x602   :  { %v5409_v51 = vsub.f32 %v5394_v54, %v1042_v5  ;;  %v4503_v5 = vld [vmem:[#allocation7 + $0x1] ss:$0 sm:$0xff] }
 0x604   :  { %v1050_v6 = vmul.f32 %v5409_v51, %v5409_v51 }
 0x606   :  { %v1054_v7 = vsel %vm175_vm0, %v1050_v6, 0.0 }
 0x607   :  { %1055 = vadd.xlane.f32.xlu2 %v1054_v7  ;;  %v1035_v8 = vpop.xlane.xlu1 %1034 }
 0x608   :  { %v1043_v10 = vmul.f32 %v1035_v8, %v5128_v14 }
 0x60a   :  { %v5416_v11 = vsub.f32 %v5398_v56, %v1043_v10 }
 0x60c   :  { %v1051_v12 = vmul.f32 %v5416_v11, %v5416_v11 }
 0x60e   :  { %v1057_v36 = vsel %vm175_vm0, %v1051_v12, 0.0 }
 0x60f   :  { %1058 = vadd.xlane.f32.xlu0 %v1057_v36 }
 0x66b   :  { %v1009_v13 = vpop.f32.mrf.mxu3 }
 0x66c   :  { %v1016_v16 = vadd.f32 %v4763_v25, %v1009_v13 }
 0x66e   :  { %v5421_v17 = vadd.f32 %v4501_v27, %v1016_v16 }
 0x670   :  { %v1036_v19 = vsel %vm175_vm0, %v5421_v17, 0.0 }
 0x671   :  { %1037 = vadd.xlane.f32.xlu1 %v1036_v19 }
 0x673   :  { %v1011_v21 = vpop.f32.mrf.mxu3 }
 0x674   :  { %v1017_v23 = vadd.f32 %v4764_v22, %v1011_v21 }
 0x676   :  { %v5425_v33 = vadd.f32 %v4501_v27, %v1017_v23  ;;  %v4133_v27 = vor.u32 %v4359_v9, %v4130_v34 }
 0x678   :  { %v1039_v18 = vsel %vm175_vm0, %v5425_v33, 0.0  ;;  %1203 = vmatpush.bf16.msrb.mxu0 %v4133_v27 }
 0x679   :  { %1040 = vadd.xlane.f32.xlu0 %v1039_v18 }
 0x67a   :  { %v1056_v28 = vpop.xlane.xlu2 %1055 }
 0x67b   :  { %v1066_v38 = vmul.f32 %v1056_v28, %v5128_v14 }
 0x67d   :  { %v1070_v42 = vadd.f32 1e-05, %v1066_v38 }
 0x67f   :  { %4577 = vrsqrt.f32 %v1070_v42  ;;  %vm1080_vm8 = vweird.f32 %v1070_v42 }
 0x682   :  { %v1059_v48 = vpop.xlane.xlu0 %1058 }
 0x683   :  { %v1067_v37 = vmul.f32 %v1059_v48, %v5128_v14 }
 0x685   :  { %v4578_v43 = vpop.eup %4577  ;;  %v1071_v29 = vadd.f32 1e-05, %v1067_v37 }
 0x686   :  { %v1075_v47 = vmul.f32 %v4578_v43, %v1070_v42  ;;  %vm1081_vm7 = vweird.f32 %v4578_v43 }
 0x687   :  { %4579 = vrsqrt.f32 %v1071_v29  ;;  %vm1082_vm9 = vmor %vm1080_vm8, %vm1081_vm7  ;;  %vm1090_vm11 = vweird.f32 %v1071_v29 }
 0x688   :  { %v1076_v49 = vmul.f32 %v4578_v43, %v1075_v47 }
 0x68a   :  { %v1077_v52 = vmul.f32 0.5, %v1076_v49 }
 0x68c   :  { %v1078_v55 = vsub.f32 1.5, %v1077_v52 }
 0x68d   :  { %v4580_v57 = vpop.eup %4579 }
 0x68e   :  { %v1079_v58 = vmul.f32 %v4578_v43, %v1078_v55  ;;  %v1085_v50 = vmul.f32 %v4580_v57, %v1071_v29  ;;  %vm1091_vm10 = vweird.f32 %v4580_v57 }
 0x68f   :  { %vm1092_vm12 = vmor %vm1090_vm11, %vm1091_vm10 }
 0x690   :  { %v1086_v59 = vmul.f32 %v4580_v57, %v1085_v50  ;;  %v1083_v60 = vsel %vm1082_vm9, %v4578_v43, %v1079_v58 }
 0x691   :  { %v1114_v1 = vmul.f32 %v1083_v60, %v5409_v51 }
 0x692   :  { %v1087_v61 = vmul.f32 0.5, %v1086_v59 }
 0x693   :  { %v1121_v3 = vmul.f32 %v5431_v0, %v1114_v1 }
 0x694   :  { %v1088_v63 = vsub.f32 1.5, %v1087_v61 }
 0x695   :  { %v1128_v7 = vadd.f32 %v4503_v5, %v1121_v3 }
 0x696   :  { %v1089_v62 = vmul.f32 %v4580_v57, %v1088_v63 }
 0x698   :  { %v1093_v2 = vsel %vm1092_vm12, %v4580_v57, %v1089_v62 }
 0x699   :  { %v1115_v4 = vmul.f32 %v1093_v2, %v5416_v11 }
 0x69b   :  { %v1122_v6 = vmul.f32 %v5431_v0, %v1115_v4 }
 0x69d   :  { %v1129_v8 = vadd.f32 %v4503_v5, %v1122_v6 }
 0x69f   :  { %v1139_v10 = vpack.c.bf16 %v1129_v8, %v1128_v7 }
 0x6a1   :  { %4150 = vmatmul.msk.bf16.vlgmr.msrb.gmra.mxu2 %vm175_vm0, %v1139_v10  ;;  %4152 = vmatmul.msk.bf16.vlgmr.msrb.gmra.mxu0 %vm175_vm0, %v1139_v10 }
 0x6e4   :  { %v1038_v12 = vpop.xlane.xlu1 %1037 }
 0x6e5   :  { %v1044_v51 = vmul.f32 %v1038_v12, %v5128_v14 }
 0x6e7   :  { %v1048_v36 = vsub.f32 %v5421_v17, %v1044_v51 }
 0x6e9   :  { %v1052_v13 = vmul.f32 %v1048_v36, %v1048_v36 }
 0x6eb   :  { %v1060_v25 = vsel %vm175_vm0, %v1052_v13, 0.0 }
 0x6ec   :  { %1061 = vadd.xlane.f32.xlu1 %v1060_v25  ;;  %v1041_v11 = vpop.xlane.xlu0 %1040 }
 0x6ed   :  { %v1045_v16 = vmul.f32 %v1041_v11, %v5128_v14 }
 0x6ef   :  { %v1049_v19 = vsub.f32 %v5425_v33, %v1045_v16 }
 0x6f1   :  { %v1053_v21 = vmul.f32 %v1049_v19, %v1049_v19 }
 0x6f3   :  { %v1063_v22 = vsel %vm175_vm0, %v1053_v21, 0.0 }
 0x6f4   :  { %1064 = vadd.xlane.f32.xlu0 %v1063_v22 }
 0x724   :  { %v1186_v23 = vpop.f32.mrf.mxu2 }
 0x72c   :  { %v1188_v15 = vpop.f32.mrf.mxu2 }
 0x72d   :  { %v5445_v24 = vpack.c.bf16 %v1188_v15, %v1186_v23 }
 0x72f   :  { %1217 = vrot.lane.b32.xlu2 %v5445_v24, %s5009_s10  ;;  %1310 = vrot.lane.b32.xlu1 %v5445_v24, %s5003_s1 }
 0x730   :  { %1308 = vrot.lane.b32.xlu0 %v5445_v24, %s5008_s8 }
 0x737   :  { %1403 = vrot.lane.b32.xlu2 %v5445_v24, %s5010_s25 }
 0x738   :  { %1401 = vrot.lane.b32.xlu0 %v5445_v24, %s5011_s28 }
 0x75f   :  { %v1062_v30 = vpop.xlane.xlu1 %1061 }
 0x760   :  { %v1068_v31 = vmul.f32 %v1062_v30, %v5128_v14 }
 0x762   :  { %v1072_v32 = vadd.f32 1e-05, %v1068_v31 }
 0x764   :  { %4581 = vrsqrt.f32 %v1072_v32  ;;  %vm1100_vm15 = vweird.f32 %v1072_v32 }
 0x767   :  { %v1065_v20 = vpop.xlane.xlu0 %1064 }
 0x768   :  { %v1069_v18 = vmul.f32 %v1065_v20, %v5128_v14 }
 0x76a   :  { %v4582_v46 = vpop.eup %4581  ;;  %v1073_v26 = vadd.f32 1e-05, %v1069_v18 }
 0x76b   :  { %v1095_v44 = vmul.f32 %v4582_v46, %v1072_v32  ;;  %vm1101_vm13 = vweird.f32 %v4582_v46 }
 0x76c   :  { %4583 = vrsqrt.f32 %v1073_v26  ;;  %vm1102_vm1 = vmor %vm1100_vm15, %vm1101_vm13  ;;  %vm1110_vm3 = vweird.f32 %v1073_v26 }
 0x76d   :  { %v1096_v45 = vmul.f32 %v4582_v46, %v1095_v44 }
 0x76f   :  { %v1097_v39 = vmul.f32 0.5, %v1096_v45 }
 0x771   :  { %v1098_v28 = vsub.f32 1.5, %v1097_v39 }
 0x772   :  { %v4584_v35 = vpop.eup %4583 }
 0x773   :  { %v1099_v38 = vmul.f32 %v4582_v46, %v1098_v28  ;;  %v1105_v53 = vmul.f32 %v4584_v35, %v1073_v26  ;;  %vm1111_vm2 = vweird.f32 %v4584_v35 }
 0x774   :  { %vm1112_vm4 = vmor %vm1110_vm3, %vm1111_vm2 }
 0x775   :  { %v1106_v40 = vmul.f32 %v4584_v35, %v1105_v53  ;;  %v1103_v9 = vsel %vm1102_vm1, %v4582_v46, %v1099_v38 }
 0x776   :  { %v1116_v42 = vmul.f32 %v1103_v9, %v1048_v36 }
 0x777   :  { %v1107_v41 = vmul.f32 0.5, %v1106_v40 }
 0x778   :  { %v1123_v43 = vmul.f32 %v5431_v0, %v1116_v42 }
 0x779   :  { %v1108_v34 = vsub.f32 1.5, %v1107_v41 }
 0x77a   :  { %v1130_v47 = vadd.f32 %v4503_v5, %v1123_v43 }
 0x77b   :  { %v1109_v27 = vmul.f32 %v4584_v35, %v1108_v34 }
 0x77d   :  { %v1113_v48 = vsel %vm1112_vm4, %v4584_v35, %v1109_v27 }
 0x77e   :  { %v1117_v37 = vmul.f32 %v1113_v48, %v1049_v19 }
 0x780   :  { %v1124_v29 = vmul.f32 %v5431_v0, %v1117_v37  ;;  %v5470_v0 = vpop.f32.mrf.mxu0 }
 0x782   :  { %v1131_v49 = vadd.f32 %v4503_v5, %v1124_v29 }
 0x784   :  { %v1140_v52 = vpack.c.bf16 %v1131_v49, %v1130_v47 }
 0x786   :  { %4151 = vmatmul.msk.bf16.gmra.mxu2 %vm175_vm0, %v1140_v52  ;;  %4153 = vmatmul.msk.bf16.gmra.mxu0 %vm175_vm0, %v1140_v52 }
 0x788   :  { %v5472_v1 = vpop.f32.mrf.mxu0 }
 0x789   :  { %v1218_v55 = vpop.permute.xlu2 %1217  ;;  %v1474_v37 = vpack.c.bf16 %v5472_v1, %v5470_v0 }
 0x78a   :  { %v1223_v57 = vsel %vm371_vm14, %v1218_v55, 0 }
 0x78b   :  { %1232 = vmatpush.bf16.xpose.msrb.mxu1 %v1223_v57 }
 0x791   :  { %v1404_v58 = vpop.permute.xlu2 %1403 }
 0x792   :  { %v1409_v50 = vsel %vm371_vm14, %v1404_v58, 0  ;;  %4154 = vmatmul.msk.bf16.vlgmr.msrb.gmra.mxu1 %vm371_vm14, %v5445_v24 }
 0x793   :  { %1418 = vmatpush.bf16.xpose.msra.mxu0 %v1409_v50 }
 0x7a1   :  { %v1311_v59 = vpop.permute.xlu1 %1310 }
 0x7a2   :  { %v1316_v60 = vsel %vm371_vm14, %v1311_v59, 0  ;;  %v1309_v61 = vpop.permute.xlu0 %1308 }
 0x7a3   :  { %1325 = vmatpush.bf16.xpose.msra.mxu3 %v1316_v60 }
 0x7aa   :  { %v1402_v63 = vpop.permute.xlu0 %1401  ;;  %4156 = vmatmul.msk.bf16.vlgmr.msra.gmra.mxu3 %vm371_vm14, %v1309_v61 }
 0x7ab   :  { %4158 = vmatmul.msk.bf16.vlgmr.msra.gmra.mxu0 %vm371_vm14, %v1402_v63 }
 0x803   :  { %v5475_v3 = vpop.f32.mrf.mxu0 }
 0x809   :  { %v1191_v41 = vpop.f32.mrf.mxu2 }
 0x80b   :  { %v5478_v6 = vpop.f32.mrf.mxu0 }
 0x80f   :  { %v1234_v62 = vpop.f32.mrf.mxu1 }
 0x810   :  { %v1239_v2 = vsel %vm371_vm14, %v1234_v62, -inf }
 0x811   :  { %1240 = vmax.xlane.f32.xlu1 %v1239_v2  ;;  %v1193_v27 = vpop.f32.mrf.mxu2 }
 0x812   :  { %v5506_v48 = vpack.c.bf16 %v1193_v27, %v1191_v41 }
 0x817   :  { %v1236_v4 = vpop.f32.mrf.mxu1 }
 0x818   :  { %v1242_v5 = vsel %vm371_vm14, %v1236_v4, -inf }
 0x819   :  { %1243 = vmax.xlane.f32.xlu2 %v1242_v5 }
 0x828   :  { %v1420_v7 = vpop.f32.mrf.mxu0 }
 0x829   :  { %v1425_v8 = vsel %vm371_vm14, %v1420_v7, -inf }
 0x82a   :  { %1426 = vmax.xlane.f32.xlu2 %v1425_v8 }
 0x82d   :  { %v1327_v10 = vpop.f32.mrf.mxu3 }
 0x82e   :  { %v1332_v12 = vsel %vm371_vm14, %v1327_v10, -inf }
 0x82f   :  { %1333 = vmax.xlane.f32.xlu0 %v1332_v12 }
 0x830   :  { %v1422_v51 = vpop.f32.mrf.mxu0 }
 0x831   :  { %v1428_v25 = vsel %vm371_vm14, %v1422_v51, -inf }
 0x835   :  { %v1329_v36 = vpop.f32.mrf.mxu3 }
 0x836   :  { %v1335_v13 = vsel %vm371_vm14, %v1329_v36, -inf }
 0x837   :  { %1336 = vmax.xlane.f32.xlu1 %v1335_v13  ;;  %1429 = vmax.xlane.f32.xlu0 %v1428_v25 }
 0x850   :  { %1288 = vrot.lane.b32.xlu1 %v5445_v24, %s5012_s0 }
 0x884   :  { %v1241_v11 = vpop.xlane.xlu1 %1240 }
 0x885   :  { %v1245_v16 = vsub.f32 %v1234_v62, %v1241_v11 }
 0x887   :  { %v1247_v19 = vmul.f32 1.442695, %v1245_v16 }
 0x889   :  { %4585 = vpow2.f32 %v1247_v19 }
 0x88c   :  { %v1244_v23 = vpop.xlane.xlu2 %1243 }
 0x88d   :  { %v1246_v31 = vsub.f32 %v1236_v4, %v1244_v23 }
 0x88f   :  { %v5486_v21 = vpop.eup %4585  ;;  %v1249_v46 = vmul.f32 1.442695, %v1246_v31 }
 0x890   :  { %v1251_v22 = vsel %vm371_vm14, %v5486_v21, 0.0 }
 0x891   :  { %1252 = vadd.xlane.f32.xlu1 %v1251_v22 }
 0x89d   :  { %v1427_v15 = vpop.xlane.xlu2 %1426 }
 0x89e   :  { %v1431_v30 = vsub.f32 %v1420_v7, %v1427_v15 }
 0x8a0   :  { %v1433_v32 = vmul.f32 1.442695, %v1431_v30 }
 0x8a2   :  { %4587 = vpow2.f32 %v1433_v32  ;;  %v1334_v20 = vpop.xlane.xlu0 %1333 }
 0x8a3   :  { %v1338_v18 = vsub.f32 %v1327_v10, %v1334_v20 }
 0x8a5   :  { %v1340_v26 = vmul.f32 1.442695, %v1338_v18 }
 0x8a7   :  { %4589 = vpow2.f32 %v1340_v26 }
 0x8a8   :  { %v5490_v44 = vpop.eup %4587  ;;  %4591 = vpow2.f32 %v1249_v46 }
 0x8a9   :  { %v1437_v45 = vsel %vm371_vm14, %v5490_v44, 0.0 }
 0x8aa   :  { %1438 = vadd.xlane.f32.xlu2 %v1437_v45  ;;  %v1337_v39 = vpop.xlane.xlu1 %1336  ;;  %v1430_v29 = vpop.xlane.xlu0 %1429 }
 0x8ab   :  { %v1339_v28 = vsub.f32 %v1329_v36, %v1337_v39  ;;  %v1432_v47 = vsub.f32 %v1422_v51, %v1430_v29 }
 0x8ad   :  { %v5494_v35 = vpop.eup %4589  ;;  %v1342_v38 = vmul.f32 1.442695, %v1339_v28  ;;  %v1435_v49 = vmul.f32 1.442695, %v1432_v47 }
 0x8ae   :  { %v5496_v53 = vpop.eup %4591  ;;  %v1344_v40 = vsel %vm371_vm14, %v5494_v35, 0.0 }
 0x8af   :  { %4593 = vpow2.f32 %v1342_v38  ;;  %1345 = vadd.xlane.f32.xlu0 %v1344_v40  ;;  %v1254_v9 = vsel %vm371_vm14, %v5496_v53, 0.0 }
 0x8b0   :  { %4595 = vpow2.f32 %v1435_v49 }
 0x8b2   :  { %1255 = vadd.xlane.f32.xlu2 %v1254_v9 }
 0x8b5   :  { %v5502_v34 = vpop.eup %4593 }
 0x8b6   :  { %v1347_v42 = vsel %vm371_vm14, %v5502_v34, 0.0  ;;  %v5520_v52 = vpop.eup %4595 }
 0x8b7   :  { %1348 = vadd.xlane.f32.xlu1 %v1347_v42  ;;  %v1440_v55 = vsel %vm371_vm14, %v5520_v52, 0.0 }
 0x8c2   :  { %v1289_v43 = vpop.permute.xlu1 %1288 }
 0x8c3   :  { %1301 = vmatpush.bf16.msra.mxu1 %v1289_v43  ;;  %1514 = vrot.lane.b32.xlu0 %v5506_v48, %s5009_s10 }
 0x8c7   :  { %1485 = vmatpush.bf16.msrb.mxu1 %v1474_v37 }
 0x8ca   :  { %1381 = vrot.lane.b32.xlu2 %v5445_v24, %s4994_s26 }
 0x8d0   :  { %1700 = vrot.lane.b32.xlu1 %v5506_v48, %s5010_s25 }
 0x8d2   :  { %1607 = vrot.lane.b32.xlu2 %v5506_v48, %s5003_s1 }
 0x8d8   :  { %1605 = vrot.lane.b32.xlu1 %v5506_v48, %s5008_s8 }
 0x8ed   :  { %1441 = vadd.xlane.f32.xlu0 %v1440_v55 }
 0x901   :  { %1698 = vrot.lane.b32.xlu0 %v5506_v48, %s5011_s28 }
 0x904   :  { %v1253_v24 = vpop.xlane.xlu1 %1252 }
 0x905   :  { %4597 = vrcp.f32 %v1253_v24  ;;  %v1268_v5 = vand.u32 2147483648, %v1253_v24  ;;  %vm1262_vm7 = vweird.f32 %v1253_v24  ;;  %v1266_v8 = vand.u32 2147483647, %v1253_v24 }
 0x907   :  { %v1269_v25 = vor.u32 1.1754944e-38, %v1268_v5  ;;  %vm1267_vm10 = vcmp.eq.f32.partialorder %v1266_v8, 8.507059e+37 }
 0x90b   :  { %v4598_v57 = vpop.eup %4597 }
 0x90c   :  { %v1258_v50 = vmul.f32 %v4598_v57, %v1253_v24  ;;  %vm1263_vm5 = vweird.f32 %v4598_v57 }
 0x90d   :  { %vm1264_vm8 = vmor %vm1262_vm7, %vm1263_vm5 }
 0x90e   :  { %v1259_v60 = vsub.f32 1.0, %v1258_v50 }
 0x910   :  { %v1260_v63 = vmul.f32 %v4598_v57, %v1259_v60 }
 0x912   :  { %v1261_v2 = vadd.f32 %v4598_v57, %v1260_v63 }
 0x914   :  { %v1265_v36 = vsel %vm1264_vm8, %v4598_v57, %v1261_v2 }
 0x915   :  { %v1270_v15 = vsel %vm1267_vm10, %v1269_v25, %v1265_v36 }
 0x916   :  { %v1285_v43 = vmul.f32 %v5486_v21, %v1270_v15 }
 0x91d   :  { %v5526_v58 = vpop.xlane.xlu2 %1438 }
 0x91e   :  { %v1454_v8 = vand.u32 2147483648, %v5526_v58  ;;  %vm1448_vm10 = vweird.f32 %v5526_v58 }
 0x922   :  { %v1346_v59 = vpop.xlane.xlu0 %1345 }
 0x923   :  { %4599 = vrcp.f32 %v1346_v59  ;;  %vm1355_vm12 = vweird.f32 %v1346_v59  ;;  %v1359_v32 = vand.u32 2147483647, %v1346_v59  ;;  %v1361_v20 = vand.u32 2147483648, %v1346_v59 }
 0x925   :  { %v1256_v61 = vpop.xlane.xlu2 %1255  ;;  %v1362_v29 = vor.u32 1.1754944e-38, %v1361_v20  ;;  %vm1360_vm4 = vcmp.eq.f32.partialorder %v1359_v32, 8.507059e+37 }
 0x926   :  { %4601 = vrcp.f32 %v1256_v61  ;;  %v1280_v11 = vand.u32 2147483647, %v1256_v61  ;;  %v1282_v16 = vand.u32 2147483648, %v1256_v61  ;;  %vm1276_vm15 = vweird.f32 %v1256_v61 }
 0x928   :  { %vm1281_vm2 = vcmp.eq.f32.partialorder %v1280_v11, 8.507059e+37  ;;  %v1283_v46 = vor.u32 1.1754944e-38, %v1282_v16  ;;  %v1455_v11 = vor.u32 1.1754944e-38, %v1454_v8 }
 0x929   :  { %v4600_v0 = vpop.eup %4599 }
 0x92a   :  { %v1351_v1 = vmul.f32 %v4600_v0, %v1346_v59  ;;  %v1349_v62 = vpop.xlane.xlu1 %1348  ;;  %vm1356_vm9 = vweird.f32 %v4600_v0 }
 0x92b   :  { %4603 = vrcp.f32 %v1349_v62  ;;  %vm5528_vm13 = vmor %vm1355_vm12, %vm1356_vm9  ;;  %v1373_v45 = vand.u32 2147483647, %v1349_v62  ;;  %v1375_v38 = vand.u32 2147483648, %v1349_v62  ;;  %vm1369_vm5 = vweird.f32 %v1349_v62 }
 0x92c   :  { %v4602_v4 = vpop.eup %4601  ;;  %v1352_v7 = vsub.f32 1.0, %v1351_v1  ;;  %4605 = vrcp.f32 %v5526_v58 }
 0x92d   :  { %v1272_v10 = vmul.f32 %v4602_v4, %v1256_v61  ;;  %v1382_v12 = vpop.permute.xlu2 %1381  ;;  %vm1277_vm11 = vweird.f32 %v4602_v4  ;;  %v1376_v24 = vor.u32 1.1754944e-38, %v1375_v38  ;;  %vm1374_vm8 = vcmp.eq.f32.partialorder %v1373_v45, 8.507059e+37 }
 0x92e   :  { %v1353_v51 = vmul.f32 %v4600_v0, %v1352_v7  ;;  %1394 = vmatpush.bf16.msra.mxu2 %v1382_v12  ;;  %vm1278_vm1 = vmor %vm1276_vm15, %vm1277_vm11 }
 0x92f   :  { %v1273_v13 = vsub.f32 1.0, %v1272_v10  ;;  %v1452_v10 = vand.u32 2147483647, %v5526_v58 }
 0x930   :  { %v1354_v22 = vadd.f32 %v4600_v0, %v1353_v51 }
 0x931   :  { %v4604_v19 = vpop.eup %4603  ;;  %v1274_v23 = vmul.f32 %v4602_v4, %v1273_v13 }
 0x932   :  { %v1365_v30 = vmul.f32 %v4604_v19, %v1349_v62  ;;  %v1358_v39 = vsel %vm5528_vm13, %v4600_v0, %v1354_v22  ;;  %vm1370_vm3 = vweird.f32 %v4604_v19  ;;  %v4606_v1 = vpop.eup %4605  ;;  %vm1453_vm13 = vcmp.eq.f32.partialorder %v1452_v10, 8.507059e+37 }
 0x933   :  { %v1275_v18 = vadd.f32 %v4602_v4, %v1274_v23  ;;  %v1363_v55 = vsel %vm1360_vm4, %v1362_v29, %v1358_v39  ;;  %vm1371_vm7 = vmor %vm1369_vm5, %vm1370_vm3  ;;  %vm1449_vm9 = vweird.f32 %v4606_v1  ;;  %v4367_v29 = vld [vmem:[#allocation10 + $0x28] sm:$0xff] }
 0x934   :  { %v1366_v26 = vsub.f32 1.0, %v1365_v30  ;;  %v1378_v21 = vmul.f32 %v5494_v35, %v1363_v55  ;;  %v1444_v35 = vmul.f32 %v4606_v1, %v5526_v58  ;;  %vm1450_vm11 = vmor %vm1448_vm10, %vm1449_vm9 }
 0x935   :  { %v1279_v28 = vsel %vm1278_vm1, %v4602_v4, %v1275_v18  ;;  %v1608_v40 = vpop.permute.xlu2 %1607  ;;  %v1515_v9 = vpop.permute.xlu0 %1514 }
 0x936   :  { %v1284_v41 = vsel %vm1281_vm2, %v1283_v46, %v1279_v28  ;;  %v1367_v42 = vmul.f32 %v4604_v19, %v1366_v26  ;;  %v1613_v27 = vsel %vm371_vm14, %v1608_v40, 0  ;;  %v1520_v37 = vsel %vm371_vm14, %v1515_v9, 0 }
 0x937   :  { %v1286_v47 = vmul.f32 %v5496_v53, %v1284_v41  ;;  %1622 = vmatpush.bf16.xpose.msrb.mxu0 %v1613_v27  ;;  %1529 = vmatpush.bf16.xpose.msrb.mxu3 %v1520_v37  ;;  %v1445_v62 = vsub.f32 1.0, %v1444_v35 }
 0x938   :  { %v1368_v49 = vadd.f32 %v4604_v19, %v1367_v42 }
 0x939   :  { %v1287_v57 = vpack.c.bf16 %v1286_v47, %v1285_v43  ;;  %v1446_v2 = vmul.f32 %v4606_v1, %v1445_v62  ;;  %v4366_v47 = vld [vmem:[#allocation10 + $0x20] sm:$0xff] }
 0x93a   :  { %v1372_v50 = vsel %vm1371_vm7, %v4604_v19, %v1368_v49 }
 0x93b   :  { %v1377_v59 = vsel %vm1374_vm8, %v1376_v24, %v1372_v50  ;;  %4155 = vmatmul.msk.bf16.vlgmr.msra.gmra.mxu1 %vm371_vm14, %v1287_v57  ;;  %v1447_v5 = vadd.f32 %v4606_v1, %v1446_v2 }
 0x93c   :  { %v1379_v60 = vmul.f32 %v5502_v34, %v1377_v59 }
 0x93d   :  { %v1451_v36 = vsel %vm1450_vm11, %v4606_v1, %v1447_v5 }
 0x93e   :  { %4160 = vmatmul.msk.bf16.vlgmr.msrb.gmra.mxu3 %vm371_vm14, %v5506_v48  ;;  %v1380_v53 = vpack.c.bf16 %v1379_v60, %v1378_v21  ;;  %v1456_v19 = vsel %vm1453_vm13, %v1455_v11, %v1451_v36  ;;  %v4365_v21 = vld [vmem:[#allocation10 + $0x18] sm:$0xff] }
 0x93f   :  { %v1471_v58 = vmul.f32 %v5490_v44, %v1456_v19  ;;  %1847 = vmatpush.bf16.msra.mxu0 %v4367_v29 }
 0x940   :  { %4157 = vmatmul.msk.bf16.vlgmr.msra.gmra.mxu2 %vm371_vm14, %v1380_v53 }
 0x942   :  { %v1701_v61 = vpop.permute.xlu1 %1700 }
 0x943   :  { %v1706_v63 = vsel %vm371_vm14, %v1701_v61, 0  ;;  %1848 = vmatpush.bf16.msra.mxu0 %v4366_v47 }
 0x944   :  { %1715 = vmatpush.bf16.xpose.msra.mxu3 %v1706_v63 }
 0x947   :  { %1849 = vmatpush.bf16.msra.mxu0 %v4365_v21 }
 0x94a   :  { %v1606_v0 = vpop.permute.xlu1 %1605 }
 0x94b   :  { %4162 = vmatmul.msk.bf16.vlgmr.msrb.gmra.mxu0 %vm371_vm14, %v1606_v0 }
 0x960   :  { %v1442_v34 = vpop.xlane.xlu0 %1441 }
 0x961   :  { %4607 = vrcp.f32 %v1442_v34  ;;  %v1468_v51 = vand.u32 2147483648, %v1442_v34  ;;  %v1466_v25 = vand.u32 2147483647, %v1442_v34  ;;  %vm1462_vm15 = vweird.f32 %v1442_v34 }
 0x963   :  { %v1469_v22 = vor.u32 1.1754944e-38, %v1468_v51  ;;  %vm1467_vm2 = vcmp.eq.f32.partialorder %v1466_v25, 8.507059e+37 }
 0x967   :  { %v4608_v4 = vpop.eup %4607 }
 0x968   :  { %v1458_v7 = vmul.f32 %v4608_v4, %v1442_v34  ;;  %vm1463_vm12 = vweird.f32 %v4608_v4 }
 0x969   :  { %vm1464_vm1 = vmor %vm1462_vm15, %vm1463_vm12 }
 0x96a   :  { %v1459_v12 = vsub.f32 1.0, %v1458_v7 }
 0x96c   :  { %v1460_v13 = vmul.f32 %v4608_v4, %v1459_v12 }
 0x96e   :  { %v1461_v16 = vadd.f32 %v4608_v4, %v1460_v13 }
 0x970   :  { %v1465_v23 = vsel %vm1464_vm1, %v4608_v4, %v1461_v16 }
 0x971   :  { %v1470_v15 = vsel %vm1467_vm2, %v1469_v22, %v1465_v23 }
 0x972   :  { %v1472_v30 = vmul.f32 %v5520_v52, %v1470_v15 }
 0x973   :  { %v1699_v31 = vpop.permute.xlu0 %1698 }
 0x974   :  { %4164 = vmatmul.msk.bf16.vlgmr.msra.gmra.mxu3 %vm371_vm14, %v1699_v31  ;;  %v1473_v32 = vpack.c.bf16 %v1472_v30, %v1471_v58 }
 0x976   :  { %4159 = vmatmul.msk.bf16.vlgmr.msrb.gmra.mxu1 %vm371_vm14, %v1473_v32 }
 0x9b8   :  { %v1303_v39 = vpop.f32.mrf.mxu1 }
 0x9c0   :  { %v1305_v28 = vpop.f32.mrf.mxu1 }
 0x9c1   :  { %v1531_v20 = vpop.f32.mrf.mxu3 }
 0x9c2   :  { %v1536_v18 = vsel %vm371_vm14, %v1531_v20, -inf }
 0x9c3   :  { %v1396_v46 = vpop.f32.mrf.mxu2  ;;  %1537 = vmax.xlane.f32.xlu1 %v1536_v18 }
 0x9c8   :  { %v1624_v41 = vpop.f32.mrf.mxu0 }
 0x9c9   :  { %v1533_v52 = vpop.f32.mrf.mxu3  ;;  %v1629_v37 = vsel %vm371_vm14, %v1624_v41, -inf }
 0x9ca   :  { %v1539_v40 = vsel %vm371_vm14, %v1533_v52, -inf }
 0x9cb   :  { %v1398_v26 = vpop.f32.mrf.mxu2 }
 0x9cc   :  { %v4439_v45 = vpack.i.bf16 %v1398_v26, %v1396_v46 }
 0x9ce   :  { %4440 = vrot.lane.b32.xlu0 %v4439_v45, %s4994_s26 }
 0x9d0   :  { %v1626_v55 = vpop.f32.mrf.mxu0 }
 0x9d1   :  { %v1632_v24 = vsel %vm371_vm14, %v1626_v55, -inf }
 0x9f3   :  { %v1487_v38 = vpop.f32.mrf.mxu1 }
 0x9f7   :  { %v1717_v44 = vpop.f32.mrf.mxu3 }
 0x9f8   :  { %1540 = vmax.xlane.f32.xlu0 %v1539_v40  ;;  %v1722_v49 = vsel %vm371_vm14, %v1717_v44, -inf }
 0x9fb   :  { %v1489_v9 = vpop.f32.mrf.mxu1 }
 0x9fc   :  { %v4444_v42 = vpack.i.bf16 %v1489_v9, %v1487_v38  ;;  %v5600_v38 = vld [vmem:[%s6397_s5 + $0x1] ss:$0 sm:$0xff] }
 0x9fe   :  { %4445 = vrot.lane.b32.xlu2 %v4444_v42, %s5012_s0 }
 0x9ff   :  { %v1719_v27 = vpop.f32.mrf.mxu3 }
 0xa00   :  { %1630 = vmax.xlane.f32.xlu0 %v1629_v37  ;;  %v1725_v43 = vsel %vm371_vm14, %v1719_v27, -inf }
 0xa01   :  { %1726 = vmax.xlane.f32.xlu1 %v1725_v43 }
 0xa27   :  { %1723 = vmax.xlane.f32.xlu2 %v1722_v49 }
 0xa2f   :  { %1633 = vmax.xlane.f32.xlu2 %v1632_v24 }
 0xa36   :  { %v1538_v57 = vpop.xlane.xlu1 %1537 }
 0xa37   :  { %v1542_v50 = vsub.f32 %v1531_v20, %v1538_v57 }
 0xa39   :  { %v1544_v59 = vmul.f32 1.442695, %v1542_v50 }
 0xa3b   :  { %4609 = vpow2.f32 %v1544_v59 }
 0xa40   :  { %v4441_v61 = vpop.permute.xlu0 %4440 }
 0xa41   :  { %v5564_v60 = vpop.eup %4609  ;;  %v4443_v63 = vunpack.i.h.bf16 %v4441_v61  ;;  %v4442_v0 = vunpack.i.l.bf16 %v4441_v61 }
 0xa42   :  { %v1548_v53 = vsel %vm371_vm14, %v5564_v60, 0.0 }
 0xa43   :  { %1549 = vadd.xlane.f32.xlu1 %v1548_v53  ;;  %v1509_v34 = vsel %vm371_vm14, %v1305_v28, %v4443_v63  ;;  %v1508_v2 = vsel %vm371_vm14, %v1303_v39, %v4442_v0 }
 0xa58   :  { %v4446_v1 = vpop.permute.xlu2 %4445 }
 0xa59   :  { %v4448_v35 = vunpack.i.h.bf16 %v4446_v1  ;;  %v4447_v62 = vunpack.i.l.bf16 %v4446_v1 }
 0xa5b   :  { %v1510_v4 = vsel %vm663_vm6, %v1508_v2, %v4447_v62  ;;  %v1511_v5 = vsel %vm663_vm6, %v1509_v34, %v4448_v35 }
 0xa5c   :  { %v1816_v7 = vpack.c.bf16 %v1511_v5, %v1510_v4 }
 0xa5e   :  { %4178 = vmatmul.msk.bf16.vlgmr.msra.gmra.mxu0 %vm175_vm0, %v1816_v7 }
 0xa6b   :  { %v1541_v8 = vpop.xlane.xlu0 %1540 }
 0xa6c   :  { %v1543_v10 = vsub.f32 %v1533_v52, %v1541_v8  ;;  %v1771_v8 = vpack.c.bf16 %v5478_v6, %v5475_v3 }
 0xa6e   :  { %v1546_v12 = vmul.f32 1.442695, %v1543_v10 }
 0xa70   :  { %4611 = vpow2.f32 %v1546_v12 }
 0xa73   :  { %v1631_v22 = vpop.xlane.xlu0 %1630 }
 0xa74   :  { %v1727_v51 = vpop.xlane.xlu1 %1726  ;;  %v1635_v30 = vsub.f32 %v1624_v41, %v1631_v22 }
 0xa75   :  { %v1729_v36 = vsub.f32 %v1719_v27, %v1727_v51 }
 0xa76   :  { %v5573_v13 = vpop.eup %4611  ;;  %v1637_v31 = vmul.f32 1.442695, %v1635_v30 }
 0xa77   :  { %v1732_v25 = vmul.f32 1.442695, %v1729_v36  ;;  %v1551_v11 = vsel %vm371_vm14, %v5573_v13, 0.0 }
 0xa78   :  { %1552 = vadd.xlane.f32.xlu0 %v1551_v11 }
 0xa79   :  { %4613 = vpow2.f32 %v1732_v25 }
 0xa7f   :  { %v5577_v16 = vpop.eup %4613 }
 0xa80   :  { %v1737_v19 = vsel %vm371_vm14, %v5577_v16, 0.0 }
 0xa81   :  { %1738 = vadd.xlane.f32.xlu1 %v1737_v19 }
 0xa8c   :  { %1585 = vrot.lane.b32.xlu0 %v5506_v48, %s5012_s0 }
 0xa9a   :  { %v1724_v23 = vpop.xlane.xlu2 %1723 }
 0xa9b   :  { %v1728_v15 = vsub.f32 %v1717_v44, %v1724_v23 }
 0xa9d   :  { %v1730_v58 = vmul.f32 1.442695, %v1728_v15 }
 0xa9f   :  { %4615 = vpow2.f32 %v1730_v58 }
 0xaa0   :  { %4617 = vpow2.f32 %v1637_v31 }
 0xaa2   :  { %v1634_v32 = vpop.xlane.xlu2 %1633 }
 0xaa3   :  { %v1636_v20 = vsub.f32 %v1626_v55, %v1634_v32 }
 0xaa5   :  { %v5583_v18 = vpop.eup %4615  ;;  %v1639_v46 = vmul.f32 1.442695, %v1636_v20 }
 0xaa6   :  { %v1734_v26 = vsel %vm371_vm14, %v5583_v18, 0.0  ;;  %v5587_v45 = vpop.eup %4617 }
 0xaa7   :  { %4619 = vpow2.f32 %v1639_v46  ;;  %1735 = vadd.xlane.f32.xlu2 %v1734_v26  ;;  %v1641_v52 = vsel %vm371_vm14, %v5587_v45, 0.0 }
 0xaad   :  { %v5589_v39 = vpop.eup %4619 }
 0xaae   :  { %v1644_v28 = vsel %vm371_vm14, %v5589_v39, 0.0 }
 0xaaf   :  { %1645 = vadd.xlane.f32.xlu1 %v1644_v28  ;;  %1642 = vadd.xlane.f32.xlu2 %v1641_v52 }
 0xab6   :  { %v1550_v44 = vpop.xlane.xlu1 %1549 }
 0xab7   :  { %4621 = vrcp.f32 %v1550_v44  ;;  %v1565_v59 = vand.u32 2147483648, %v1550_v44  ;;  %vm1559_vm4 = vweird.f32 %v1550_v44  ;;  %v1563_v21 = vand.u32 2147483647, %v1550_v44 }
 0xab9   :  { %v1566_v1 = vor.u32 1.1754944e-38, %v1565_v59  ;;  %vm1564_vm8 = vcmp.eq.f32.partialorder %v1563_v21, 8.507059e+37 }
 0xabd   :  { %v4622_v37 = vpop.eup %4621 }
 0xabe   :  { %v1555_v29 = vmul.f32 %v4622_v37, %v1550_v44  ;;  %vm1560_vm3 = vweird.f32 %v4622_v37 }
 0xabf   :  { %vm1561_vm5 = vmor %vm1559_vm4, %vm1560_vm3 }
 0xac7   :  { %1678 = vrot.lane.b32.xlu2 %v5506_v48, %s4994_s26 }
 0xadb   :  { %v1851_v40 = vpop.f32.mrf.mxu0 }
 0xadc   :  { %v1861_v9 = vadd.f32 %v1851_v40, %v5394_v54  ;;  %v1556_v54 = vsub.f32 1.0, %v1555_v29 }
 0xade   :  { %v5604_v41 = vadd.f32 %v5600_v38, %v1861_v9  ;;  %v1557_v55 = vmul.f32 %v4622_v37, %v1556_v54 }
 0xae0   :  { %v1876_v42 = vsel %vm175_vm0, %v5604_v41, 0.0  ;;  %v1558_v57 = vadd.f32 %v4622_v37, %v1557_v55 }
 0xae1   :  { %1877 = vadd.xlane.f32.xlu1 %v1876_v42 }
 0xae2   :  { %v1562_v61 = vsel %vm1561_vm5, %v4622_v37, %v1558_v57 }
 0xae3   :  { %v1853_v27 = vpop.f32.mrf.mxu0  ;;  %v1567_v62 = vsel %vm1564_vm8, %v1566_v1, %v1562_v61 }
 0xae4   :  { %v1862_v48 = vadd.f32 %v1853_v27, %v5398_v56  ;;  %v1582_v5 = vmul.f32 %v5564_v60, %v1567_v62 }
 0xae6   :  { %v5610_v43 = vadd.f32 %v5600_v38, %v1862_v48 }
 0xae8   :  { %v1879_v47 = vsel %vm175_vm0, %v5610_v43, 0.0 }
 0xae9   :  { %1880 = vadd.xlane.f32.xlu0 %v1879_v47 }
 0xaeb   :  { %v1553_v49 = vpop.xlane.xlu0 %1552 }
 0xaec   :  { %4623 = vrcp.f32 %v1553_v49  ;;  %v1579_v53 = vand.u32 2147483648, %v1553_v49  ;;  %v1577_v0 = vand.u32 2147483647, %v1553_v49  ;;  %vm1573_vm9 = vweird.f32 %v1553_v49 }
 0xaee   :  { %v1580_v34 = vor.u32 1.1754944e-38, %v1579_v53  ;;  %vm1578_vm11 = vcmp.eq.f32.partialorder %v1577_v0, 8.507059e+37 }
 0xaf2   :  { %v4624_v24 = vpop.eup %4623 }
 0xaf3   :  { %v1569_v50 = vmul.f32 %v4624_v24, %v1553_v49  ;;  %vm1574_vm7 = vweird.f32 %v4624_v24 }
 0xaf4   :  { %vm1575_vm10 = vmor %vm1573_vm9, %vm1574_vm7  ;;  %v1739_v51 = vpop.xlane.xlu1 %1738 }
 0xaf5   :  { %v1570_v56 = vsub.f32 1.0, %v1569_v50  ;;  %4625 = vrcp.f32 %v1739_v51  ;;  %v1765_v6 = vand.u32 2147483648, %v1739_v51  ;;  %vm1759_vm13 = vweird.f32 %v1739_v51 }
 0xaf6   :  { %v1763_v30 = vand.u32 2147483647, %v1739_v51 }
 0xaf7   :  { %v1571_v63 = vmul.f32 %v4624_v24, %v1570_v56  ;;  %v1766_v26 = vor.u32 1.1754944e-38, %v1765_v6  ;;  %v4370_v6 = vld [vmem:[#allocation13 + $0x10] sm:$0xff] }
 0xaf8   :  { %vm1764_vm2 = vcmp.eq.f32.partialorder %v1763_v30, 8.507059e+37 }
 0xaf9   :  { %v1572_v35 = vadd.f32 %v4624_v24, %v1571_v63 }
 0xafb   :  { %v1576_v2 = vsel %vm1575_vm10, %v4624_v24, %v1572_v35  ;;  %v4626_v36 = vpop.eup %4625 }
 0xafc   :  { %v1581_v4 = vsel %vm1578_vm11, %v1580_v34, %v1576_v2  ;;  %v1755_v25 = vmul.f32 %v4626_v36, %v1739_v51  ;;  %vm1760_vm12 = vweird.f32 %v4626_v36 }
 0xafd   :  { %v1583_v7 = vmul.f32 %v5573_v13, %v1581_v4  ;;  %vm1761_vm15 = vmor %vm1759_vm13, %vm1760_vm12 }
 0xafe   :  { %v1586_v10 = vpop.permute.xlu0 %1585  ;;  %v1756_v11 = vsub.f32 1.0, %v1755_v25 }
 0xaff   :  { %1598 = vmatpush.bf16.msrb.mxu2 %v1586_v10  ;;  %v1584_v12 = vpack.c.bf16 %v1583_v7, %v1582_v5 }
 0xb00   :  { %v1757_v22 = vmul.f32 %v4626_v36, %v1756_v11 }
 0xb02   :  { %4161 = vmatmul.msk.bf16.vlgmr.msrb.gmra.mxu2 %vm371_vm14, %v1584_v12  ;;  %v1758_v23 = vadd.f32 %v4626_v36, %v1757_v22 }
 0xb03   :  { %1782 = vmatpush.bf16.msra.mxu2 %v1771_v8 }
 0xb04   :  { %v1762_v32 = vsel %vm1761_vm15, %v4626_v36, %v1758_v23 }
 0xb05   :  { %v1767_v44 = vsel %vm1764_vm2, %v1766_v26, %v1762_v32 }
 0xb06   :  { %v1769_v47 = vmul.f32 %v5577_v16, %v1767_v44 }
 0xb1a   :  { %v1736_v19 = vpop.xlane.xlu2 %1735 }
 0xb1b   :  { %4627 = vrcp.f32 %v1736_v19  ;;  %v1751_v31 = vand.u32 2147483648, %v1736_v19  ;;  %v1749_v46 = vand.u32 2147483647, %v1736_v19  ;;  %vm1745_vm3 = vweird.f32 %v1736_v19 }
 0xb1d   :  { %v1752_v40 = vor.u32 1.1754944e-38, %v1751_v31  ;;  %vm1750_vm5 = vcmp.eq.f32.partialorder %v1749_v46, 8.507059e+37 }
 0xb21   :  { %v4628_v60 = vpop.eup %4627 }
 0xb22   :  { %v1741_v13 = vmul.f32 %v4628_v60, %v1736_v19  ;;  %v1646_v15 = vpop.xlane.xlu1 %1645  ;;  %v1643_v3 = vpop.xlane.xlu2 %1642  ;;  %vm1746_vm1 = vweird.f32 %v4628_v60 }
 0xb23   :  { %4629 = vrcp.f32 %v1646_v15  ;;  %vm1747_vm4 = vmor %vm1745_vm3, %vm1746_vm1  ;;  %v1670_v55 = vand.u32 2147483647, %v1646_v15  ;;  %v1672_v24 = vand.u32 2147483648, %v1646_v15  ;;  %v1658_v59 = vand.u32 2147483648, %v1643_v3 }
 0xb24   :  { %v1742_v58 = vsub.f32 1.0, %v1741_v13  ;;  %4631 = vrcp.f32 %v1643_v3  ;;  %v1656_v53 = vand.u32 2147483647, %v1643_v3  ;;  %vm1666_vm9 = vweird.f32 %v1646_v15 }
 0xb25   :  { %v1673_v63 = vor.u32 1.1754944e-38, %v1672_v24  ;;  %vm1652_vm11 = vweird.f32 %v1643_v3  ;;  %vm1671_vm12 = vcmp.eq.f32.partialorder %v1670_v55, 8.507059e+37  ;;  %v1659_v0 = vor.u32 1.1754944e-38, %v1658_v59  ;;  %v5635_v55 = vld [vmem:[#allocation11] ss:$0 sm:$0xff] }
 0xb26   :  { %v1743_v20 = vmul.f32 %v4628_v60, %v1742_v58  ;;  %vm1657_vm15 = vcmp.eq.f32.partialorder %v1656_v53, 8.507059e+37  ;;  %v4369_v58 = vld [vmem:[#allocation13 + $0x8] sm:$0xff]  ;;  %v5640_v59 = vld [vmem:[%s6399_s7] ss:$0 sm:$0xff] }
 0xb28   :  { %v1744_v28 = vadd.f32 %v4628_v60, %v1743_v20  ;;  %v4368_v20 = vld [vmem:[#allocation13] sm:$0xff] }
 0xb29   :  { %v4630_v52 = vpop.eup %4629 }
 0xb2a   :  { %v4632_v9 = vpop.eup %4631  ;;  %v1748_v42 = vsel %vm1747_vm4, %v4628_v60, %v1744_v28  ;;  %v1662_v27 = vmul.f32 %v4630_v52, %v1646_v15  ;;  %v1679_v37 = vpop.permute.xlu2 %1678  ;;  %vm1667_vm7 = vweird.f32 %v4630_v52 }
 0xb2b   :  { %v1753_v48 = vsel %vm1750_vm5, %v1752_v40, %v1748_v42  ;;  %v1648_v29 = vmul.f32 %v4632_v9, %v1643_v3  ;;  %1691 = vmatpush.bf16.msra.mxu1 %v1679_v37  ;;  %vm1653_vm8 = vweird.f32 %v4632_v9  ;;  %vm1668_vm10 = vmor %vm1666_vm9, %vm1667_vm7 }
 0xb2c   :  { %v1768_v54 = vmul.f32 %v5583_v18, %v1753_v48  ;;  %v1663_v49 = vsub.f32 1.0, %v1662_v27  ;;  %vm1654_vm13 = vmor %vm1652_vm11, %vm1653_vm8 }
 0xb2d   :  { %v1649_v57 = vsub.f32 1.0, %v1648_v29 }
 0xb2e   :  { %v1664_v50 = vmul.f32 %v4630_v52, %v1663_v49  ;;  %v1770_v21 = vpack.c.bf16 %v1769_v47, %v1768_v54 }
 0xb2f   :  { %v1650_v56 = vmul.f32 %v4632_v9, %v1649_v57  ;;  %2019 = vmatpush.bf16.msrb.mxu1 %v4370_v6 }
 0xb30   :  { %v1665_v61 = vadd.f32 %v4630_v52, %v1664_v50  ;;  %4165 = vmatmul.msk.bf16.vlgmr.msra.gmra.mxu2 %vm371_vm14, %v1770_v21 }
 0xb31   :  { %v1651_v16 = vadd.f32 %v4632_v9, %v1650_v56 }
 0xb32   :  { %v1669_v18 = vsel %vm1668_vm10, %v4630_v52, %v1665_v61 }
 0xb33   :  { %v1674_v1 = vsel %vm1671_vm12, %v1673_v63, %v1669_v18  ;;  %v1655_v35 = vsel %vm1654_vm13, %v4632_v9, %v1651_v16  ;;  %2020 = vmatpush.bf16.msrb.mxu1 %v4369_v58 }
 0xb34   :  { %v1676_v62 = vmul.f32 %v5589_v39, %v1674_v1  ;;  %v1660_v34 = vsel %vm1657_vm15, %v1659_v0, %v1655_v35 }
 0xb35   :  { %v1675_v2 = vmul.f32 %v5587_v45, %v1660_v34 }
 0xb37   :  { %v1677_v4 = vpack.c.bf16 %v1676_v62, %v1675_v2  ;;  %2021 = vmatpush.bf16.msrb.mxu1 %v4368_v20 }
 0xb39   :  { %4163 = vmatmul.msk.bf16.vlgmr.msra.gmra.mxu1 %vm371_vm14, %v1677_v4 }
 0xb54   :  { %v1878_v5 = vpop.xlane.xlu1 %1877 }
 0xb55   :  { %v1888_v7 = vmul.f32 %v1878_v5, %v5128_v14 }
 0xb57   :  { %v1892_v8 = vsub.f32 %v5604_v41, %v1888_v7 }
 0xb59   :  { %v1896_v10 = vmul.f32 %v1892_v8, %v1892_v8 }
 0xb5b   :  { %v1900_v12 = vsel %vm175_vm0, %v1896_v10, 0.0  ;;  %v4373_v10 = vld [vmem:[#allocation14 + $0x10] sm:$0xff] }
 0xb5c   :  { %1901 = vadd.xlane.f32.xlu1 %v1900_v12  ;;  %v1881_v51 = vpop.xlane.xlu0 %1880  ;;  %2082 = vmatpush.bf16.msrb.mxu3 %v4373_v10  ;;  %v4372_v12 = vld [vmem:[#allocation14 + $0x8] sm:$0xff] }
 0xb5d   :  { %v1889_v36 = vmul.f32 %v1881_v51, %v5128_v14  ;;  %v4371_v51 = vld [vmem:[#allocation14] sm:$0xff] }
 0xb5f   :  { %v1893_v39 = vsub.f32 %v5610_v43, %v1889_v36 }
 0xb60   :  { %2083 = vmatpush.bf16.msrb.mxu3 %v4372_v12 }
 0xb61   :  { %v1897_v25 = vmul.f32 %v1893_v39, %v1893_v39 }
 0xb63   :  { %v1903_v45 = vsel %vm175_vm0, %v1897_v25, 0.0 }
 0xb64   :  { %1904 = vadd.xlane.f32.xlu1 %v1903_v45  ;;  %2084 = vmatpush.bf16.msrb.mxu3 %v4371_v51 }
 0xb85   :  { %v1600_v11 = vpop.f32.mrf.mxu2 }
 0xb8d   :  { %v1602_v19 = vpop.f32.mrf.mxu2 }
 0xbb3   :  { %v1784_v22 = vpop.f32.mrf.mxu2 }
 0xbb6   :  { %v1693_v60 = vpop.f32.mrf.mxu1 }
 0xbbb   :  { %v1786_v23 = vpop.f32.mrf.mxu2 }
 0xbbc   :  { %v4454_v13 = vpack.i.bf16 %v1786_v23, %v1784_v22 }
 0xbbe   :  { %v1695_v15 = vpop.f32.mrf.mxu1  ;;  %4455 = vrot.lane.b32.xlu1 %v4454_v13, %s5012_s0 }
 0xbbf   :  { %v4449_v3 = vpack.i.bf16 %v1695_v15, %v1693_v60 }
 0xbc1   :  { %4450 = vrot.lane.b32.xlu2 %v4449_v3, %s4994_s26 }
 0xbcf   :  { %v1902_v30 = vpop.xlane.xlu1 %1901 }
 0xbd0   :  { %v1912_v31 = vmul.f32 %v1902_v30, %v5128_v14 }
 0xbd2   :  { %v1916_v32 = vadd.f32 1e-05, %v1912_v31 }
 0xbd4   :  { %4633 = vrsqrt.f32 %v1916_v32  ;;  %vm1926_vm2 = vweird.f32 %v1916_v32 }
 0xbd7   :  { %v1905_v46 = vpop.xlane.xlu1 %1904 }
 0xbd8   :  { %v1913_v26 = vmul.f32 %v1905_v46, %v5128_v14 }
 0xbda   :  { %v4634_v28 = vpop.eup %4633  ;;  %v1917_v52 = vadd.f32 1e-05, %v1913_v26 }
 0xbdb   :  { %v1921_v44 = vmul.f32 %v4634_v28, %v1916_v32  ;;  %vm1927_vm1 = vweird.f32 %v4634_v28 }
 0xbdc   :  { %4635 = vrsqrt.f32 %v1917_v52  ;;  %vm1928_vm3 = vmor %vm1926_vm2, %vm1927_vm1  ;;  %vm1936_vm5 = vweird.f32 %v1917_v52 }
 0xbdd   :  { %v1922_v40 = vmul.f32 %v4634_v28, %v1921_v44 }
 0xbdf   :  { %v1923_v9 = vmul.f32 0.5, %v1922_v40 }
 0xbe1   :  { %v1924_v42 = vsub.f32 1.5, %v1923_v9 }
 0xbe2   :  { %v4636_v27 = vpop.eup %4635 }
 0xbe3   :  { %v1925_v37 = vmul.f32 %v4634_v28, %v1924_v42  ;;  %v1931_v48 = vmul.f32 %v4636_v27, %v1917_v52  ;;  %vm1937_vm4 = vweird.f32 %v4636_v27 }
 0xbe4   :  { %vm1938_vm7 = vmor %vm1936_vm5, %vm1937_vm4 }
 0xbe5   :  { %v1932_v29 = vmul.f32 %v4636_v27, %v1931_v48  ;;  %v1929_v47 = vsel %vm1928_vm3, %v4634_v28, %v1925_v37 }
 0xbe6   :  { %v1960_v24 = vmul.f32 %v1929_v47, %v1892_v8 }
 0xbe7   :  { %v1933_v54 = vmul.f32 0.5, %v1932_v29 }
 0xbe8   :  { %v1967_v21 = vmul.f32 %v5635_v55, %v1960_v24 }
 0xbe9   :  { %v1934_v49 = vsub.f32 1.5, %v1933_v54 }
 0xbea   :  { %v1974_v61 = vadd.f32 %v5640_v59, %v1967_v21 }
 0xbeb   :  { %v1935_v57 = vmul.f32 %v4636_v27, %v1934_v49 }
 0xbed   :  { %v1939_v50 = vsel %vm1938_vm7, %v4636_v27, %v1935_v57 }
 0xbee   :  { %v1961_v56 = vmul.f32 %v1939_v50, %v1893_v39  ;;  %v5655_v39 = vld [vmem:[%s6401_s9] ss:$0 sm:$0xff] }
 0xbf0   :  { %v1968_v53 = vmul.f32 %v5635_v55, %v1961_v56 }
 0xbf2   :  { %v1975_v63 = vadd.f32 %v5640_v59, %v1968_v53 }
 0xbf4   :  { %v1984_v16 = vpack.c.bf16 %v1975_v63, %v1974_v61 }
 0xbf6   :  { %4193 = vmatmul.msk.bf16.vlgmr.msrb.gmra.mxu1 %vm175_vm0, %v1984_v16 }
 0xc1b   :  { %v4451_v18 = vpop.permute.xlu2 %4450 }
 0xc1c   :  { %v4453_v0 = vunpack.i.h.bf16 %v4451_v18  ;;  %v4452_v1 = vunpack.i.l.bf16 %v4451_v18 }
 0xc1e   :  { %v1805_v2 = vsel %vm371_vm14, %v1600_v11, %v4452_v1  ;;  %v1806_v4 = vsel %vm371_vm14, %v1602_v19, %v4453_v0 }
 0xc30   :  { %v4456_v35 = vpop.permute.xlu1 %4455 }
 0xc31   :  { %v4458_v62 = vunpack.i.h.bf16 %v4456_v35  ;;  %v4457_v34 = vunpack.i.l.bf16 %v4456_v35 }
 0xc33   :  { %v1807_v5 = vsel %vm663_vm6, %v1805_v2, %v4457_v34  ;;  %v1808_v7 = vsel %vm663_vm6, %v1806_v4, %v4458_v62 }
 0xc34   :  { %v1817_v8 = vpack.c.bf16 %v1808_v7, %v1807_v5 }
 0xc36   :  { %4179 = vmatmul.msk.bf16.gmra.mxu0 %vm175_vm0, %v1817_v8 }
 0xc73   :  { %v2023_v36 = vpop.f32.mrf.mxu1 }
 0xc74   :  { %v2024_v25 = vadd.f32 %v5655_v39, %v2023_v36 }
 0xc76   :  { %v2037_v11 = vmul.f32 0.01, %v2024_v25  ;;  %vm2033_vm8 = vcmp.gt.f32.partialorder %v2024_v25, 0.0 }
 0xc78   :  { %v2041_v60 = vsel %vm2033_vm8, %v2024_v25, %v2037_v11 }
 0xc7b   :  { %v2025_v45 = vpop.f32.mrf.mxu1 }
 0xc7c   :  { %v2026_v19 = vadd.f32 %v5655_v39, %v2025_v45 }
 0xc7e   :  { %vm2034_vm9 = vcmp.gt.f32.partialorder %v2026_v19, 0.0  ;;  %v2038_v22 = vmul.f32 0.01, %v2026_v19 }
 0xc80   :  { %v2042_v23 = vsel %vm2034_vm9, %v2026_v19, %v2038_v22 }
 0xc81   :  { %v2051_v13 = vpack.c.bf16 %v2042_v23, %v2041_v60 }
 0xc83   :  { %4207 = vmatmul.msk.bf16.vlgmr.msrb.gmra.mxu3 %vm175_vm0, %v2051_v13 }
 0xcb3   :  { %v1856_v15 = vpop.f32.mrf.mxu0 }
 0xcb4   :  { %v1863_v3 = vadd.f32 %v1856_v15, %v5421_v17  ;;  %v5675_v17 = vld [vmem:[%s6403_s11] ss:$0 sm:$0xff] }
 0xcb6   :  { %v5662_v6 = vadd.f32 %v5600_v38, %v1863_v3 }
 0xcb8   :  { %v1882_v30 = vsel %vm175_vm0, %v5662_v6, 0.0 }
 0xcb9   :  { %1883 = vadd.xlane.f32.xlu2 %v1882_v30 }
 0xcbb   :  { %v1858_v58 = vpop.f32.mrf.mxu0 }
 0xcbc   :  { %v1864_v31 = vadd.f32 %v1858_v58, %v5425_v33 }
 0xcbe   :  { %v5668_v32 = vadd.f32 %v5600_v38, %v1864_v31 }
 0xcc0   :  { %v1885_v20 = vsel %vm175_vm0, %v5668_v32, 0.0 }
 0xcc1   :  { %1886 = vadd.xlane.f32.xlu0 %v1885_v20 }
 0xd06   :  { %v2086_v46 = vpop.f32.mrf.mxu3 }
 0xd07   :  { %v2096_v29 = vadd.f32 %v2086_v46, %v5604_v41 }
 0xd09   :  { %v5691_v54 = vadd.f32 %v5675_v17, %v2096_v29  ;;  %v4375_v29 = vld [vmem:[#allocation8 + $0x64] sm:$0xf0] }
 0xd0b   :  { %v2112_v49 = vsel %vm175_vm0, %v5691_v54, 0.0 }
 0xd0e   :  { %v2088_v26 = vpop.f32.mrf.mxu3 }
 0xd0f   :  { %v2097_v28 = vadd.f32 %v2088_v26, %v5610_v43  ;;  %v4227_v26 = vld [vmem:[#allocation8 + $0x80] sm:$0xf] }
 0xd11   :  { %v5679_v52 = vadd.f32 %v5675_v17, %v2097_v28  ;;  %v4379_v28 = vld [vmem:[#allocation8 + $0x84] sm:$0xf0] }
 0xd13   :  { %v2115_v33 = vsel %vm175_vm0, %v5679_v52, 0.0 }
 0xd14   :  { %2116 = vadd.xlane.f32.xlu2 %v2115_v33  ;;  %v4378_v33 = vld [vmem:[#allocation8 + $0x84] sm:$0xf] }
 0xd2c   :  { %v1884_v38 = vpop.xlane.xlu2 %1883 }
 0xd2d   :  { %v1890_v44 = vmul.f32 %v1884_v38, %v5128_v14  ;;  %v4228_v38 = vor.u32 %v4379_v28, %v4227_v26 }
 0xd2f   :  { %v1894_v40 = vsub.f32 %v5662_v6, %v1890_v44  ;;  %v4229_v44 = vld [vmem:[#allocation8 + $0x88] sm:$0xf0]  ;;  %2264 = vmatpush.bf16.msrb.mxu2 %v4228_v38 }
 0xd31   :  { %v1898_v9 = vmul.f32 %v1894_v40, %v1894_v40 }
 0xd33   :  { %v1906_v42 = vsel %vm175_vm0, %v1898_v9, 0.0  ;;  %v4377_v9 = vld [vmem:[#allocation8 + $0x74] sm:$0xf0] }
 0xd34   :  { %1907 = vadd.xlane.f32.xlu1 %v1906_v42  ;;  %v1887_v27 = vpop.xlane.xlu0 %1886  ;;  %v4376_v42 = vld [vmem:[#allocation8 + $0x74] sm:$0xf] }
 0xd35   :  { %v1891_v37 = vmul.f32 %v1887_v27, %v5128_v14  ;;  %v4221_v27 = vld [vmem:[#allocation8 + $0x78] sm:$0xf0] }
 0xd37   :  { %v1895_v43 = vsub.f32 %v5668_v32, %v1891_v37 }
 0xd39   :  { %v1899_v48 = vmul.f32 %v1895_v43, %v1895_v43 }
 0xd3b   :  { %v1909_v47 = vsel %vm175_vm0, %v1899_v48, 0.0  ;;  %v4211_v48 = vld [vmem:[#allocation8 + $0x60] sm:$0xf] }
 0xd3c   :  { %1910 = vadd.xlane.f32.xlu0 %v1909_v47  ;;  %v4374_v47 = vld [vmem:[#allocation8 + $0x64] sm:$0xf] }
 0xd44   :  { %2113 = vadd.xlane.f32.xlu0 %v2112_v49 }
 0xd87   :  { %v2117_v24 = vpop.xlane.xlu2 %2116 }
 0xd88   :  { %v2125_v57 = vmul.f32 %v2117_v24, %v5128_v14  ;;  %v4212_v24 = vor.u32 %v4375_v29, %v4211_v48 }
 0xd8a   :  { %v5697_v50 = vsub.f32 %v5679_v52, %v2125_v57  ;;  %v4213_v57 = vld [vmem:[#allocation8 + $0x68] sm:$0xf0] }
 0xd8c   :  { %v2133_v21 = vmul.f32 %v5697_v50, %v5697_v50 }
 0xd8e   :  { %v2139_v41 = vsel %vm175_vm0, %v2133_v21, 0.0  ;;  %v4216_v21 = vor.u32 %v4374_v47, %v4213_v57 }
 0xd8f   :  { %2140 = vadd.xlane.f32.xlu2 %v2139_v41 }
 0xda7   :  { %v1908_v56 = vpop.xlane.xlu1 %1907 }
 0xda8   :  { %v1914_v53 = vmul.f32 %v1908_v56, %v5128_v14 }
 0xdaa   :  { %v1918_v61 = vadd.f32 1e-05, %v1914_v53 }
 0xdac   :  { %4637 = vrsqrt.f32 %v1918_v61  ;;  %vm1946_vm11 = vweird.f32 %v1918_v61 }
 0xdaf   :  { %v1911_v63 = vpop.xlane.xlu0 %1910 }
 0xdb0   :  { %v1915_v16 = vmul.f32 %v1911_v63, %v5128_v14 }
 0xdb2   :  { %v4638_v18 = vpop.eup %4637  ;;  %v1919_v0 = vadd.f32 1e-05, %v1915_v16 }
 0xdb3   :  { %v1941_v1 = vmul.f32 %v4638_v18, %v1918_v61  ;;  %vm1947_vm10 = vweird.f32 %v4638_v18 }
 0xdb4   :  { %4639 = vrsqrt.f32 %v1919_v0  ;;  %vm1948_vm12 = vmor %vm1946_vm11, %vm1947_vm10  ;;  %vm1956_vm15 = vweird.f32 %v1919_v0 }
 0xdb5   :  { %v1942_v35 = vmul.f32 %v4638_v18, %v1941_v1 }
 0xdb7   :  { %v1943_v62 = vmul.f32 0.5, %v1942_v35  ;;  %v2114_v34 = vpop.xlane.xlu0 %2113 }
 0xdb8   :  { %v2124_v2 = vmul.f32 %v2114_v34, %v5128_v14 }
 0xdb9   :  { %v1944_v4 = vsub.f32 1.5, %v1943_v62 }
 0xdba   :  { %v4640_v5 = vpop.eup %4639  ;;  %v5706_v7 = vsub.f32 %v5691_v54, %v2124_v2 }
 0xdbb   :  { %v1945_v8 = vmul.f32 %v4638_v18, %v1944_v4  ;;  %v1951_v10 = vmul.f32 %v4640_v5, %v1919_v0  ;;  %vm1957_vm13 = vweird.f32 %v4640_v5  ;;  %v5718_v4 = vld [vmem:[#allocation5 + $0x2] ss:$0 sm:$0xff] }
 0xdbc   :  { %v2132_v12 = vmul.f32 %v5706_v7, %v5706_v7  ;;  %vm1958_vm1 = vmor %vm1956_vm15, %vm1957_vm13 }
 0xdbd   :  { %v1952_v51 = vmul.f32 %v4640_v5, %v1951_v10  ;;  %v1949_v25 = vsel %vm1948_vm12, %v4638_v18, %v1945_v8 }
 0xdbe   :  { %v2136_v36 = vsel %vm175_vm0, %v2132_v12, 0.0  ;;  %v1962_v19 = vmul.f32 %v1949_v25, %v1894_v40  ;;  %v4232_v40 = vor.u32 %v4378_v33, %v4229_v44  ;;  %v5721_v12 = vld [vmem:[#allocation7 + $0x2] ss:$0 sm:$0xff] }
 0xdbf   :  { %v1953_v45 = vmul.f32 0.5, %v1952_v51  ;;  %2137 = vadd.xlane.f32.xlu0 %v2136_v36 }
 0xdc0   :  { %v1969_v13 = vmul.f32 %v5635_v55, %v1962_v19  ;;  %2283 = vmatpush.bf16.msrb.mxu0 %v4232_v40 }
 0xdc1   :  { %v1954_v11 = vsub.f32 1.5, %v1953_v45 }
 0xdc2   :  { %v1976_v3 = vadd.f32 %v5640_v59, %v1969_v13 }
 0xdc3   :  { %v1955_v22 = vmul.f32 %v4640_v5, %v1954_v11 }
 0xdc5   :  { %v1959_v60 = vsel %vm1958_vm1, %v4640_v5, %v1955_v22 }
 0xdc6   :  { %v1963_v23 = vmul.f32 %v1959_v60, %v1895_v43  ;;  %v4224_v43 = vor.u32 %v4376_v42, %v4221_v27 }
 0xdc8   :  { %v1970_v15 = vmul.f32 %v5635_v55, %v1963_v23  ;;  %v4219_v55 = vld [vmem:[#allocation8 + $0x70] sm:$0xf]  ;;  %2284 = vmatpush.bf16.msrb.mxu0 %v4224_v43 }
 0xdca   :  { %v1977_v30 = vadd.f32 %v5640_v59, %v1970_v15  ;;  %v4220_v59 = vor.u32 %v4377_v9, %v4219_v55 }
 0xdcc   :  { %v1985_v58 = vpack.c.bf16 %v1977_v30, %v1976_v3  ;;  %2265 = vmatpush.bf16.msrb.mxu2 %v4220_v59  ;;  %2285 = vmatpush.bf16.msrb.mxu0 %v4216_v21 }
 0xdce   :  { %4194 = vmatmul.msk.bf16.gmra.mxu1 %vm175_vm0, %v1985_v58 }
 0xdd0   :  { %2266 = vmatpush.bf16.msrb.mxu2 %v4212_v24 }
 0xe02   :  { %v2141_v31 = vpop.xlane.xlu2 %2140 }
 0xe03   :  { %v2149_v20 = vmul.f32 %v2141_v31, %v5128_v14 }
 0xe05   :  { %v2153_v46 = vadd.f32 1e-05, %v2149_v20 }
 0xe07   :  { %4641 = vrsqrt.f32 %v2153_v46  ;;  %vm2172_vm3 = vweird.f32 %v2153_v46 }
 0xe0d   :  { %v4642_v37 = vpop.eup %4641 }
 0xe0e   :  { %v2167_v49 = vmul.f32 %v4642_v37, %v2153_v46  ;;  %vm2173_vm2 = vweird.f32 %v4642_v37 }
 0xe0f   :  { %vm2174_vm4 = vmor %vm2172_vm3, %vm2173_vm2 }
 0xe10   :  { %v2168_v41 = vmul.f32 %v4642_v37, %v2167_v49 }
 0xe12   :  { %v2169_v63 = vmul.f32 0.5, %v2168_v41 }
 0xe14   :  { %v2170_v16 = vsub.f32 1.5, %v2169_v63 }
 0xe16   :  { %v2171_v0 = vmul.f32 %v4642_v37, %v2170_v16 }
 0xe18   :  { %v2175_v62 = vsel %vm2174_vm4, %v4642_v37, %v2171_v0 }
 0xe19   :  { %v2197_v5 = vmul.f32 %v2175_v62, %v5697_v50 }
 0xe1b   :  { %v2204_v51 = vmul.f32 %v5718_v4, %v2197_v5 }
 0xe1d   :  { %v2211_v11 = vadd.f32 %v5721_v12, %v2204_v51 }
 0xe32   :  { %v2138_v56 = vpop.xlane.xlu0 %2137 }
 0xe33   :  { %v2148_v53 = vmul.f32 %v2138_v56, %v5128_v14 }
 0xe35   :  { %v2152_v61 = vadd.f32 1e-05, %v2148_v53 }
 0xe37   :  { %4643 = vrsqrt.f32 %v2152_v61  ;;  %vm2162_vm7 = vweird.f32 %v2152_v61 }
 0xe3d   :  { %v4644_v18 = vpop.eup %4643 }
 0xe3e   :  { %v2157_v1 = vmul.f32 %v4644_v18, %v2152_v61  ;;  %vm2163_vm5 = vweird.f32 %v4644_v18 }
 0xe3f   :  { %vm2164_vm8 = vmor %vm2162_vm7, %vm2163_vm5 }
 0xe40   :  { %v2158_v35 = vmul.f32 %v4644_v18, %v2157_v1 }
 0xe42   :  { %v2159_v34 = vmul.f32 0.5, %v2158_v35 }
 0xe44   :  { %v2160_v2 = vsub.f32 1.5, %v2159_v34 }
 0xe46   :  { %v2161_v8 = vmul.f32 %v4644_v18, %v2160_v2 }
 0xe48   :  { %v2165_v10 = vsel %vm2164_vm8, %v4644_v18, %v2161_v8 }
 0xe49   :  { %v2196_v36 = vmul.f32 %v2165_v10, %v5706_v7 }
 0xe4b   :  { %v2203_v25 = vmul.f32 %v5718_v4, %v2196_v36  ;;  %v2028_v45 = vpop.f32.mrf.mxu1 }
 0xe4c   :  { %v2029_v50 = vadd.f32 %v5655_v39, %v2028_v45 }
 0xe4d   :  { %v2210_v19 = vadd.f32 %v5721_v12, %v2203_v25 }
 0xe4e   :  { %v2039_v23 = vmul.f32 0.01, %v2029_v50  ;;  %vm2035_vm9 = vcmp.gt.f32.partialorder %v2029_v50, 0.0 }
 0xe4f   :  { %v2221_v22 = vpack.c.bf16 %v2211_v11, %v2210_v19 }
 0xe50   :  { %v2043_v15 = vsel %vm2035_vm9, %v2029_v50, %v2039_v23 }
 0xe51   :  { %4233 = vmatmul.msk.bf16.vlgmr.msrb.gmra.mxu2 %vm175_vm0, %v2221_v22  ;;  %4235 = vmatmul.msk.bf16.vlgmr.msrb.gmra.mxu0 %vm175_vm0, %v2221_v22 }
 0xe53   :  { %v2030_v60 = vpop.f32.mrf.mxu1 }
 0xe54   :  { %v2031_v13 = vadd.f32 %v5655_v39, %v2030_v60 }
 0xe56   :  { %vm2036_vm10 = vcmp.gt.f32.partialorder %v2031_v13, 0.0  ;;  %v2040_v7 = vmul.f32 0.01, %v2031_v13 }
 0xe58   :  { %v2044_v3 = vsel %vm2036_vm10, %v2031_v13, %v2040_v7 }
 0xe59   :  { %v2052_v30 = vpack.c.bf16 %v2044_v3, %v2043_v15 }
 0xe5b   :  { %4208 = vmatmul.msk.bf16.gmra.mxu3 %vm175_vm0, %v2052_v30 }
 0xece   :  { %v2287_v30 = vpop.f32.mrf.mxu0 }
 0xed4   :  { %v2268_v58 = vpop.f32.mrf.mxu2 }
 0xedc   :  { %v2270_v31 = vpop.f32.mrf.mxu2 }
 0xedd   :  { %v5733_v20 = vpack.c.bf16 %v2270_v31, %v2268_v58 }
 0xede   :  { %v2091_v46 = vpop.f32.mrf.mxu3 }
 0xedf   :  { %v2098_v26 = vadd.f32 %v2091_v46, %v5662_v6  ;;  %2299 = vrot.lane.b32.xlu0 %v5733_v20, %s5009_s10 }
 0xee1   :  { %v5739_v39 = vadd.f32 %v5675_v17, %v2098_v26 }
 0xee3   :  { %v2118_v28 = vsel %vm175_vm0, %v5739_v39, 0.0 }
 0xee4   :  { %2119 = vadd.xlane.f32.xlu2 %v2118_v28 }
 0xee6   :  { %v2093_v33 = vpop.f32.mrf.mxu3 }
 0xee7   :  { %v2099_v38 = vadd.f32 %v2093_v33, %v5668_v32 }
 0xee9   :  { %v5745_v44 = vadd.f32 %v5675_v17, %v2099_v38 }
 0xeeb   :  { %v2121_v40 = vsel %vm175_vm0, %v5745_v44, 0.0 }
 0xeec   :  { %2122 = vadd.xlane.f32.xlu1 %v2121_v40 }
 0xf51   :  { %v2300_v6 = vpop.permute.xlu0 %2299 }
 0xf52   :  { %v2305_v55 = vsel %vm371_vm14, %v2300_v6, 0 }
 0xf53   :  { %2314 = vmatpush.bf16.xpose.msra.mxu1 %v2305_v55 }
 0xf57   :  { %v2120_v9 = vpop.xlane.xlu2 %2119 }
 0xf58   :  { %v2126_v42 = vmul.f32 %v2120_v9, %v5128_v14 }
 0xf5a   :  { %v2130_v59 = vsub.f32 %v5739_v39, %v2126_v42  ;;  %4237 = vmatmul.msk.bf16.vlgmr.msra.gmra.mxu1 %vm371_vm14, %v5733_v20 }
 0xf5c   :  { %v2134_v32 = vmul.f32 %v2130_v59, %v2130_v59 }
 0xf5e   :  { %v2142_v17 = vsel %vm175_vm0, %v2134_v32, 0.0 }
 0xf5f   :  { %2143 = vadd.xlane.f32.xlu2 %v2142_v17  ;;  %v2123_v27 = vpop.xlane.xlu1 %2122 }
 0xf60   :  { %v2127_v37 = vmul.f32 %v2123_v27, %v5128_v14 }
 0xf62   :  { %v2131_v43 = vsub.f32 %v5745_v44, %v2127_v37 }
 0xf64   :  { %v2135_v48 = vmul.f32 %v2131_v43, %v2131_v43 }
 0xf66   :  { %v2145_v29 = vsel %vm175_vm0, %v2135_v48, 0.0 }
 0xf67   :  { %2146 = vadd.xlane.f32.xlu1 %v2145_v29 }
 0xf80   :  { %2370 = vrot.lane.b32.xlu1 %v5733_v20, %s5012_s0 }
 0xfd2   :  { %v2144_v47 = vpop.xlane.xlu2 %2143 }
 0xfd3   :  { %v2150_v49 = vmul.f32 %v2144_v47, %v5128_v14 }
 0xfd5   :  { %v2154_v24 = vadd.f32 1e-05, %v2150_v49 }
 0xfd7   :  { %4645 = vrsqrt.f32 %v2154_v24  ;;  %v2316_v57 = vpop.f32.mrf.mxu1  ;;  %vm2182_vm12 = vweird.f32 %v2154_v24 }
 0xfd8   :  { %v2321_v21 = vsel %vm371_vm14, %v2316_v57, -inf }
 0xfd9   :  { %2322 = vmax.xlane.f32.xlu0 %v2321_v21 }
 0xfda   :  { %v2147_v41 = vpop.xlane.xlu1 %2146 }
 0xfdb   :  { %v2151_v56 = vmul.f32 %v2147_v41, %v5128_v14 }
 0xfdd   :  { %v4646_v53 = vpop.eup %4645  ;;  %v2155_v61 = vadd.f32 1e-05, %v2151_v56 }
 0xfde   :  { %v2177_v63 = vmul.f32 %v4646_v53, %v2154_v24  ;;  %vm2183_vm11 = vweird.f32 %v4646_v53 }
 0xfdf   :  { %4647 = vrsqrt.f32 %v2155_v61  ;;  %v2318_v16 = vpop.f32.mrf.mxu1  ;;  %vm2184_vm13 = vmor %vm2182_vm12, %vm2183_vm11  ;;  %vm2192_vm1 = vweird.f32 %v2155_v61 }
 0xfe0   :  { %v2178_v18 = vmul.f32 %v4646_v53, %v2177_v63  ;;  %v2324_v0 = vsel %vm371_vm14, %v2318_v16, -inf }
 0xfe1   :  { %2325 = vmax.xlane.f32.xlu2 %v2324_v0 }
 0xfe2   :  { %v2179_v1 = vmul.f32 0.5, %v2178_v18 }
 0xfe4   :  { %v2180_v35 = vsub.f32 1.5, %v2179_v1 }
 0xfe5   :  { %v4648_v62 = vpop.eup %4647 }
 0xfe6   :  { %v2181_v34 = vmul.f32 %v4646_v53, %v2180_v35  ;;  %v2187_v2 = vmul.f32 %v4648_v62, %v2155_v61  ;;  %vm2193_vm15 = vweird.f32 %v4648_v62 }
 0xfe7   :  { %vm2194_vm2 = vmor %vm2192_vm1, %vm2193_vm15 }
 0xfe8   :  { %v2188_v5 = vmul.f32 %v4648_v62, %v2187_v2  ;;  %v2185_v8 = vsel %vm2184_vm13, %v4646_v53, %v2181_v34 }
 0xfe9   :  { %v2198_v36 = vmul.f32 %v2185_v8, %v2130_v59 }
 0xfea   :  { %v2189_v10 = vmul.f32 0.5, %v2188_v5 }
 0xfeb   :  { %v2205_v19 = vmul.f32 %v5718_v4, %v2198_v36 }
 0xfec   :  { %v2190_v51 = vsub.f32 1.5, %v2189_v10 }
 0xfed   :  { %2483 = vrot.lane.b32.xlu0 %v5733_v20, %s5011_s28  ;;  %v2212_v60 = vadd.f32 %v5721_v12, %v2205_v19 }
 0xfee   :  { %v2191_v25 = vmul.f32 %v4648_v62, %v2190_v51 }
 0xff0   :  { %v2195_v45 = vsel %vm2194_vm2, %v4648_v62, %v2191_v25 }
 0xff1   :  { %v2199_v11 = vmul.f32 %v2195_v45, %v2131_v43 }
 0xff2   :  { %v2371_v22 = vpop.permute.xlu1 %2370 }
 0xff3   :  { %2383 = vmatpush.bf16.msra.mxu3 %v2371_v22  ;;  %v2206_v50 = vmul.f32 %v5718_v4, %v2199_v11 }
 0xff5   :  { %v2213_v23 = vadd.f32 %v5721_v12, %v2206_v50  ;;  %v2289_v12 = vpop.f32.mrf.mxu0 }
 0xff6   :  { %v2556_v33 = vpack.c.bf16 %v2289_v12, %v2287_v30 }
 0xff7   :  { %v2222_v13 = vpack.c.bf16 %v2213_v23, %v2212_v60 }
 0xff9   :  { %4234 = vmatmul.msk.bf16.gmra.mxu2 %vm175_vm0, %v2222_v13  ;;  %4236 = vmatmul.msk.bf16.gmra.mxu0 %vm175_vm0, %v2222_v13 }
 0xffa   :  { %2392 = vrot.lane.b32.xlu2 %v5733_v20, %s5003_s1 }
0x104c   :  { %v2323_v7 = vpop.xlane.xlu0 %2322 }
0x104d   :  { %v2327_v15 = vsub.f32 %v2316_v57, %v2323_v7 }
0x104f   :  { %v2329_v3 = vmul.f32 1.442695, %v2327_v15 }
0x1051   :  { %4649 = vpow2.f32 %v2329_v3 }
0x1054   :  { %v2326_v58 = vpop.xlane.xlu2 %2325 }
0x1055   :  { %v2328_v31 = vsub.f32 %v2318_v16, %v2326_v58 }
0x1057   :  { %v4650_v4 = vpop.eup %4649  ;;  %v2331_v46 = vmul.f32 1.442695, %v2328_v31 }
0x1058   :  { %v2333_v26 = vsel %vm371_vm14, %v4650_v4, 0.0 }
0x1059   :  { %4651 = vpow2.f32 %v2331_v46  ;;  %2334 = vadd.xlane.f32.xlu1 %v2333_v26 }
0x105c   :  { %v2393_v28 = vpop.permute.xlu2 %2392 }
0x105d   :  { %v2398_v38 = vsel %vm371_vm14, %v2393_v28, 0 }
0x105e   :  { %2407 = vmatpush.bf16.xpose.msra.mxu2 %v2398_v38 }
0x105f   :  { %v4652_v40 = vpop.eup %4651  ;;  %v2484_v36 = vpop.permute.xlu0 %2483 }
0x1060   :  { %v2336_v6 = vsel %vm371_vm14, %v4652_v40, 0.0 }
0x1061   :  { %2337 = vadd.xlane.f32.xlu2 %v2336_v6 }
0x1066   :  { %2567 = vmatpush.bf16.msrb.mxu2 %v2556_v33 }
0x1072   :  { %2390 = vrot.lane.b32.xlu1 %v5733_v20, %s5008_s8 }
0x1076   :  { %v5807_v7 = vpop.f32.mrf.mxu0 }
0x1079   :  { %2485 = vrot.lane.b32.xlu2 %v5733_v20, %s5010_s25 }
0x107c   :  { %v2273_v55 = vpop.f32.mrf.mxu2 }
0x107e   :  { %v5812_v58 = vpop.f32.mrf.mxu0 }
0x1084   :  { %v2275_v9 = vpop.f32.mrf.mxu2 }
0x1085   :  { %v5781_v42 = vpack.c.bf16 %v2275_v9, %v2273_v55 }
0x1087   :  { %2780 = vrot.lane.b32.xlu0 %v5781_v42, %s5011_s28  ;;  %2689 = vrot.lane.b32.xlu2 %v5781_v42, %s5003_s1 }
0x1088   :  { %2596 = vrot.lane.b32.xlu1 %v5781_v42, %s5009_s10 }
0x108f   :  { %2782 = vrot.lane.b32.xlu2 %v5781_v42, %s5010_s25 }
0x1090   :  { %2687 = vrot.lane.b32.xlu1 %v5781_v42, %s5008_s8 }
0x10cc   :  { %v2335_v59 = vpop.xlane.xlu1 %2334 }
0x10cd   :  { %4653 = vrcp.f32 %v2335_v59  ;;  %v2350_v24 = vand.u32 2147483648, %v2335_v59  ;;  %vm2344_vm4 = vweird.f32 %v2335_v59  ;;  %v2348_v21 = vand.u32 2147483647, %v2335_v59 }
0x10cf   :  { %v2351_v16 = vor.u32 1.1754944e-38, %v2350_v24  ;;  %vm2349_vm8 = vcmp.eq.f32.partialorder %v2348_v21, 8.507059e+37 }
0x10d3   :  { %v4654_v32 = vpop.eup %4653 }
0x10d4   :  { %v2340_v17 = vmul.f32 %v4654_v32, %v2335_v59  ;;  %v2338_v27 = vpop.xlane.xlu2 %2337  ;;  %vm2345_vm3 = vweird.f32 %v4654_v32 }
0x10d5   :  { %4655 = vrcp.f32 %v2338_v27  ;;  %vm2346_vm5 = vmor %vm2344_vm4, %vm2345_vm3  ;;  %v2364_v56 = vand.u32 2147483648, %v2338_v27  ;;  %v2362_v63 = vand.u32 2147483647, %v2338_v27  ;;  %vm2358_vm9 = vweird.f32 %v2338_v27 }
0x10d6   :  { %v2341_v37 = vsub.f32 1.0, %v2340_v17 }
0x10d7   :  { %v2365_v1 = vor.u32 1.1754944e-38, %v2364_v56  ;;  %vm2363_vm11 = vcmp.eq.f32.partialorder %v2362_v63, 8.507059e+37 }
0x10d8   :  { %v2342_v43 = vmul.f32 %v4654_v32, %v2341_v37 }
0x10da   :  { %v2343_v29 = vadd.f32 %v4654_v32, %v2342_v43 }
0x10db   :  { %v4656_v48 = vpop.eup %4655 }
0x10dc   :  { %v2354_v47 = vmul.f32 %v4656_v48, %v2338_v27  ;;  %v2486_v49 = vpop.permute.xlu2 %2485  ;;  %v2347_v53 = vsel %vm2346_vm5, %v4654_v32, %v2343_v29  ;;  %vm2359_vm7 = vweird.f32 %v4656_v48 }
0x10dd   :  { %v2491_v57 = vsel %vm371_vm14, %v2486_v49, 0  ;;  %v2352_v0 = vsel %vm2349_vm8, %v2351_v16, %v2347_v53  ;;  %vm2360_vm10 = vmor %vm2358_vm9, %vm2359_vm7 }
0x10de   :  { %v2355_v41 = vsub.f32 1.0, %v2354_v47  ;;  %2500 = vmatpush.bf16.xpose.msrb.mxu3 %v2491_v57  ;;  %v2367_v2 = vmul.f32 %v4650_v4, %v2352_v0 }
0x10e0   :  { %v2356_v61 = vmul.f32 %v4656_v48, %v2355_v41 }
0x10e2   :  { %v2357_v18 = vadd.f32 %v4656_v48, %v2356_v61 }
0x10e4   :  { %v2361_v35 = vsel %vm2360_vm10, %v4656_v48, %v2357_v18  ;;  %v2391_v62 = vpop.permute.xlu1 %2390  ;;  %v2690_v8 = vpop.permute.xlu2 %2689 }
0x10e5   :  { %v2366_v34 = vsel %vm2363_vm11, %v2365_v1, %v2361_v35  ;;  %4239 = vmatmul.msk.bf16.vlgmr.msra.gmra.mxu2 %vm371_vm14, %v2391_v62  ;;  %v2695_v51 = vsel %vm371_vm14, %v2690_v8, 0 }
0x10e6   :  { %v2368_v5 = vmul.f32 %v4652_v40, %v2366_v34 }
0x10e8   :  { %v2369_v10 = vpack.c.bf16 %v2368_v5, %v2367_v2 }
0x10ea   :  { %4238 = vmatmul.msk.bf16.vlgmr.msra.gmra.mxu3 %vm371_vm14, %v2369_v10 }
0x10eb   :  { %2704 = vmatpush.bf16.xpose.msra.mxu3 %v2695_v51 }
0x10ec   :  { %v2783_v25 = vpop.permute.xlu2 %2782 }
0x10ed   :  { %v2788_v19 = vsel %vm371_vm14, %v2783_v25, 0 }
0x10f9   :  { %v2781_v50 = vpop.permute.xlu0 %2780 }
0x10fa   :  { %v2597_v45 = vpop.permute.xlu1 %2596  ;;  %4241 = vmatmul.msk.bf16.vlgmr.msrb.gmra.mxu3 %vm371_vm14, %v2484_v36 }
0x10fb   :  { %v2602_v11 = vsel %vm371_vm14, %v2597_v45, 0 }
0x10fc   :  { %2611 = vmatpush.bf16.xpose.msra.mxu0 %v2602_v11 }
0x1102   :  { %v2688_v22 = vpop.permute.xlu1 %2687 }
0x1103   :  { %4243 = vmatmul.msk.bf16.vlgmr.msra.gmra.mxu0 %vm371_vm14, %v5781_v42 }
0x1104   :  { %2797 = vmatpush.bf16.xpose.msrb.mxu0 %v2788_v19 }
0x110a   :  { %4245 = vmatmul.msk.bf16.vlgmr.msra.gmra.mxu3 %vm371_vm14, %v2688_v22 }
0x1113   :  { %4247 = vmatmul.msk.bf16.vlgmr.msrb.gmra.mxu0 %vm371_vm14, %v2781_v50 }
0x1168   :  { %v2409_v60 = vpop.f32.mrf.mxu2 }
0x1169   :  { %v2414_v23 = vsel %vm371_vm14, %v2409_v60, -inf }
0x116a   :  { %2415 = vmax.xlane.f32.xlu1 %v2414_v23 }
0x116d   :  { %v5805_v13 = vpop.f32.mrf.mxu3 }
0x1170   :  { %v2411_v15 = vpop.f32.mrf.mxu2 }
0x1171   :  { %v2417_v3 = vsel %vm371_vm14, %v2411_v15, -inf }
0x1172   :  { %2418 = vmax.xlane.f32.xlu2 %v2417_v3 }
0x1175   :  { %v5810_v30 = vpop.f32.mrf.mxu3 }
0x117d   :  { %v2502_v31 = vpop.f32.mrf.mxu3 }
0x117e   :  { %v2507_v40 = vsel %vm371_vm14, %v2502_v31, -inf }
0x1180   :  { %v2613_v4 = vpop.f32.mrf.mxu0 }
0x1181   :  { %v2618_v46 = vsel %vm371_vm14, %v2613_v4, -inf }
0x1182   :  { %2619 = vmax.xlane.f32.xlu1 %v2618_v46 }
0x1185   :  { %v2504_v26 = vpop.f32.mrf.mxu3 }
0x1186   :  { %v2510_v12 = vsel %vm371_vm14, %v2504_v26, -inf }
0x1187   :  { %2511 = vmax.xlane.f32.xlu2 %v2510_v12 }
0x1188   :  { %v2615_v28 = vpop.f32.mrf.mxu0 }
0x1189   :  { %v2621_v33 = vsel %vm371_vm14, %v2615_v28, -inf }
0x118a   :  { %2622 = vmax.xlane.f32.xlu0 %v2621_v33 }
0x118d   :  { %v2706_v59 = vpop.f32.mrf.mxu3 }
0x118e   :  { %v2711_v32 = vsel %vm371_vm14, %v2706_v59, -inf }
0x1190   :  { %v2799_v38 = vpop.f32.mrf.mxu0 }
0x1191   :  { %v2804_v55 = vsel %vm371_vm14, %v2799_v38, -inf }
0x1192   :  { %2508 = vmax.xlane.f32.xlu0 %v2507_v40 }
0x1195   :  { %v2708_v24 = vpop.f32.mrf.mxu3 }
0x1196   :  { %v2714_v21 = vsel %vm371_vm14, %v2708_v24, -inf }
0x1198   :  { %v2801_v6 = vpop.f32.mrf.mxu0 }
0x1199   :  { %v2807_v9 = vsel %vm371_vm14, %v2801_v6, -inf }
0x119a   :  { %2805 = vmax.xlane.f32.xlu0 %v2804_v55  ;;  %2808 = vmax.xlane.f32.xlu2 %v2807_v9 }
0x11a2   :  { %2712 = vmax.xlane.f32.xlu2 %v2711_v32 }
0x11dd   :  { %v2416_v17 = vpop.xlane.xlu1 %2415 }
0x11de   :  { %v2420_v27 = vsub.f32 %v2409_v60, %v2416_v17 }
0x11e0   :  { %v2422_v37 = vmul.f32 1.442695, %v2420_v27 }
0x11e2   :  { %4657 = vpow2.f32 %v2422_v37 }
0x11e5   :  { %v2419_v43 = vpop.xlane.xlu2 %2418 }
0x11e6   :  { %v2421_v48 = vsub.f32 %v2411_v15, %v2419_v43 }
0x11e8   :  { %v5821_v29 = vpop.eup %4657  ;;  %v2424_v47 = vmul.f32 1.442695, %v2421_v48 }
0x11e9   :  { %v2426_v49 = vsel %vm371_vm14, %v5821_v29, 0.0 }
0x11ea   :  { %4659 = vpow2.f32 %v2424_v47  ;;  %2427 = vadd.xlane.f32.xlu1 %v2426_v49 }
0x11f0   :  { %v5825_v57 = vpop.eup %4659 }
0x11f1   :  { %v2429_v41 = vsel %vm371_vm14, %v5825_v57, 0.0 }
0x11f2   :  { %2715 = vmax.xlane.f32.xlu1 %v2714_v21  ;;  %2430 = vadd.xlane.f32.xlu0 %v2429_v41 }
0x11f5   :  { %v2620_v56 = vpop.xlane.xlu1 %2619 }
0x11f6   :  { %v2624_v53 = vsub.f32 %v2613_v4, %v2620_v56 }
0x11f8   :  { %v2626_v61 = vmul.f32 1.442695, %v2624_v53 }
0x11fa   :  { %4661 = vpow2.f32 %v2626_v61  ;;  %v2512_v63 = vpop.xlane.xlu2 %2511 }
0x11fb   :  { %v2514_v16 = vsub.f32 %v2504_v26, %v2512_v63 }
0x11fd   :  { %v2517_v18 = vmul.f32 1.442695, %v2514_v16  ;;  %v2623_v0 = vpop.xlane.xlu0 %2622 }
0x11fe   :  { %v2625_v1 = vsub.f32 %v2615_v28, %v2623_v0 }
0x11ff   :  { %4663 = vpow2.f32 %v2517_v18 }
0x1200   :  { %v5830_v35 = vpop.eup %4661  ;;  %v2628_v62 = vmul.f32 1.442695, %v2625_v1 }
0x1201   :  { %v2630_v34 = vsel %vm371_vm14, %v5830_v35, 0.0 }
0x1202   :  { %4665 = vpow2.f32 %v2628_v62  ;;  %2631 = vadd.xlane.f32.xlu0 %v2630_v34 }
0x1205   :  { %v5834_v2 = vpop.eup %4663  ;;  %v2509_v5 = vpop.xlane.xlu0 %2508 }
0x1206   :  { %v2513_v8 = vsub.f32 %v2502_v31, %v2509_v5  ;;  %v2522_v10 = vsel %vm371_vm14, %v5834_v2, 0.0 }
0x1207   :  { %2523 = vadd.xlane.f32.xlu1 %v2522_v10 }
0x1208   :  { %v5838_v51 = vpop.eup %4665  ;;  %v2515_v36 = vmul.f32 1.442695, %v2513_v8 }
0x1209   :  { %v2633_v25 = vsel %vm371_vm14, %v5838_v51, 0.0 }
0x120a   :  { %4667 = vpow2.f32 %v2515_v36  ;;  %2634 = vadd.xlane.f32.xlu2 %v2633_v25 }
0x120d   :  { %v2806_v45 = vpop.xlane.xlu0 %2805  ;;  %v2809_v11 = vpop.xlane.xlu2 %2808 }
0x120e   :  { %v2810_v19 = vsub.f32 %v2799_v38, %v2806_v45  ;;  %v2811_v22 = vsub.f32 %v2801_v6, %v2809_v11 }
0x1210   :  { %v5842_v50 = vpop.eup %4667  ;;  %v2812_v60 = vmul.f32 1.442695, %v2810_v19  ;;  %v2814_v23 = vmul.f32 1.442695, %v2811_v22 }
0x1211   :  { %v2519_v15 = vsel %vm371_vm14, %v5842_v50, 0.0 }
0x1212   :  { %4669 = vpow2.f32 %v2812_v60  ;;  %2520 = vadd.xlane.f32.xlu2 %v2519_v15 }
0x1213   :  { %4671 = vpow2.f32 %v2814_v23 }
0x1215   :  { %v2713_v3 = vpop.xlane.xlu2 %2712 }
0x1216   :  { %v2717_v31 = vsub.f32 %v2706_v59, %v2713_v3 }
0x1218   :  { %v5846_v4 = vpop.eup %4669  ;;  %v2719_v46 = vmul.f32 1.442695, %v2717_v31 }
0x1219   :  { %v5848_v26 = vpop.eup %4671  ;;  %v2816_v12 = vsel %vm371_vm14, %v5846_v4, 0.0 }
0x121a   :  { %4673 = vpow2.f32 %v2719_v46  ;;  %2817 = vadd.xlane.f32.xlu0 %v2816_v12  ;;  %v2819_v28 = vsel %vm371_vm14, %v5848_v26, 0.0 }
0x121b   :  { %2820 = vadd.xlane.f32.xlu2 %v2819_v28 }
0x1220   :  { %v5854_v33 = vpop.eup %4673  ;;  %2463 = vrot.lane.b32.xlu1 %v5733_v20, %s4994_s26 }
0x1221   :  { %v2723_v38 = vsel %vm371_vm14, %v5854_v33, 0.0 }
0x1222   :  { %2724 = vadd.xlane.f32.xlu0 %v2723_v38 }
0x1236   :  { %2667 = vrot.lane.b32.xlu0 %v5781_v42, %s5012_s0 }
0x125d   :  { %v2428_v40 = vpop.xlane.xlu1 %2427 }
0x125e   :  { %v2443_v0 = vand.u32 2147483648, %v2428_v40  ;;  %vm2437_vm2 = vweird.f32 %v2428_v40  ;;  %v2441_v8 = vand.u32 2147483647, %v2428_v40 }
0x1260   :  { %v2444_v11 = vor.u32 1.1754944e-38, %v2443_v0  ;;  %vm2442_vm7 = vcmp.eq.f32.partialorder %v2441_v8, 8.507059e+37 }
0x1265   :  { %v2716_v6 = vpop.xlane.xlu1 %2715  ;;  %v2431_v59 = vpop.xlane.xlu0 %2430 }
0x1266   :  { %v2718_v55 = vsub.f32 %v2708_v24, %v2716_v6  ;;  %v2457_v1 = vand.u32 2147483648, %v2431_v59  ;;  %vm2451_vm15 = vweird.f32 %v2431_v59  ;;  %v2455_v34 = vand.u32 2147483647, %v2431_v59 }
0x1268   :  { %v2721_v9 = vmul.f32 1.442695, %v2718_v55  ;;  %v2458_v36 = vor.u32 1.1754944e-38, %v2457_v1  ;;  %vm2456_vm4 = vcmp.eq.f32.partialorder %v2455_v34, 8.507059e+37 }
0x126a   :  { %4675 = vpow2.f32 %v2721_v9 }
0x126b   :  { %4677 = vrcp.f32 %v2431_v59 }
0x126c   :  { %4679 = vrcp.f32 %v2428_v40 }
0x1270   :  { %v5862_v32 = vpop.eup %4675 }
0x1271   :  { %v2726_v17 = vsel %vm371_vm14, %v5862_v32, 0.0  ;;  %v4678_v20 = vpop.eup %4677 }
0x1272   :  { %2727 = vadd.xlane.f32.xlu2 %v2726_v17  ;;  %v4680_v27 = vpop.eup %4679  ;;  %v2447_v37 = vmul.f32 %v4678_v20, %v2431_v59  ;;  %vm2452_vm12 = vweird.f32 %v4678_v20 }
0x1273   :  { %v2433_v48 = vmul.f32 %v4680_v27, %v2428_v40  ;;  %vm2438_vm13 = vweird.f32 %v4680_v27  ;;  %vm2453_vm1 = vmor %vm2451_vm15, %vm2452_vm12 }
0x1274   :  { %v2448_v49 = vsub.f32 1.0, %v2447_v37  ;;  %vm2439_vm3 = vmor %vm2437_vm2, %vm2438_vm13 }
0x1275   :  { %v2434_v24 = vsub.f32 1.0, %v2433_v48  ;;  %v5868_v18 = vpop.xlane.xlu0 %2631 }
0x1276   :  { %v2449_v41 = vmul.f32 %v4678_v20, %v2448_v49  ;;  %v2647_v8 = vand.u32 2147483648, %v5868_v18 }
0x1277   :  { %v2435_v53 = vmul.f32 %v4680_v27, %v2434_v24 }
0x1278   :  { %v2450_v16 = vadd.f32 %v4678_v20, %v2449_v41 }
0x1279   :  { %v2436_v62 = vadd.f32 %v4680_v27, %v2435_v53 }
0x127a   :  { %v2524_v43 = vpop.xlane.xlu1 %2523  ;;  %v2454_v10 = vsel %vm2453_vm1, %v4678_v20, %v2450_v16 }
0x127b   :  { %4681 = vrcp.f32 %v2524_v43  ;;  %v2440_v45 = vsel %vm2439_vm3, %v4680_v27, %v2436_v62  ;;  %v2459_v22 = vsel %vm2456_vm4, %v2458_v36, %v2454_v10  ;;  %v2550_v15 = vand.u32 2147483648, %v2524_v43 }
0x127c   :  { %v2445_v31 = vsel %vm2442_vm7, %v2444_v11, %v2440_v45  ;;  %vm2544_vm8 = vweird.f32 %v2524_v43  ;;  %v2548_v46 = vand.u32 2147483647, %v2524_v43  ;;  %v2461_v12 = vmul.f32 %v5825_v57, %v2459_v22 }
0x127d   :  { %v5866_v47 = vpop.xlane.xlu2 %2634  ;;  %v2460_v59 = vmul.f32 %v5821_v29, %v2445_v31  ;;  %v2551_v57 = vor.u32 1.1754944e-38, %v2550_v15  ;;  %vm2641_vm4 = vweird.f32 %v5868_v18  ;;  %v2645_v10 = vand.u32 2147483647, %v5868_v18 }
0x127e   :  { %vm2549_vm11 = vcmp.eq.f32.partialorder %v2548_v46, 8.507059e+37  ;;  %vm2655_vm3 = vweird.f32 %v5866_v47 }
0x1281   :  { %v4682_v21 = vpop.eup %4681 }
0x1282   :  { %v2540_v56 = vmul.f32 %v4682_v21, %v2524_v43  ;;  %vm2545_vm5 = vweird.f32 %v4682_v21 }
0x1283   :  { %vm5879_vm9 = vmor %vm2544_vm8, %vm2545_vm5 }
0x1284   :  { %v2541_v61 = vsub.f32 1.0, %v2540_v56 }
0x1285   :  { %v2521_v63 = vpop.xlane.xlu2 %2520 }
0x1286   :  { %4683 = vrcp.f32 %v2521_v63  ;;  %v2542_v5 = vmul.f32 %v4682_v21, %v2541_v61  ;;  %v2536_v40 = vand.u32 2147483648, %v2521_v63  ;;  %v2534_v9 = vand.u32 2147483647, %v2521_v63 }
0x1287   :  { %4685 = vrcp.f32 %v5866_v47  ;;  %vm2530_vm12 = vweird.f32 %v2521_v63 }
0x1288   :  { %4687 = vrcp.f32 %v5868_v18  ;;  %v2543_v60 = vadd.f32 %v4682_v21, %v2542_v5  ;;  %v2537_v49 = vor.u32 1.1754944e-38, %v2536_v40  ;;  %vm2535_vm15 = vcmp.eq.f32.partialorder %v2534_v9, 8.507059e+37 }
0x1289   :  { %v2661_v5 = vand.u32 2147483648, %v5866_v47 }
0x128a   :  { %2760 = vrot.lane.b32.xlu2 %v5781_v42, %s4994_s26  ;;  %v2547_v6 = vsel %vm5879_vm9, %v4682_v21, %v2543_v60  ;;  %v2462_v21 = vpack.c.bf16 %v2461_v12, %v2460_v59  ;;  %vm2646_vm9 = vcmp.eq.f32.partialorder %v2645_v10, 8.507059e+37 }
0x128b   :  { %v2552_v43 = vsel %vm2549_vm11, %v2551_v57, %v2547_v6  ;;  %v2662_v22 = vor.u32 1.1754944e-38, %v2661_v5 }
0x128c   :  { %v4684_v25 = vpop.eup %4683  ;;  %v2554_v53 = vmul.f32 %v5834_v2, %v2552_v43 }
0x128d   :  { %v5874_v19 = vpop.eup %4685  ;;  %v2526_v23 = vmul.f32 %v4684_v25, %v2521_v63  ;;  %vm2531_vm10 = vweird.f32 %v4684_v25  ;;  %v5890_v37 = vpop.xlane.xlu0 %2817 }
0x128e   :  { %v5876_v3 = vpop.eup %4687  ;;  %v2651_v38 = vmul.f32 %v5874_v19, %v5866_v47  ;;  %vm2532_vm13 = vmor %vm2530_vm12, %vm2531_vm10  ;;  %v5892_v24 = vpop.xlane.xlu2 %2820  ;;  %4689 = vrcp.f32 %v5890_v37  ;;  %vm2656_vm1 = vweird.f32 %v5874_v19  ;;  %vm2827_vm12 = vweird.f32 %v5890_v37 }
0x128f   :  { %v2527_v42 = vsub.f32 1.0, %v2526_v23  ;;  %v2637_v17 = vmul.f32 %v5876_v3, %v5868_v18  ;;  %4691 = vrcp.f32 %v5892_v24  ;;  %vm2642_vm2 = vweird.f32 %v5876_v3  ;;  %vm2657_vm5 = vmor %vm2655_vm3, %vm2656_vm1 }
0x1290   :  { %v2652_v48 = vsub.f32 1.0, %v2651_v38  ;;  %vm2643_vm7 = vmor %vm2641_vm4, %vm2642_vm2 }
0x1291   :  { %v2528_v55 = vmul.f32 %v4684_v25, %v2527_v42  ;;  %v2638_v29 = vsub.f32 1.0, %v2637_v17 }
0x1292   :  { %v2464_v20 = vpop.permute.xlu1 %2463  ;;  %v2653_v63 = vmul.f32 %v5874_v19, %v2652_v48 }
0x1293   :  { %v2529_v27 = vadd.f32 %v4684_v25, %v2528_v55  ;;  %2476 = vmatpush.bf16.msrb.mxu1 %v2464_v20  ;;  %v2639_v0 = vmul.f32 %v5876_v3, %v2638_v29 }
0x1294   :  { %v4690_v1 = vpop.eup %4689  ;;  %v2654_v62 = vadd.f32 %v5874_v19, %v2653_v63 }
0x1295   :  { %v2533_v41 = vsel %vm2532_vm13, %v4684_v25, %v2529_v27  ;;  %v4692_v34 = vpop.eup %4691  ;;  %v2640_v2 = vadd.f32 %v5876_v3, %v2639_v0  ;;  %v2823_v25 = vmul.f32 %v4690_v1, %v5890_v37  ;;  %v5915_v11 = vpop.xlane.xlu0 %2724  ;;  %vm2828_vm10 = vweird.f32 %v4690_v1 }
0x1296   :  { %v2538_v56 = vsel %vm2535_vm15, %v2537_v49, %v2533_v41  ;;  %4240 = vmatmul.msk.bf16.vlgmr.msrb.gmra.mxu1 %vm371_vm14, %v2462_v21  ;;  %v2658_v36 = vsel %vm2657_vm5, %v5874_v19, %v2654_v62  ;;  %v2837_v45 = vmul.f32 %v4692_v34, %v5892_v24  ;;  %v2853_v19 = vpack.c.bf16 %v5812_v58, %v5807_v7  ;;  %vm2829_vm13 = vmor %vm2827_vm12, %vm2828_vm10 }
0x1297   :  { %v2553_v61 = vmul.f32 %v5842_v50, %v2538_v56  ;;  %v2659_v50 = vand.u32 2147483647, %v5866_v47  ;;  %v2644_v60 = vsel %vm2643_vm7, %v5876_v3, %v2640_v2  ;;  %v2648_v47 = vor.u32 1.1754944e-38, %v2647_v8 }
0x1298   :  { %v2824_v15 = vsub.f32 1.0, %v2823_v25  ;;  %v2838_v31 = vsub.f32 1.0, %v2837_v45  ;;  %vm2842_vm11 = vweird.f32 %v4692_v34  ;;  %v2847_v7 = vand.u32 2147483648, %v5892_v24 }
0x1299   :  { %v2555_v16 = vpack.c.bf16 %v2554_v53, %v2553_v61  ;;  %vm2660_vm8 = vcmp.eq.f32.partialorder %v2659_v50, 8.507059e+37  ;;  %v2649_v46 = vsel %vm2646_vm9, %v2648_v47, %v2644_v60  ;;  %v2831_v58 = vand.u32 2147483647, %v5890_v37 }
0x129a   :  { %v2663_v23 = vsel %vm2660_vm8, %v2662_v22, %v2658_v36  ;;  %v2664_v42 = vmul.f32 %v5830_v35, %v2649_v46  ;;  %v2825_v12 = vmul.f32 %v4690_v1, %v2824_v15  ;;  %v2839_v28 = vmul.f32 %v4692_v34, %v2838_v31 }
0x129b   :  { %4242 = vmatmul.msk.bf16.vlgmr.msrb.gmra.mxu2 %vm371_vm14, %v2555_v16  ;;  %v2665_v18 = vmul.f32 %v5838_v51, %v2663_v23  ;;  %v2833_v51 = vand.u32 2147483648, %v5890_v37  ;;  %vm2841_vm15 = vweird.f32 %v5892_v24  ;;  %v2845_v35 = vand.u32 2147483647, %v5892_v24 }
0x129c   :  { %v2826_v3 = vadd.f32 %v4690_v1, %v2825_v12  ;;  %v2840_v6 = vadd.f32 %v4692_v34, %v2839_v28  ;;  %vm2843_vm1 = vmor %vm2841_vm15, %vm2842_vm11  ;;  %v2848_v17 = vor.u32 1.1754944e-38, %v2847_v7  ;;  %vm2832_vm2 = vcmp.eq.f32.partialorder %v2831_v58, 8.507059e+37  ;;  %v4380_v28 = vld [vmem:[#allocation10 + $0x30] sm:$0xff] }
0x129d   :  { %v2666_v40 = vpack.c.bf16 %v2665_v18, %v2664_v42  ;;  %v2834_v59 = vor.u32 1.1754944e-38, %v2833_v51  ;;  %vm2846_vm3 = vcmp.eq.f32.partialorder %v2845_v35, 8.507059e+37  ;;  %4693 = vrcp.f32 %v5915_v11  ;;  %v4381_v42 = vld [vmem:[#allocation10 + $0x38] sm:$0xff] }
0x129e   :  { %v2830_v55 = vsel %vm2829_vm13, %v4690_v1, %v2826_v3  ;;  %v2844_v9 = vsel %vm2843_vm1, %v4692_v34, %v2840_v6  ;;  %vm2734_vm5 = vweird.f32 %v5915_v11 }
0x129f   :  { %v2835_v57 = vsel %vm2832_vm2, %v2834_v59, %v2830_v55  ;;  %v2849_v20 = vsel %vm2846_vm3, %v2848_v17, %v2844_v9 }
0x12a0   :  { %v2850_v27 = vmul.f32 %v5846_v4, %v2835_v57  ;;  %v2851_v43 = vmul.f32 %v5848_v26, %v2849_v20  ;;  %v2740_v4 = vand.u32 2147483648, %v5915_v11  ;;  %v2738_v26 = vand.u32 2147483647, %v5915_v11 }
0x12a2   :  { %v2852_v48 = vpack.c.bf16 %v2851_v43, %v2850_v27  ;;  %v2741_v34 = vor.u32 1.1754944e-38, %v2740_v4  ;;  %vm2739_vm9 = vcmp.eq.f32.partialorder %v2738_v26, 8.507059e+37 }
0x12a3   :  { %v4694_v37 = vpop.eup %4693 }
0x12a4   :  { %v2730_v49 = vmul.f32 %v4694_v37, %v5915_v11  ;;  %vm2735_vm4 = vweird.f32 %v4694_v37 }
0x12a5   :  { %vm2736_vm7 = vmor %vm2734_vm5, %vm2735_vm4 }
0x12a6   :  { %v2731_v24 = vsub.f32 1.0, %v2730_v49 }
0x12a8   :  { %v2668_v38 = vpop.permute.xlu0 %2667  ;;  %v2732_v41 = vmul.f32 %v4694_v37, %v2731_v24 }
0x12a9   :  { %2680 = vmatpush.bf16.msra.mxu1 %v2668_v38 }
0x12aa   :  { %v2733_v56 = vadd.f32 %v4694_v37, %v2732_v41 }
0x12ac   :  { %4244 = vmatmul.msk.bf16.vlgmr.msra.gmra.mxu1 %vm371_vm14, %v2666_v40  ;;  %v2737_v0 = vsel %vm2736_vm7, %v4694_v37, %v2733_v56 }
0x12ad   :  { %2864 = vmatpush.bf16.msrb.mxu1 %v2853_v19  ;;  %v2742_v2 = vsel %vm2739_vm9, %v2741_v34, %v2737_v0 }
0x12ae   :  { %v2757_v36 = vmul.f32 %v5854_v33, %v2742_v2 }
0x12bc   :  { %4248 = vmatmul.msk.bf16.vlgmr.msrb.gmra.mxu1 %vm371_vm14, %v2852_v48 }
0x12e5   :  { %v2728_v21 = vpop.xlane.xlu2 %2727 }
0x12e6   :  { %4695 = vrcp.f32 %v2728_v21  ;;  %v2754_v16 = vand.u32 2147483648, %v2728_v21  ;;  %v2752_v62 = vand.u32 2147483647, %v2728_v21  ;;  %vm2748_vm10 = vweird.f32 %v2728_v21 }
0x12e8   :  { %v2755_v50 = vor.u32 1.1754944e-38, %v2754_v16  ;;  %vm2753_vm12 = vcmp.eq.f32.partialorder %v2752_v62, 8.507059e+37 }
0x12ec   :  { %v4696_v29 = vpop.eup %4695 }
0x12ed   :  { %v2744_v53 = vmul.f32 %v4696_v29, %v2728_v21  ;;  %v2761_v61 = vpop.permute.xlu2 %2760  ;;  %vm2749_vm8 = vweird.f32 %v4696_v29 }
0x12ee   :  { %2773 = vmatpush.bf16.msra.mxu2 %v2761_v61  ;;  %vm2750_vm11 = vmor %vm2748_vm10, %vm2749_vm8 }
0x12ef   :  { %v2745_v63 = vsub.f32 1.0, %v2744_v53 }
0x12f1   :  { %v2746_v1 = vmul.f32 %v4696_v29, %v2745_v63 }
0x12f3   :  { %v2747_v5 = vadd.f32 %v4696_v29, %v2746_v1 }
0x12f5   :  { %v2751_v8 = vsel %vm2750_vm11, %v4696_v29, %v2747_v5  ;;  %v4511_v29 = vld [vmem:[%s6397_s5 + $0x2] ss:$0 sm:$0xff] }
0x12f6   :  { %v2756_v10 = vsel %vm2753_vm12, %v2755_v50, %v2751_v8 }
0x12f7   :  { %v2758_v25 = vmul.f32 %v5862_v32, %v2756_v10  ;;  %v4382_v32 = vld [vmem:[#allocation10 + $0x40] sm:$0xff] }
0x12f8   :  { %2929 = vmatpush.bf16.msrb.mxu3 %v4382_v32 }
0x12f9   :  { %v2759_v45 = vpack.c.bf16 %v2758_v25, %v2757_v36 }
0x12fb   :  { %4246 = vmatmul.msk.bf16.vlgmr.msra.gmra.mxu2 %vm371_vm14, %v2759_v45 }
0x12fc   :  { %2930 = vmatpush.bf16.msrb.mxu3 %v4381_v42 }
0x1300   :  { %2931 = vmatpush.bf16.msrb.mxu3 %v4380_v28  ;;  %v4388_v28 = vld [vmem:[#allocation8 + $0xb4] sm:$0xf0] }
0x1313   :  { %v2478_v11 = vpop.f32.mrf.mxu1 }
0x131b   :  { %v2480_v22 = vpop.f32.mrf.mxu1 }
0x131c   :  { %v4459_v60 = vpack.i.bf16 %v2480_v22, %v2478_v11 }
0x131e   :  { %v2569_v47 = vpop.f32.mrf.mxu2  ;;  %4460 = vrot.lane.b32.xlu1 %v4459_v60, %s4994_s26 }
0x1326   :  { %v2571_v23 = vpop.f32.mrf.mxu2 }
0x1327   :  { %v4464_v15 = vpack.i.bf16 %v2571_v23, %v2569_v47 }
0x1329   :  { %v2682_v31 = vpop.f32.mrf.mxu1  ;;  %4465 = vrot.lane.b32.xlu1 %v4464_v15, %s5012_s0 }
0x1331   :  { %v2684_v46 = vpop.f32.mrf.mxu1 }
0x1339   :  { %v2866_v18 = vpop.f32.mrf.mxu1 }
0x1341   :  { %v2868_v19 = vpop.f32.mrf.mxu1 }
0x1342   :  { %v4474_v33 = vpack.i.bf16 %v2868_v19, %v2866_v18 }
0x1344   :  { %4475 = vrot.lane.b32.xlu0 %v4474_v33, %s5012_s0 }
0x137e   :  { %v2775_v12 = vpop.f32.mrf.mxu2 }
0x1386   :  { %v2777_v38 = vpop.f32.mrf.mxu2 }
0x1387   :  { %v4469_v40 = vpack.i.bf16 %v2777_v38, %v2775_v12  ;;  %v4282_v12 = vld [vmem:[#allocation8 + $0xb0] sm:$0xf]  ;;  %v4387_v38 = vld [vmem:[#allocation8 + $0xb4] sm:$0xf] }
0x1389   :  { %4470 = vrot.lane.b32.xlu1 %v4469_v40, %s4994_s26  ;;  %v4283_v40 = vor.u32 %v4388_v28, %v4282_v12 }
0x138b   :  { %3112 = vmatpush.bf16.msrb.mxu2 %v4283_v40 }
0x1390   :  { %v4461_v3 = vpop.permute.xlu1 %4460 }
0x1391   :  { %v4463_v6 = vunpack.i.h.bf16 %v4461_v3  ;;  %v4462_v51 = vunpack.i.l.bf16 %v4461_v3  ;;  %v4284_v3 = vld [vmem:[#allocation8 + $0xb8] sm:$0xf0] }
0x1393   :  { %v2591_v55 = vsel %vm371_vm14, %v5810_v30, %v4463_v6  ;;  %v2590_v9 = vsel %vm371_vm14, %v5805_v13, %v4462_v51  ;;  %v4287_v6 = vor.u32 %v4387_v38, %v4284_v3  ;;  %v4274_v51 = vld [vmem:[#allocation8 + $0xa0] sm:$0xf] }
0x1395   :  { %3131 = vmatpush.bf16.msra.mxu0 %v4287_v6 }
0x139b   :  { %v4466_v7 = vpop.permute.xlu1 %4465 }
0x139c   :  { %v4468_v58 = vunpack.i.h.bf16 %v4466_v7  ;;  %v4467_v35 = vunpack.i.l.bf16 %v4466_v7  ;;  %v4386_v7 = vld [vmem:[#allocation8 + $0xa4] sm:$0xf0] }
0x139e   :  { %v2593_v59 = vsel %vm663_vm6, %v2591_v55, %v4468_v58  ;;  %v2592_v17 = vsel %vm663_vm6, %v2590_v9, %v4467_v35  ;;  %v4385_v58 = vld [vmem:[#allocation8 + $0xa4] sm:$0xf]  ;;  %v4275_v55 = vor.u32 %v4386_v7, %v4274_v51  ;;  %v4276_v9 = vld [vmem:[#allocation8 + $0xa8] sm:$0xf0] }
0x139f   :  { %v2898_v57 = vpack.c.bf16 %v2593_v59, %v2592_v17  ;;  %v4279_v17 = vor.u32 %v4385_v58, %v4276_v9 }
0x13a0   :  { %3113 = vmatpush.bf16.msrb.mxu2 %v4275_v55 }
0x13a1   :  { %4261 = vmatmul.msk.bf16.vlgmr.msrb.gmra.mxu3 %vm175_vm0, %v2898_v57  ;;  %3132 = vmatpush.bf16.msra.mxu0 %v4279_v17 }
0x13b6   :  { %v4476_v20 = vpop.permute.xlu0 %4475 }
0x13b7   :  { %v4478_v37 = vunpack.i.h.bf16 %v4476_v20  ;;  %v4477_v49 = vunpack.i.l.bf16 %v4476_v20  ;;  %v4266_v20 = vld [vmem:[#allocation8 + $0x90] sm:$0xf] }
0x13fb   :  { %v4471_v27 = vpop.permute.xlu1 %4470 }
0x13fc   :  { %v4473_v43 = vunpack.i.h.bf16 %v4471_v27  ;;  %v4472_v48 = vunpack.i.l.bf16 %v4471_v27  ;;  %v4384_v27 = vld [vmem:[#allocation8 + $0x94] sm:$0xf0] }
0x13fe   :  { %v2888_v24 = vsel %vm371_vm14, %v2684_v46, %v4473_v43  ;;  %v2887_v30 = vsel %vm371_vm14, %v2682_v31, %v4472_v48  ;;  %v4267_v43 = vor.u32 %v4384_v27, %v4266_v20  ;;  %v4383_v48 = vld [vmem:[#allocation8 + $0x94] sm:$0xf] }
0x13ff   :  { %v2889_v21 = vsel %vm663_vm6, %v2887_v30, %v4477_v49  ;;  %v2890_v13 = vsel %vm663_vm6, %v2888_v24, %v4478_v37  ;;  %v4268_v37 = vld [vmem:[#allocation8 + $0x98] sm:$0xf0] }
0x1400   :  { %v2899_v41 = vpack.c.bf16 %v2890_v13, %v2889_v21  ;;  %v4271_v49 = vor.u32 %v4383_v48, %v4268_v37  ;;  %3114 = vmatpush.bf16.msrb.mxu2 %v4267_v43 }
0x1402   :  { %4262 = vmatmul.msk.bf16.gmra.mxu3 %vm175_vm0, %v2899_v41  ;;  %3133 = vmatpush.bf16.msra.mxu0 %v4271_v49 }
0x1424   :  { %v2933_v56 = vpop.f32.mrf.mxu3 }
0x1425   :  { %v2943_v53 = vadd.f32 %v2933_v56, %v5691_v54 }
0x1427   :  { %v5960_v61 = vadd.f32 %v4511_v29, %v2943_v53 }
0x1429   :  { %v2960_v4 = vsel %vm175_vm0, %v5960_v61, 0.0 }
0x142a   :  { %2961 = vadd.xlane.f32.xlu2 %v2960_v4 }
0x142c   :  { %v2935_v26 = vpop.f32.mrf.mxu3 }
0x142d   :  { %v2944_v63 = vadd.f32 %v2935_v26, %v5679_v52 }
0x142f   :  { %v5965_v16 = vadd.f32 %v4511_v29, %v2944_v63 }
0x1431   :  { %v2963_v0 = vsel %vm175_vm0, %v5965_v16, 0.0 }
0x1432   :  { %2964 = vadd.xlane.f32.xlu1 %v2963_v0 }
0x1485   :  { %v2938_v1 = vpop.f32.mrf.mxu3 }
0x1486   :  { %v2945_v62 = vadd.f32 %v2938_v1, %v5739_v39 }
0x1488   :  { %v5970_v34 = vadd.f32 %v4511_v29, %v2945_v62 }
0x148a   :  { %v2966_v54 = vsel %vm175_vm0, %v5970_v34, 0.0 }
0x148b   :  { %2967 = vadd.xlane.f32.xlu0 %v2966_v54 }
0x148d   :  { %v2940_v5 = vpop.f32.mrf.mxu3 }
0x148e   :  { %v2946_v2 = vadd.f32 %v2940_v5, %v5745_v44  ;;  %v4512_v5 = vld [vmem:[#allocation5 + $0x3] ss:$0 sm:$0xff] }
0x1490   :  { %v5975_v50 = vadd.f32 %v4511_v29, %v2946_v2 }
0x1492   :  { %v2969_v52 = vsel %vm175_vm0, %v5975_v50, 0.0 }
0x1493   :  { %2970 = vadd.xlane.f32.xlu2 %v2969_v52 }
0x149d   :  { %v2962_v8 = vpop.xlane.xlu2 %2961 }
0x149e   :  { %v2972_v10 = vmul.f32 %v2962_v8, %v5128_v14 }
0x14a0   :  { %v5981_v39 = vsub.f32 %v5960_v61, %v2972_v10  ;;  %v4513_v10 = vld [vmem:[#allocation7 + $0x3] ss:$0 sm:$0xff] }
0x14a2   :  { %v2980_v36 = vmul.f32 %v5981_v39, %v5981_v39 }
0x14a4   :  { %v2984_v25 = vsel %vm175_vm0, %v2980_v36, 0.0 }
0x14a5   :  { %v2965_v45 = vpop.xlane.xlu1 %2964  ;;  %2985 = vadd.xlane.f32.xlu1 %v2984_v25 }
0x14a6   :  { %v2973_v44 = vmul.f32 %v2965_v45, %v5128_v14 }
0x14a8   :  { %v5988_v11 = vsub.f32 %v5965_v16, %v2973_v44 }
0x14aa   :  { %v2981_v22 = vmul.f32 %v5988_v11, %v5988_v11 }
0x14ac   :  { %v2987_v60 = vsel %vm175_vm0, %v2981_v22, 0.0 }
0x14ad   :  { %2988 = vadd.xlane.f32.xlu0 %v2987_v60 }
0x14fe   :  { %v2968_v47 = vpop.xlane.xlu0 %2967 }
0x14ff   :  { %v2974_v23 = vmul.f32 %v2968_v47, %v5128_v14 }
0x1501   :  { %v5995_v15 = vsub.f32 %v5970_v34, %v2974_v23 }
0x1503   :  { %v2982_v31 = vmul.f32 %v5995_v15, %v5995_v15 }
0x1505   :  { %v2990_v46 = vsel %vm175_vm0, %v2982_v31, 0.0 }
0x1506   :  { %2991 = vadd.xlane.f32.xlu2 %v2990_v46  ;;  %v2971_v18 = vpop.xlane.xlu2 %2970 }
0x1507   :  { %v2975_v19 = vmul.f32 %v2971_v18, %v5128_v14 }
0x1509   :  { %v6002_v33 = vsub.f32 %v5975_v50, %v2975_v19 }
0x150b   :  { %v2983_v32 = vmul.f32 %v6002_v33, %v6002_v33 }
0x150d   :  { %v2993_v42 = vsel %vm175_vm0, %v2983_v32, 0.0 }
0x150e   :  { %2994 = vadd.xlane.f32.xlu1 %v2993_v42 }
0x1518   :  { %v2986_v35 = vpop.xlane.xlu1 %2985 }
0x1519   :  { %v2996_v59 = vmul.f32 %v2986_v35, %v5128_v14 }
0x151b   :  { %v3000_v57 = vadd.f32 1e-05, %v2996_v59 }
0x151d   :  { %4697 = vrsqrt.f32 %v3000_v57  ;;  %vm3010_vm15 = vweird.f32 %v3000_v57 }
0x1520   :  { %v2989_v24 = vpop.xlane.xlu0 %2988 }
0x1521   :  { %v2997_v30 = vmul.f32 %v2989_v24, %v5128_v14 }
0x1523   :  { %v4698_v21 = vpop.eup %4697  ;;  %v3001_v13 = vadd.f32 1e-05, %v2997_v30 }
0x1524   :  { %v3005_v41 = vmul.f32 %v4698_v21, %v3000_v57  ;;  %vm3011_vm13 = vweird.f32 %v4698_v21 }
0x1525   :  { %4699 = vrsqrt.f32 %v3001_v13  ;;  %vm3012_vm1 = vmor %vm3010_vm15, %vm3011_vm13  ;;  %vm3020_vm3 = vweird.f32 %v3001_v13 }
0x1526   :  { %v3006_v29 = vmul.f32 %v4698_v21, %v3005_v41 }
0x1528   :  { %v3007_v56 = vmul.f32 0.5, %v3006_v29 }
0x152a   :  { %v3008_v53 = vsub.f32 1.5, %v3007_v56 }
0x152b   :  { %v4700_v4 = vpop.eup %4699 }
0x152c   :  { %v3009_v26 = vmul.f32 %v4698_v21, %v3008_v53  ;;  %v3015_v63 = vmul.f32 %v4700_v4, %v3001_v13  ;;  %vm3021_vm2 = vweird.f32 %v4700_v4 }
0x152d   :  { %vm3022_vm4 = vmor %vm3020_vm3, %vm3021_vm2 }
0x152e   :  { %v3016_v0 = vmul.f32 %v4700_v4, %v3015_v63  ;;  %v3013_v1 = vsel %vm3012_vm1, %v4698_v21, %v3009_v26 }
0x152f   :  { %v3044_v2 = vmul.f32 %v3013_v1, %v5981_v39 }
0x1530   :  { %v3017_v62 = vmul.f32 0.5, %v3016_v0 }
0x1531   :  { %v3051_v36 = vmul.f32 %v4512_v5, %v3044_v2 }
0x1532   :  { %v3018_v54 = vsub.f32 1.5, %v3017_v62 }
0x1533   :  { %v3058_v44 = vadd.f32 %v4513_v10, %v3051_v36 }
0x1534   :  { %v3019_v52 = vmul.f32 %v4700_v4, %v3018_v54 }
0x1536   :  { %v3023_v8 = vsel %vm3022_vm4, %v4700_v4, %v3019_v52 }
0x1537   :  { %v3045_v25 = vmul.f32 %v3023_v8, %v5988_v11 }
0x1539   :  { %v3052_v45 = vmul.f32 %v4512_v5, %v3045_v25 }
0x153b   :  { %v3059_v22 = vadd.f32 %v4513_v10, %v3052_v45 }
0x153d   :  { %v3069_v60 = vpack.c.bf16 %v3059_v22, %v3058_v44 }
0x153f   :  { %4288 = vmatmul.msk.bf16.vlgmr.msrb.gmra.mxu2 %vm175_vm0, %v3069_v60  ;;  %4290 = vmatmul.msk.bf16.vlgmr.msra.gmra.mxu0 %vm175_vm0, %v3069_v60 }
0x1579   :  { %v2992_v47 = vpop.xlane.xlu2 %2991 }
0x157a   :  { %v2998_v23 = vmul.f32 %v2992_v47, %v5128_v14 }
0x157c   :  { %v3002_v39 = vadd.f32 1e-05, %v2998_v23 }
0x157e   :  { %4701 = vrsqrt.f32 %v3002_v39  ;;  %vm3030_vm7 = vweird.f32 %v3002_v39 }
0x1581   :  { %v2995_v31 = vpop.xlane.xlu1 %2994 }
0x1582   :  { %v2999_v46 = vmul.f32 %v2995_v31, %v5128_v14 }
0x1584   :  { %v4702_v18 = vpop.eup %4701  ;;  %v3003_v19 = vadd.f32 1e-05, %v2999_v46 }
0x1585   :  { %v3025_v32 = vmul.f32 %v4702_v18, %v3002_v39  ;;  %vm3031_vm5 = vweird.f32 %v4702_v18 }
0x1586   :  { %4703 = vrsqrt.f32 %v3003_v19  ;;  %vm3032_vm8 = vmor %vm3030_vm7, %vm3031_vm5  ;;  %vm3040_vm10 = vweird.f32 %v3003_v19 }
0x1587   :  { %v3026_v11 = vmul.f32 %v4702_v18, %v3025_v32 }
0x1589   :  { %v3027_v42 = vmul.f32 0.5, %v3026_v11 }
0x158b   :  { %v3028_v12 = vsub.f32 1.5, %v3027_v42 }
0x158c   :  { %v4704_v28 = vpop.eup %4703 }
0x158d   :  { %v3029_v38 = vmul.f32 %v4702_v18, %v3028_v12  ;;  %v3035_v40 = vmul.f32 %v4704_v28, %v3003_v19  ;;  %vm3041_vm9 = vweird.f32 %v4704_v28 }
0x158e   :  { %vm3042_vm11 = vmor %vm3040_vm10, %vm3041_vm9 }
0x158f   :  { %v3036_v3 = vmul.f32 %v4704_v28, %v3035_v40  ;;  %v3033_v6 = vsel %vm3032_vm8, %v4702_v18, %v3029_v38 }
0x1590   :  { %v3046_v58 = vmul.f32 %v3033_v6, %v5995_v15 }
0x1591   :  { %v3037_v51 = vmul.f32 0.5, %v3036_v3 }
0x1592   :  { %v3053_v59 = vmul.f32 %v4512_v5, %v3046_v58 }
0x1593   :  { %v3038_v7 = vsub.f32 1.5, %v3037_v51 }
0x1594   :  { %v3060_v57 = vadd.f32 %v4513_v10, %v3053_v59 }
0x1595   :  { %v3039_v35 = vmul.f32 %v4704_v28, %v3038_v7 }
0x1597   :  { %v3043_v55 = vsel %vm3042_vm11, %v4704_v28, %v3039_v35 }
0x1598   :  { %v3047_v9 = vmul.f32 %v3043_v55, %v6002_v33 }
0x159a   :  { %v3054_v17 = vmul.f32 %v4512_v5, %v3047_v9 }
0x159c   :  { %v3061_v20 = vadd.f32 %v4513_v10, %v3054_v17 }
0x159e   :  { %v3070_v27 = vpack.c.bf16 %v3061_v20, %v3060_v57 }
0x15a0   :  { %4289 = vmatmul.msk.bf16.gmra.mxu2 %vm175_vm0, %v3070_v27  ;;  %4291 = vmatmul.msk.bf16.gmra.mxu0 %vm175_vm0, %v3070_v27 }
0x15bc   :  { %v6064_v22 = vpop.f32.mrf.mxu0 }
0x15c2   :  { %v3116_v43 = vpop.f32.mrf.mxu2 }
0x15c4   :  { %v6066_v60 = vpop.f32.mrf.mxu0 }
0x15ca   :  { %v3118_v48 = vpop.f32.mrf.mxu2 }
0x15cb   :  { %v6019_v37 = vpack.c.bf16 %v3118_v48, %v3116_v43 }
0x15cd   :  { %3238 = vrot.lane.b32.xlu2 %v6019_v37, %s5008_s8  ;;  %3240 = vrot.lane.b32.xlu0 %v6019_v37, %s5003_s1 }
0x15ce   :  { %3147 = vrot.lane.b32.xlu1 %v6019_v37, %s5009_s10 }
0x15d6   :  { %3331 = vrot.lane.b32.xlu1 %v6019_v37, %s5011_s28 }
0x161d   :  { %v6068_v47 = vpop.f32.mrf.mxu0 }
0x1623   :  { %v3121_v15 = vpop.f32.mrf.mxu2 }
0x1625   :  { %v6070_v23 = vpop.f32.mrf.mxu0 }
0x1627   :  { %v3239_v41 = vpop.permute.xlu2 %3238 }
0x162b   :  { %v3123_v33 = vpop.f32.mrf.mxu2 }
0x162c   :  { %v6029_v49 = vpack.c.bf16 %v3123_v33, %v3121_v15 }
0x162e   :  { %3535 = vrot.lane.b32.xlu1 %v6029_v49, %s5008_s8  ;;  %3630 = vrot.lane.b32.xlu2 %v6029_v49, %s5010_s25 }
0x162f   :  { %3444 = vrot.lane.b32.xlu0 %v6029_v49, %s5009_s10  ;;  %s4055_s10 = sshll.u32 %s6404_s12, 4  ;;  %s4056_s10 = int_to_ptr.hbm [resolvable:$true] %s4055_s10 }
0x1636   :  { %3537 = vrot.lane.b32.xlu2 %v6029_v49, %s5003_s1 }
0x1637   :  { %3333 = vrot.lane.b32.xlu0 %v6019_v37, %s5010_s25 }
0x163f   :  { %v3241_v24 = vpop.permute.xlu0 %3240  ;;  %3628 = vrot.lane.b32.xlu0 %v6029_v49, %s5011_s28 }
0x1640   :  { %v3246_v30 = vsel %vm371_vm14, %v3241_v24, 0  ;;  %v3148_v21 = vpop.permute.xlu1 %3147 }
0x1641   :  { %v3153_v13 = vsel %vm371_vm14, %v3148_v21, 0  ;;  %3255 = vmatpush.bf16.xpose.msra.mxu3 %v3246_v30 }
0x1642   :  { %3162 = vmatpush.bf16.xpose.msra.mxu1 %v3153_v13 }
0x1648   :  { %4294 = vmatmul.msk.bf16.vlgmr.msra.gmra.mxu3 %vm371_vm14, %v3239_v41  ;;  %v3332_v62 = vpop.permute.xlu1 %3331 }
0x1649   :  { %4292 = vmatmul.msk.bf16.vlgmr.msra.gmra.mxu1 %vm371_vm14, %v6019_v37 }
0x1688   :  { %v3631_v29 = vpop.permute.xlu2 %3630 }
0x1689   :  { %v3636_v4 = vsel %vm371_vm14, %v3631_v29, 0 }
0x1690   :  { %v3538_v26 = vpop.permute.xlu2 %3537 }
0x1691   :  { %v3543_v1 = vsel %vm371_vm14, %v3538_v26, 0 }
0x16a0   :  { %v3536_v5 = vpop.permute.xlu1 %3535 }
0x16a1   :  { %v3445_v56 = vpop.permute.xlu0 %3444 }
0x16a2   :  { %v3450_v53 = vsel %vm371_vm14, %v3445_v56, 0 }
0x16a3   :  { %3459 = vmatpush.bf16.xpose.msrb.mxu3 %v3450_v53 }
0x16a9   :  { %v3334_v63 = vpop.permute.xlu0 %3333 }
0x16aa   :  { %v3339_v0 = vsel %vm371_vm14, %v3334_v63, 0  ;;  %4298 = vmatmul.msk.bf16.vlgmr.msrb.gmra.mxu3 %vm371_vm14, %v6029_v49 }
0x16ab   :  { %3645 = vmatpush.bf16.xpose.msra.mxu3 %v3636_v4  ;;  %3348 = vmatpush.bf16.xpose.msrb.mxu0 %v3339_v0 }
0x16b1   :  { %v3629_v54 = vpop.permute.xlu0 %3628 }
0x16b2   :  { %4296 = vmatmul.msk.bf16.vlgmr.msrb.gmra.mxu0 %vm371_vm14, %v3332_v62 }
0x16b3   :  { %3552 = vmatpush.bf16.xpose.msra.mxu0 %v3543_v1 }
0x16ba   :  { %4302 = vmatmul.msk.bf16.vlgmr.msra.gmra.mxu3 %vm371_vm14, %v3629_v54 }
0x16c2   :  { %4300 = vmatmul.msk.bf16.vlgmr.msra.gmra.mxu0 %vm371_vm14, %v3536_v5 }
0x16c6   :  { %v3164_v2 = vpop.f32.mrf.mxu1 }
0x16c7   :  { %v3169_v52 = vsel %vm371_vm14, %v3164_v2, -inf }
0x16c8   :  { %3170 = vmax.xlane.f32.xlu1 %v3169_v52 }
0x16cb   :  { %v3257_v8 = vpop.f32.mrf.mxu3 }
0x16cc   :  { %v3262_v10 = vsel %vm371_vm14, %v3257_v8, -inf }
0x16cd   :  { %3263 = vmax.xlane.f32.xlu0 %v3262_v10 }
0x16ce   :  { %v3166_v36 = vpop.f32.mrf.mxu1 }
0x16cf   :  { %v3172_v25 = vsel %vm371_vm14, %v3166_v36, -inf }
0x16d0   :  { %3173 = vmax.xlane.f32.xlu2 %v3172_v25 }
0x16d3   :  { %v6060_v45 = vpop.f32.mrf.mxu3 }
0x16d4   :  { %v3265_v44 = vsel %vm371_vm14, %v6060_v45, -inf }
0x16d8   :  { %3266 = vmax.xlane.f32.xlu2 %v3265_v44 }
0x172d   :  { %v6072_v39 = vpop.f32.mrf.mxu3 }
0x172e   :  { %v3466_v31 = vsel %vm371_vm14, %v6072_v39, -inf }
0x172f   :  { %v3350_v46 = vpop.f32.mrf.mxu0  ;;  %3467 = vmax.xlane.f32.xlu0 %v3466_v31 }
0x1730   :  { %v3355_v18 = vsel %vm371_vm14, %v3350_v46, -inf }
0x1731   :  { %3356 = vmax.xlane.f32.xlu2 %v3355_v18 }
0x1735   :  { %v6077_v19 = vpop.f32.mrf.mxu3 }
0x1736   :  { %v3469_v32 = vsel %vm371_vm14, %v6077_v19, -inf }
0x1737   :  { %v3352_v11 = vpop.f32.mrf.mxu0  ;;  %3470 = vmax.xlane.f32.xlu1 %v3469_v32 }
0x1738   :  { %v3358_v42 = vsel %vm371_vm14, %v3352_v11, -inf }
0x1739   :  { %3359 = vmax.xlane.f32.xlu0 %v3358_v42 }
0x173b   :  { %v3171_v12 = vpop.xlane.xlu1 %3170 }
0x173c   :  { %v3175_v40 = vsub.f32 %v3164_v2, %v3171_v12 }
0x173d   :  { %v6082_v28 = vpop.f32.mrf.mxu3 }
0x173e   :  { %v3652_v38 = vsel %vm371_vm14, %v6082_v28, -inf  ;;  %v3177_v51 = vmul.f32 1.442695, %v3175_v40 }
0x173f   :  { %3653 = vmax.xlane.f32.xlu1 %v3652_v38  ;;  %v6086_v3 = vpop.f32.mrf.mxu0 }
0x1740   :  { %v3559_v6 = vsel %vm371_vm14, %v6086_v3, -inf  ;;  %4705 = vpow2.f32 %v3177_v51  ;;  %v3264_v9 = vpop.xlane.xlu0 %3263 }
0x1741   :  { %3560 = vmax.xlane.f32.xlu0 %v3559_v6  ;;  %v3268_v59 = vsub.f32 %v3257_v8, %v3264_v9 }
0x1743   :  { %v3270_v17 = vmul.f32 1.442695, %v3268_v59  ;;  %v3174_v57 = vpop.xlane.xlu2 %3173 }
0x1744   :  { %v3176_v27 = vsub.f32 %v3166_v36, %v3174_v57 }
0x1745   :  { %v6100_v20 = vpop.f32.mrf.mxu3  ;;  %4707 = vpow2.f32 %v3270_v17 }
0x1746   :  { %v6096_v35 = vpop.eup %4705  ;;  %v3655_v43 = vsel %vm371_vm14, %v6100_v20, -inf  ;;  %v3179_v48 = vmul.f32 1.442695, %v3176_v27 }
0x1747   :  { %v6090_v7 = vpop.f32.mrf.mxu0  ;;  %v3181_v55 = vsel %vm371_vm14, %v6096_v35, 0.0 }
0x1748   :  { %v3562_v58 = vsel %vm371_vm14, %v6090_v7, -inf  ;;  %4709 = vpow2.f32 %v3179_v48 }
0x1749   :  { %3311 = vrot.lane.b32.xlu2 %v6019_v37, %s4994_s26  ;;  %3563 = vmax.xlane.f32.xlu1 %v3562_v58 }
0x174b   :  { %v6104_v15 = vpop.eup %4707  ;;  %v3267_v21 = vpop.xlane.xlu2 %3266 }
0x174c   :  { %v3274_v33 = vsel %vm371_vm14, %v6104_v15, 0.0  ;;  %v3269_v56 = vsub.f32 %v6060_v45, %v3267_v21 }
0x174e   :  { %v6108_v24 = vpop.eup %4709  ;;  %v3272_v26 = vmul.f32 1.442695, %v3269_v56 }
0x174f   :  { %v3184_v30 = vsel %vm371_vm14, %v6108_v24, 0.0 }
0x1751   :  { %3182 = vadd.xlane.f32.xlu1 %v3181_v55 }
0x1772   :  { %3656 = vmax.xlane.f32.xlu2 %v3655_v43 }
0x177a   :  { %3275 = vadd.xlane.f32.xlu2 %v3274_v33 }
0x1782   :  { %3185 = vadd.xlane.f32.xlu2 %v3184_v30 }
0x179a   :  { %3515 = vrot.lane.b32.xlu2 %v6029_v49, %s5012_s0 }
0x17a2   :  { %3608 = vrot.lane.b32.xlu2 %v6029_v49, %s4994_s26  ;;  %v3468_v13 = vpop.xlane.xlu0 %3467 }
0x17a3   :  { %v3472_v62 = vsub.f32 %v6072_v39, %v3468_v13 }
0x17a4   :  { %v3357_v41 = vpop.xlane.xlu2 %3356 }
0x17a5   :  { %v3361_v29 = vsub.f32 %v3350_v46, %v3357_v41  ;;  %v3474_v52 = vmul.f32 1.442695, %v3472_v62 }
0x17a7   :  { %v3363_v53 = vmul.f32 1.442695, %v3361_v29 }
0x17a9   :  { %4711 = vpow2.f32 %v3363_v53 }
0x17aa   :  { %v3471_v4 = vpop.xlane.xlu1 %3470  ;;  %4713 = vpow2.f32 %v3272_v26 }
0x17ab   :  { %v3473_v49 = vsub.f32 %v6077_v19, %v3471_v4 }
0x17ac   :  { %v3360_v63 = vpop.xlane.xlu0 %3359  ;;  %v3312_v0 = vpop.permute.xlu2 %3311 }
0x17ad   :  { %v3362_v1 = vsub.f32 %v3352_v11, %v3360_v63  ;;  %3324 = vmatpush.bf16.msra.mxu2 %v3312_v0  ;;  %v3476_v8 = vmul.f32 1.442695, %v3473_v49 }
0x17af   :  { %v6118_v54 = vpop.eup %4711  ;;  %v3365_v5 = vmul.f32 1.442695, %v3362_v1 }
0x17b0   :  { %v3367_v2 = vsel %vm371_vm14, %v6118_v54, 0.0  ;;  %v6123_v36 = vpop.eup %4713 }
0x17b1   :  { %4715 = vpow2.f32 %v3365_v5  ;;  %3368 = vadd.xlane.f32.xlu0 %v3367_v2  ;;  %v3277_v39 = vsel %vm371_vm14, %v6123_v36, 0.0 }
0x17b2   :  { %v3654_v10 = vpop.xlane.xlu1 %3653  ;;  %4717 = vpow2.f32 %v3474_v52 }
0x17b3   :  { %4719 = vpow2.f32 %v3476_v8  ;;  %v3658_v45 = vsub.f32 %v6082_v28, %v3654_v10 }
0x17b4   :  { %v3561_v51 = vpop.xlane.xlu0 %3560 }
0x17b5   :  { %v3660_v31 = vmul.f32 1.442695, %v3658_v45  ;;  %v3565_v55 = vsub.f32 %v6086_v3, %v3561_v51 }
0x17b7   :  { %v6125_v25 = vpop.eup %4715  ;;  %4721 = vpow2.f32 %v3660_v31  ;;  %v3567_v17 = vmul.f32 1.442695, %v3565_v55 }
0x17b8   :  { %v3370_v44 = vsel %vm371_vm14, %v6125_v25, 0.0  ;;  %v6132_v46 = vpop.eup %4717 }
0x17b9   :  { %3371 = vadd.xlane.f32.xlu1 %v3370_v44  ;;  %3278 = vadd.xlane.f32.xlu0 %v3277_v39  ;;  %v6134_v18 = vpop.eup %4719  ;;  %v3478_v32 = vsel %vm371_vm14, %v6132_v46, 0.0  ;;  %v3701_v39 = vpack.c.bf16 %v6070_v23, %v6068_v47 }
0x17ba   :  { %v3481_v19 = vsel %vm371_vm14, %v6134_v18, 0.0 }
0x17bc   :  { %v3564_v12 = vpop.xlane.xlu1 %3563 }
0x17bd   :  { %v6140_v11 = vpop.eup %4721  ;;  %v3566_v40 = vsub.f32 %v6090_v7, %v3564_v12 }
0x17be   :  { %v3664_v42 = vsel %vm371_vm14, %v6140_v11, 0.0 }
0x17bf   :  { %v3569_v58 = vmul.f32 1.442695, %v3566_v40  ;;  %v3404_v40 = vpack.c.bf16 %v6066_v60, %v6064_v22 }
0x17c1   :  { %3482 = vadd.xlane.f32.xlu1 %v3481_v19  ;;  %3479 = vadd.xlane.f32.xlu0 %v3478_v32 }
0x17c4   :  { %v6165_v48 = vpop.xlane.xlu1 %3182 }
0x17c5   :  { %vm3192_vm13 = vweird.f32 %v6165_v48 }
0x17c9   :  { %3665 = vadd.xlane.f32.xlu1 %v3664_v42 }
0x17d5   :  { %3218 = vrot.lane.b32.xlu0 %v6019_v37, %s5012_s0 }
0x17e5   :  { %v3657_v28 = vpop.xlane.xlu2 %3656 }
0x17e6   :  { %v3659_v38 = vsub.f32 %v6100_v20, %v3657_v28 }
0x17e8   :  { %v3662_v6 = vmul.f32 1.442695, %v3659_v38 }
0x17ea   :  { %4723 = vpow2.f32 %v3662_v6  ;;  %v3196_v6 = vand.u32 2147483647, %v6165_v48 }
0x17eb   :  { %4725 = vpow2.f32 %v3569_v58 }
0x17ec   :  { %4727 = vpow2.f32 %v3567_v17 }
0x17ed   :  { %v6149_v9 = vpop.xlane.xlu2 %3275 }
0x17ee   :  { %4729 = vrcp.f32 %v6149_v9  ;;  %vm3285_vm1 = vweird.f32 %v6149_v9  ;;  %v3291_v45 = vand.u32 2147483648, %v6149_v9  ;;  %v3289_v31 = vand.u32 2147483647, %v6149_v9 }
0x17ef   :  { %4731 = vrcp.f32 %v6165_v48 }
0x17f0   :  { %v6151_v59 = vpop.eup %4723  ;;  %v3292_v51 = vor.u32 1.1754944e-38, %v3291_v45  ;;  %vm3290_vm8 = vcmp.eq.f32.partialorder %v3289_v31, 8.507059e+37 }
0x17f1   :  { %v3667_v37 = vsel %vm371_vm14, %v6151_v59, 0.0  ;;  %v6157_v7 = vpop.eup %4725 }
0x17f2   :  { %3668 = vadd.xlane.f32.xlu1 %v3667_v37  ;;  %v3574_v20 = vsel %vm371_vm14, %v6157_v7, 0.0  ;;  %v6161_v3 = vpop.eup %4727 }
0x17f3   :  { %v3571_v43 = vsel %vm371_vm14, %v6161_v3, 0.0 }
0x17f4   :  { %v4730_v30 = vpop.eup %4729 }
0x17f5   :  { %v6155_v57 = vpop.xlane.xlu2 %3185  ;;  %v6172_v21 = vpop.eup %4731  ;;  %v3281_v13 = vmul.f32 %v4730_v30, %v6149_v9  ;;  %vm3286_vm12 = vweird.f32 %v4730_v30 }
0x17f6   :  { %4733 = vrcp.f32 %v6155_v57  ;;  %v3188_v29 = vmul.f32 %v6172_v21, %v6165_v48  ;;  %vm3193_vm15 = vweird.f32 %v6172_v21  ;;  %vm6196_vm2 = vmor %vm3285_vm1, %vm3286_vm12  ;;  %vm3206_vm7 = vweird.f32 %v6155_v57 }
0x17f7   :  { %v3282_v56 = vsub.f32 1.0, %v3281_v13  ;;  %vm6211_vm5 = vmor %vm3192_vm13, %vm3193_vm15  ;;  %v3212_v58 = vand.u32 2147483648, %v6155_v57  ;;  %v3210_v17 = vand.u32 2147483647, %v6155_v57  ;;  %vm3197_vm15 = vcmp.eq.f32.partialorder %v3196_v6, 8.507059e+37 }
0x17f8   :  { %v3189_v63 = vsub.f32 1.0, %v3188_v29 }
0x17f9   :  { %v3283_v0 = vmul.f32 %v4730_v30, %v3282_v56  ;;  %vm3211_vm13 = vcmp.eq.f32.partialorder %v3210_v17, 8.507059e+37 }
0x17fa   :  { %3575 = vadd.xlane.f32.xlu1 %v3574_v20  ;;  %v3190_v62 = vmul.f32 %v6172_v21, %v3189_v63 }
0x17fb   :  { %v3284_v5 = vadd.f32 %v4730_v30, %v3283_v0 }
0x17fc   :  { %v6175_v41 = vpop.eup %4733  ;;  %v3191_v44 = vadd.f32 %v6172_v21, %v3190_v62 }
0x17fd   :  { %v3516_v27 = vpop.permute.xlu2 %3515  ;;  %v3202_v26 = vmul.f32 %v6175_v41, %v6155_v57  ;;  %v3288_v32 = vsel %vm6196_vm2, %v4730_v30, %v3284_v5  ;;  %vm3207_vm3 = vweird.f32 %v6175_v41 }
0x17fe   :  { %3528 = vmatpush.bf16.msrb.mxu2 %v3516_v27  ;;  %vm6220_vm9 = vmor %vm3206_vm7, %vm3207_vm3  ;;  %v3198_v27 = vand.u32 2147483648, %v6165_v48  ;;  %v3195_v56 = vsel %vm6211_vm5, %v6172_v21, %v3191_v44  ;;  %v3213_v48 = vor.u32 1.1754944e-38, %v3212_v58 }
0x17ff   :  { %3572 = vadd.xlane.f32.xlu0 %v3571_v43  ;;  %v3203_v1 = vsub.f32 1.0, %v3202_v26  ;;  %v3293_v43 = vsel %vm3290_vm8, %v3292_v51, %v3288_v32 }
0x1800   :  { %v3308_v62 = vmul.f32 %v6104_v15, %v3293_v43 }
0x1801   :  { %v3204_v8 = vmul.f32 %v6175_v41, %v3203_v1 }
0x1803   :  { %v3205_v12 = vadd.f32 %v6175_v41, %v3204_v8  ;;  %v3199_v8 = vor.u32 1.1754944e-38, %v3198_v27 }
0x1805   :  { %v3209_v57 = vsel %vm6220_vm9, %v6175_v41, %v3205_v12  ;;  %v3200_v15 = vsel %vm3197_vm15, %v3199_v8, %v3195_v56  ;;  %v3609_v43 = vpop.permute.xlu2 %3608 }
0x1806   :  { %v3215_v51 = vmul.f32 %v6096_v35, %v3200_v15 }
0x1824   :  { %v6170_v33 = vpop.xlane.xlu0 %3368 }
0x1825   :  { %vm3378_vm15 = vweird.f32 %v6170_v33 }
0x182c   :  { %v6179_v53 = vpop.xlane.xlu1 %3371  ;;  %v3279_v4 = vpop.xlane.xlu0 %3278 }
0x182d   :  { %4735 = vrcp.f32 %v3279_v4  ;;  %v3305_v42 = vand.u32 2147483648, %v3279_v4  ;;  %v3303_v38 = vand.u32 2147483647, %v3279_v4  ;;  %vm3299_vm10 = vweird.f32 %v3279_v4 }
0x182f   :  { %v3306_v30 = vor.u32 1.1754944e-38, %v3305_v42  ;;  %vm3304_vm12 = vcmp.eq.f32.partialorder %v3303_v38, 8.507059e+37 }
0x1833   :  { %v4736_v49 = vpop.eup %4735 }
0x1834   :  { %v6184_v2 = vpop.xlane.xlu1 %3482  ;;  %v6186_v52 = vpop.xlane.xlu0 %3479  ;;  %v3295_v10 = vmul.f32 %v4736_v49, %v3279_v4  ;;  %vm3300_vm4 = vweird.f32 %v4736_v49 }
0x1835   :  { %4737 = vrcp.f32 %v6184_v2  ;;  %vm3301_vm11 = vmor %vm3299_vm10, %vm3300_vm4  ;;  %vm3503_vm3 = vweird.f32 %v6184_v2  ;;  %v3509_v42 = vand.u32 2147483648, %v6184_v2  ;;  %vm3489_vm5 = vweird.f32 %v6186_v52 }
0x1836   :  { %4739 = vrcp.f32 %v6179_v53  ;;  %v3296_v19 = vsub.f32 1.0, %v3295_v10  ;;  %v3214_v10 = vsel %vm3211_vm13, %v3213_v48, %v3209_v57  ;;  %v3493_v38 = vand.u32 2147483647, %v6186_v52 }
0x1837   :  { %4741 = vrcp.f32 %v6186_v52  ;;  %v3382_v48 = vand.u32 2147483647, %v6170_v33 }
0x1838   :  { %4743 = vrcp.f32 %v6170_v33  ;;  %v3297_v28 = vmul.f32 %v4736_v49, %v3296_v19  ;;  %v3216_v19 = vmul.f32 %v6108_v24, %v3214_v10  ;;  %v3507_v24 = vand.u32 2147483647, %v6184_v2 }
0x1839   :  { %vm3494_vm9 = vcmp.eq.f32.partialorder %v3493_v38, 8.507059e+37 }
0x183a   :  { %v3298_v37 = vadd.f32 %v4736_v49, %v3297_v28  ;;  %v3495_v28 = vand.u32 2147483648, %v6186_v52  ;;  %v3217_v22 = vpack.c.bf16 %v3216_v19, %v3215_v51  ;;  %vm3508_vm8 = vcmp.eq.f32.partialorder %v3507_v24, 8.507059e+37 }
0x183b   :  { %v6218_v55 = vpop.eup %4737 }
0x183c   :  { %v6225_v20 = vpop.eup %4739  ;;  %v3499_v13 = vmul.f32 %v6218_v55, %v6184_v2  ;;  %v3302_v4 = vsel %vm3301_vm11, %v4736_v49, %v3298_v37  ;;  %vm3504_vm1 = vweird.f32 %v6218_v55  ;;  %v3496_v37 = vor.u32 1.1754944e-38, %v3495_v28 }
0x183d   :  { %v4742_v29 = vpop.eup %4741  ;;  %v3307_v63 = vsel %vm3304_vm12, %v3306_v30, %v3302_v4  ;;  %v3388_v5 = vmul.f32 %v6225_v20, %v6179_v53  ;;  %vm6256_vm4 = vmor %vm3503_vm3, %vm3504_vm1  ;;  %vm3393_vm10 = vweird.f32 %v6225_v20  ;;  %vm3392_vm12 = vweird.f32 %v6179_v53 }
0x183e   :  { %v6237_v26 = vpop.eup %4743  ;;  %v3500_v0 = vsub.f32 1.0, %v3499_v13  ;;  %v3485_v1 = vmul.f32 %v4742_v29, %v6186_v52  ;;  %v3309_v21 = vmul.f32 %v6123_v36, %v3307_v63  ;;  %vm3490_vm2 = vweird.f32 %v4742_v29  ;;  %vm3394_vm13 = vmor %vm3392_vm12, %vm3393_vm10 }
0x183f   :  { %v3374_v45 = vmul.f32 %v6237_v26, %v6170_v33  ;;  %v3389_v36 = vsub.f32 1.0, %v3388_v5  ;;  %vm6265_vm7 = vmor %vm3489_vm5, %vm3490_vm2  ;;  %v3510_v52 = vor.u32 1.1754944e-38, %v3509_v42  ;;  %vm3379_vm11 = vweird.f32 %v6237_v26 }
0x1840   :  { %v3501_v41 = vmul.f32 %v6218_v55, %v3500_v0  ;;  %v3486_v49 = vsub.f32 1.0, %v3485_v1  ;;  %v3310_v44 = vpack.c.bf16 %v3309_v21, %v3308_v62  ;;  %v3384_v4 = vand.u32 2147483648, %v6170_v33  ;;  %vm3380_vm1 = vmor %vm3378_vm15, %vm3379_vm11  ;;  %v3666_v21 = vpop.xlane.xlu1 %3665 }
0x1841   :  { %v3375_v47 = vsub.f32 1.0, %v3374_v45  ;;  %v3390_v58 = vmul.f32 %v6225_v20, %v3389_v36  ;;  %vm3383_vm3 = vcmp.eq.f32.partialorder %v3382_v48, 8.507059e+37  ;;  %4745 = vrcp.f32 %v3666_v21 }
0x1842   :  { %v3487_v31 = vmul.f32 %v4742_v29, %v3486_v49  ;;  %v3502_v32 = vadd.f32 %v6218_v55, %v3501_v41  ;;  %4295 = vmatmul.msk.bf16.vlgmr.msra.gmra.mxu2 %vm371_vm14, %v3310_v44  ;;  %vm3675_vm5 = vweird.f32 %v3666_v21 }
0x1843   :  { %3712 = vmatpush.bf16.msra.mxu2 %v3701_v39  ;;  %v3376_v60 = vmul.f32 %v6237_v26, %v3375_v47  ;;  %v3391_v30 = vadd.f32 %v6225_v20, %v3390_v58 }
0x1844   :  { %v3488_v12 = vadd.f32 %v4742_v29, %v3487_v31  ;;  %v3506_v9 = vsel %vm6256_vm4, %v6218_v55, %v3502_v32  ;;  %v3398_v55 = vand.u32 2147483648, %v6179_v53  ;;  %v3681_v31 = vand.u32 2147483648, %v3666_v21 }
0x1845   :  { %v3511_v35 = vsel %vm3508_vm8, %v3510_v52, %v3506_v9  ;;  %v3377_v13 = vadd.f32 %v6237_v26, %v3376_v60  ;;  %v3395_v63 = vsel %vm3394_vm13, %v6225_v20, %v3391_v30 }
0x1846   :  { %v3492_v2 = vsel %vm6265_vm7, %v4742_v29, %v3488_v12  ;;  %v3396_v29 = vand.u32 2147483647, %v6179_v53  ;;  %v3513_v56 = vmul.f32 %v6134_v18, %v3511_v35  ;;  %v3399_v0 = vor.u32 1.1754944e-38, %v3398_v55 }
0x1847   :  { %v3219_v17 = vpop.permute.xlu0 %3218  ;;  %v3497_v27 = vsel %vm3494_vm9, %v3496_v37, %v3492_v2  ;;  %v3381_v1 = vsel %vm3380_vm1, %v6237_v26, %v3377_v13  ;;  %v3385_v53 = vor.u32 1.1754944e-38, %v3384_v4  ;;  %v4746_v20 = vpop.eup %4745  ;;  %v3682_v12 = vor.u32 1.1754944e-38, %v3681_v31 }
0x1848   :  { %3231 = vmatpush.bf16.msrb.mxu1 %v3219_v17  ;;  %v3512_v57 = vmul.f32 %v6132_v46, %v3497_v27  ;;  %vm3397_vm2 = vcmp.eq.f32.partialorder %v3396_v29, 8.507059e+37  ;;  %v3671_v10 = vmul.f32 %v4746_v20, %v3666_v21  ;;  %vm3676_vm4 = vweird.f32 %v4746_v20 }
0x1849   :  { %v3400_v5 = vsel %vm3397_vm2, %v3399_v0, %v3395_v63  ;;  %v3386_v46 = vsel %vm3383_vm3, %v3385_v53, %v3381_v1  ;;  %vm3677_vm7 = vmor %vm3675_vm5, %vm3676_vm4 }
0x184a   :  { %v3514_v62 = vpack.c.bf16 %v3513_v56, %v3512_v57  ;;  %v3402_v18 = vmul.f32 %v6125_v25, %v3400_v5  ;;  %v3401_v8 = vmul.f32 %v6118_v54, %v3386_v46  ;;  %v3672_v26 = vsub.f32 1.0, %v3671_v10 }
0x184b   :  { %4293 = vmatmul.msk.bf16.vlgmr.msrb.gmra.mxu1 %vm371_vm14, %v3217_v22  ;;  %v3679_v25 = vand.u32 2147483647, %v3666_v21 }
0x184c   :  { %3415 = vmatpush.bf16.msra.mxu1 %v3404_v40  ;;  %v3403_v33 = vpack.c.bf16 %v3402_v18, %v3401_v8  ;;  %v3673_v49 = vmul.f32 %v4746_v20, %v3672_v26 }
0x184d   :  { %vm3680_vm9 = vcmp.eq.f32.partialorder %v3679_v25, 8.507059e+37 }
0x184e   :  { %v3674_v44 = vadd.f32 %v4746_v20, %v3673_v49 }
0x1850   :  { %3621 = vmatpush.bf16.msrb.mxu1 %v3609_v43  ;;  %v3678_v36 = vsel %vm3677_vm7, %v4746_v20, %v3674_v44  ;;  %v4391_v44 = vld [vmem:[#allocation10 + $0x58] sm:$0xff] }
0x1851   :  { %v3683_v24 = vsel %vm3680_vm9, %v3682_v12, %v3678_v36  ;;  %3777 = vmatpush.bf16.msrb.mxu0 %v4391_v44 }
0x1852   :  { %4299 = vmatmul.msk.bf16.vlgmr.msrb.gmra.mxu2 %vm371_vm14, %v3514_v62  ;;  %v3698_v58 = vmul.f32 %v6140_v11, %v3683_v24 }
0x185b   :  { %4297 = vmatmul.msk.bf16.vlgmr.msra.gmra.mxu1 %vm371_vm14, %v3403_v33 }
0x1865   :  { %v3669_v41 = vpop.xlane.xlu1 %3668 }
0x1866   :  { %4747 = vrcp.f32 %v3669_v41  ;;  %v3695_v19 = vand.u32 2147483648, %v3669_v41  ;;  %v3693_v42 = vand.u32 2147483647, %v3669_v41  ;;  %vm3689_vm10 = vweird.f32 %v3669_v41 }
0x1868   :  { %v3696_v38 = vor.u32 1.1754944e-38, %v3695_v19  ;;  %vm3694_vm12 = vcmp.eq.f32.partialorder %v3693_v42, 8.507059e+37 }
0x186c   :  { %v4748_v45 = vpop.eup %4747 }
0x186d   :  { %v3685_v39 = vmul.f32 %v4748_v45, %v3669_v41  ;;  %v3576_v15 = vpop.xlane.xlu1 %3575  ;;  %vm3690_vm8 = vweird.f32 %v4748_v45 }
0x186e   :  { %4749 = vrcp.f32 %v3576_v15  ;;  %vm3691_vm11 = vmor %vm3689_vm10, %vm3690_vm8  ;;  %v3602_v35 = vand.u32 2147483648, %v3576_v15  ;;  %vm3596_vm15 = vweird.f32 %v3576_v15  ;;  %v3600_v27 = vand.u32 2147483647, %v3576_v15 }
0x186f   :  { %v3686_v54 = vsub.f32 1.0, %v3685_v39  ;;  %v4390_v39 = vld [vmem:[#allocation10 + $0x50] sm:$0xff] }
0x1870   :  { %vm3601_vm3 = vcmp.eq.f32.partialorder %v3600_v27, 8.507059e+37  ;;  %3778 = vmatpush.bf16.msrb.mxu0 %v4390_v39  ;;  %v4393_v39 = vld [vmem:[#allocation13 + $0x20] sm:$0xff] }
0x1871   :  { %v3687_v32 = vmul.f32 %v4748_v45, %v3686_v54 }
0x1872   :  { %v3573_v28 = vpop.xlane.xlu0 %3572 }
0x1873   :  { %v3688_v47 = vadd.f32 %v4748_v45, %v3687_v32  ;;  %4751 = vrcp.f32 %v3573_v28  ;;  %v3588_v30 = vand.u32 2147483648, %v3573_v28  ;;  %v3586_v11 = vand.u32 2147483647, %v3573_v28 }
0x1874   :  { %v4750_v23 = vpop.eup %4749  ;;  %vm3582_vm4 = vweird.f32 %v3573_v28 }
0x1875   :  { %v3692_v40 = vsel %vm3691_vm11, %v4748_v45, %v3688_v47  ;;  %v3592_v6 = vmul.f32 %v4750_v23, %v3576_v15  ;;  %vm3597_vm13 = vweird.f32 %v4750_v23  ;;  %v3589_v57 = vor.u32 1.1754944e-38, %v3588_v30  ;;  %v4389_v15 = vld [vmem:[#allocation10 + $0x48] sm:$0xff] }
0x1876   :  { %v3697_v51 = vsel %vm3694_vm12, %v3696_v38, %v3692_v40  ;;  %vm3598_vm1 = vmor %vm3596_vm15, %vm3597_vm13  ;;  %vm3587_vm7 = vcmp.eq.f32.partialorder %v3586_v11, 8.507059e+37  ;;  %3779 = vmatpush.bf16.msrb.mxu0 %v4389_v15 }
0x1877   :  { %v3699_v9 = vmul.f32 %v6151_v59, %v3697_v51  ;;  %v3593_v2 = vsub.f32 1.0, %v3592_v6  ;;  %v3603_v59 = vor.u32 1.1754944e-38, %v3602_v35 }
0x1879   :  { %v4752_v17 = vpop.eup %4751  ;;  %v3700_v52 = vpack.c.bf16 %v3699_v9, %v3698_v58  ;;  %v3594_v37 = vmul.f32 %v4750_v23, %v3593_v2 }
0x187a   :  { %v3578_v22 = vmul.f32 %v4752_v17, %v3573_v28  ;;  %vm3583_vm2 = vweird.f32 %v4752_v17 }
0x187b   :  { %v3595_v60 = vadd.f32 %v4750_v23, %v3594_v37  ;;  %4303 = vmatmul.msk.bf16.vlgmr.msra.gmra.mxu2 %vm371_vm14, %v3700_v52  ;;  %vm3584_vm5 = vmor %vm3582_vm4, %vm3583_vm2 }
0x187c   :  { %v3579_v43 = vsub.f32 1.0, %v3578_v22  ;;  %v4514_v22 = vld [vmem:[%s6397_s5 + $0x3] ss:$0 sm:$0xff] }
0x187d   :  { %v3599_v55 = vsel %vm3598_vm1, %v4750_v23, %v3595_v60 }
0x187e   :  { %v3580_v13 = vmul.f32 %v4752_v17, %v3579_v43  ;;  %v3604_v56 = vsel %vm3601_vm3, %v3603_v59, %v3599_v55 }
0x187f   :  { %v3606_v63 = vmul.f32 %v6157_v7, %v3604_v56 }
0x1880   :  { %v3581_v29 = vadd.f32 %v4752_v17, %v3580_v13 }
0x1882   :  { %v3585_v4 = vsel %vm3584_vm5, %v4752_v17, %v3581_v29 }
0x1883   :  { %v3590_v48 = vsel %vm3587_vm7, %v3589_v57, %v3585_v4 }
0x1884   :  { %v3605_v0 = vmul.f32 %v6161_v3, %v3590_v48 }
0x1886   :  { %v3607_v1 = vpack.c.bf16 %v3606_v63, %v3605_v0 }
0x1888   :  { %4301 = vmatmul.msk.bf16.vlgmr.msrb.gmra.mxu1 %vm371_vm14, %v3607_v1 }
0x18c5   :  { %v3326_v62 = vpop.f32.mrf.mxu2 }
0x18c8   :  { %v3233_v53 = vpop.f32.mrf.mxu1 }
0x18cd   :  { %v3328_v5 = vpop.f32.mrf.mxu2 }
0x18ce   :  { %v4479_v46 = vpack.i.bf16 %v3328_v5, %v3326_v62 }
0x18d0   :  { %v3235_v18 = vpop.f32.mrf.mxu1  ;;  %4480 = vrot.lane.b32.xlu1 %v4479_v46, %s4994_s26 }
0x18d5   :  { %v3530_v20 = vpop.f32.mrf.mxu2 }
0x18d8   :  { %v3417_v21 = vpop.f32.mrf.mxu1 }
0x18dd   :  { %v3532_v10 = vpop.f32.mrf.mxu2 }
0x18e0   :  { %v3419_v8 = vpop.f32.mrf.mxu1 }
0x18e1   :  { %v4484_v33 = vpack.i.bf16 %v3419_v8, %v3417_v21 }
0x18e3   :  { %4485 = vrot.lane.b32.xlu2 %v4484_v33, %s5012_s0 }
0x18fe   :  { %v3714_v26 = vpop.f32.mrf.mxu2 }
0x1905   :  { %v3623_v7 = vpop.f32.mrf.mxu1 }
0x1906   :  { %v3716_v49 = vpop.f32.mrf.mxu2 }
0x1907   :  { %v4494_v45 = vpack.i.bf16 %v3716_v49, %v3714_v26 }
0x190d   :  { %v3625_v3 = vpop.f32.mrf.mxu1 }
0x190e   :  { %v4489_v41 = vpack.i.bf16 %v3625_v3, %v3623_v7 }
0x1910   :  { %4490 = vrot.lane.b32.xlu2 %v4489_v41, %s4994_s26 }
0x1918   :  { %4495 = vrot.lane.b32.xlu2 %v4494_v45, %s5012_s0  ;;  %v4394_v45 = vld [vmem:[#allocation13 + $0x28] sm:$0xff] }
0x1919   :  { %3953 = vmatpush.bf16.msra.mxu1 %v4394_v45 }
0x191d   :  { %3954 = vmatpush.bf16.msra.mxu1 %v4393_v39  ;;  %v4396_v39 = vld [vmem:[#allocation14 + $0x20] sm:$0xff] }
0x193d   :  { %v4486_v31 = vpop.permute.xlu2 %4485 }
0x193e   :  { %v4488_v36 = vunpack.i.h.bf16 %v4486_v31  ;;  %v4487_v32 = vunpack.i.l.bf16 %v4486_v31 }
0x1942   :  { %v4481_v25 = vpop.permute.xlu1 %4480 }
0x1943   :  { %v4483_v54 = vunpack.i.h.bf16 %v4481_v25  ;;  %v4482_v19 = vunpack.i.l.bf16 %v4481_v25  ;;  %v4392_v25 = vld [vmem:[#allocation13 + $0x18] sm:$0xff] }
0x1944   :  { %3955 = vmatpush.bf16.msra.mxu1 %v4392_v25 }
0x1945   :  { %v3438_v42 = vsel %vm371_vm14, %v3233_v53, %v4482_v19  ;;  %v3439_v12 = vsel %vm371_vm14, %v3235_v18, %v4483_v54 }
0x1946   :  { %v3440_v28 = vsel %vm663_vm6, %v3438_v42, %v4487_v32  ;;  %v3441_v47 = vsel %vm663_vm6, %v3439_v12, %v4488_v36 }
0x1947   :  { %v3746_v23 = vpack.c.bf16 %v3441_v47, %v3440_v28 }
0x1949   :  { %4316 = vmatmul.msk.bf16.vlgmr.msrb.gmra.mxu0 %vm175_vm0, %v3746_v23 }
0x196a   :  { %v4491_v24 = vpop.permute.xlu2 %4490 }
0x196b   :  { %v4493_v38 = vunpack.i.h.bf16 %v4491_v24  ;;  %v4492_v40 = vunpack.i.l.bf16 %v4491_v24 }
0x196d   :  { %v3736_v9 = vsel %vm371_vm14, %v3532_v10, %v4493_v38  ;;  %v3735_v2 = vsel %vm371_vm14, %v3530_v20, %v4492_v40 }
0x1972   :  { %v4496_v6 = vpop.permute.xlu2 %4495 }
0x1973   :  { %v4498_v51 = vunpack.i.h.bf16 %v4496_v6  ;;  %v4497_v58 = vunpack.i.l.bf16 %v4496_v6 }
0x1975   :  { %v3737_v17 = vsel %vm663_vm6, %v3735_v2, %v4497_v58  ;;  %v3738_v52 = vsel %vm663_vm6, %v3736_v9, %v4498_v51  ;;  %v4515_v9 = vld [vmem:[#allocation11 + $0x1] ss:$0 sm:$0xff] }
0x1976   :  { %v3747_v37 = vpack.c.bf16 %v3738_v52, %v3737_v17 }
0x1978   :  { %4317 = vmatmul.msk.bf16.gmra.mxu0 %vm175_vm0, %v3747_v37  ;;  %v4516_v37 = vld [vmem:[%s6399_s7 + $0x1] ss:$0 sm:$0xff] }
0x19c6   :  { %v3781_v60 = vpop.f32.mrf.mxu0 }
0x19c7   :  { %v3791_v35 = vadd.f32 %v3781_v60, %v5960_v61 }
0x19c9   :  { %v6320_v27 = vadd.f32 %v4514_v22, %v3791_v35 }
0x19cb   :  { %v3808_v43 = vsel %vm175_vm0, %v6320_v27, 0.0 }
0x19cc   :  { %3809 = vadd.xlane.f32.xlu1 %v3808_v43 }
0x19ce   :  { %v3783_v30 = vpop.f32.mrf.mxu0 }
0x19cf   :  { %v3792_v55 = vadd.f32 %v3783_v30, %v5965_v16 }
0x19d1   :  { %v6325_v13 = vadd.f32 %v4514_v22, %v3792_v55 }
0x19d3   :  { %v3811_v11 = vsel %vm175_vm0, %v6325_v13, 0.0 }
0x19d4   :  { %3812 = vadd.xlane.f32.xlu2 %v3811_v11 }
0x19f5   :  { %v3786_v59 = vpop.f32.mrf.mxu0 }
0x19f6   :  { %v3793_v29 = vadd.f32 %v3786_v59, %v5970_v34 }
0x19f8   :  { %v6330_v56 = vadd.f32 %v4514_v22, %v3793_v29 }
0x19fa   :  { %v3814_v61 = vsel %vm175_vm0, %v6330_v56, 0.0 }
0x19fb   :  { %3815 = vadd.xlane.f32.xlu0 %v3814_v61 }
0x19fd   :  { %v3788_v57 = vpop.f32.mrf.mxu0 }
0x19fe   :  { %v3794_v4 = vadd.f32 %v3788_v57, %v5975_v50 }
0x1a00   :  { %v6335_v48 = vadd.f32 %v4514_v22, %v3794_v4 }
0x1a02   :  { %v3817_v16 = vsel %vm175_vm0, %v6335_v48, 0.0 }
0x1a03   :  { %3818 = vadd.xlane.f32.xlu0 %v3817_v16 }
0x1a3f   :  { %v3810_v63 = vpop.xlane.xlu1 %3809 }
0x1a40   :  { %v3820_v0 = vmul.f32 %v3810_v63, %v5128_v14 }
0x1a42   :  { %v3824_v34 = vsub.f32 %v6320_v27, %v3820_v0 }
0x1a44   :  { %v3828_v1 = vmul.f32 %v3824_v34, %v3824_v34 }
0x1a46   :  { %v3832_v62 = vsel %vm175_vm0, %v3828_v1, 0.0 }
0x1a47   :  { %v3813_v53 = vpop.xlane.xlu2 %3812  ;;  %3833 = vadd.xlane.f32.xlu0 %v3832_v62 }
0x1a48   :  { %v3821_v5 = vmul.f32 %v3813_v53, %v5128_v14 }
0x1a4a   :  { %v3825_v50 = vsub.f32 %v6325_v13, %v3821_v5 }
0x1a4c   :  { %v3829_v46 = vmul.f32 %v3825_v50, %v3825_v50 }
0x1a4e   :  { %v3835_v18 = vsel %vm175_vm0, %v3829_v46, 0.0 }
0x1a4f   :  { %3836 = vadd.xlane.f32.xlu0 %v3835_v18 }
0x1a6e   :  { %v3816_v21 = vpop.xlane.xlu0 %3815 }
0x1a6f   :  { %v3822_v8 = vmul.f32 %v3816_v21, %v5128_v14 }
0x1a71   :  { %v6347_v33 = vsub.f32 %v6330_v56, %v3822_v8 }
0x1a73   :  { %v3830_v20 = vmul.f32 %v6347_v33, %v6347_v33 }
0x1a75   :  { %v3838_v10 = vsel %vm175_vm0, %v3830_v20, 0.0 }
0x1a76   :  { %3839 = vadd.xlane.f32.xlu0 %v3838_v10  ;;  %v3819_v7 = vpop.xlane.xlu0 %3818 }
0x1a77   :  { %v3823_v26 = vmul.f32 %v3819_v7, %v5128_v14 }
0x1a79   :  { %v6354_v3 = vsub.f32 %v6335_v48, %v3823_v26 }
0x1a7b   :  { %v3831_v41 = vmul.f32 %v6354_v3, %v6354_v3 }
0x1a7d   :  { %v3841_v49 = vsel %vm175_vm0, %v3831_v41, 0.0 }
0x1a7e   :  { %3842 = vadd.xlane.f32.xlu1 %v3841_v49 }
0x1aba   :  { %v3834_v44 = vpop.xlane.xlu0 %3833 }
0x1abb   :  { %v3844_v15 = vmul.f32 %v3834_v44, %v5128_v14  ;;  %v4397_v44 = vld [vmem:[#allocation14 + $0x28] sm:$0xff] }
0x1abc   :  { %4017 = vmatpush.bf16.msrb.mxu3 %v4397_v44 }
0x1abd   :  { %v3848_v31 = vadd.f32 1e-05, %v3844_v15  ;;  %v4395_v15 = vld [vmem:[#allocation14 + $0x18] sm:$0xff] }
0x1abf   :  { %4753 = vrsqrt.f32 %v3848_v31  ;;  %vm3858_vm6 = vweird.f32 %v3848_v31 }
0x1ac0   :  { %4018 = vmatpush.bf16.msrb.mxu3 %v4396_v39 }
0x1ac2   :  { %v3837_v54 = vpop.xlane.xlu0 %3836 }
0x1ac3   :  { %v3845_v19 = vmul.f32 %v3837_v54, %v5128_v14 }
0x1ac4   :  { %4019 = vmatpush.bf16.msrb.mxu3 %v4395_v15 }
0x1ac5   :  { %v4754_v36 = vpop.eup %4753  ;;  %v3849_v32 = vadd.f32 1e-05, %v3845_v19 }
0x1ac6   :  { %v3853_v42 = vmul.f32 %v4754_v36, %v3848_v31  ;;  %vm3859_vm14 = vweird.f32 %v4754_v36  ;;  %v4517_v31 = vld [vmem:[%s6401_s9 + $0x1] ss:$0 sm:$0xff] }
0x1ac7   :  { %4755 = vrsqrt.f32 %v3849_v32  ;;  %vm3860_vm8 = vmor %vm3858_vm6, %vm3859_vm14  ;;  %vm3868_vm10 = vweird.f32 %v3849_v32 }
0x1ac8   :  { %v3854_v12 = vmul.f32 %v4754_v36, %v3853_v42 }
0x1aca   :  { %v3855_v28 = vmul.f32 0.5, %v3854_v12 }
0x1acc   :  { %v3856_v47 = vsub.f32 1.5, %v3855_v28 }
0x1acd   :  { %v4756_v23 = vpop.eup %4755 }
0x1ace   :  { %v3857_v24 = vmul.f32 %v4754_v36, %v3856_v47  ;;  %v3863_v38 = vmul.f32 %v4756_v23, %v3849_v32  ;;  %vm3869_vm9 = vweird.f32 %v4756_v23 }
0x1acf   :  { %vm3870_vm11 = vmor %vm3868_vm10, %vm3869_vm9 }
0x1ad0   :  { %v3864_v40 = vmul.f32 %v4756_v23, %v3863_v38  ;;  %v3861_v6 = vsel %vm3860_vm8, %v4754_v36, %v3857_v24 }
0x1ad1   :  { %v3892_v2 = vmul.f32 %v3861_v6, %v3824_v34 }
0x1ad2   :  { %v3865_v51 = vmul.f32 0.5, %v3864_v40 }
0x1ad3   :  { %v3899_v22 = vmul.f32 %v4515_v9, %v3892_v2 }
0x1ad4   :  { %v3866_v58 = vsub.f32 1.5, %v3865_v51 }
0x1ad5   :  { %v3906_v43 = vadd.f32 %v4516_v37, %v3899_v22 }
0x1ad6   :  { %v3867_v17 = vmul.f32 %v4756_v23, %v3866_v58 }
0x1ad8   :  { %v3871_v52 = vsel %vm3870_vm11, %v4756_v23, %v3867_v17 }
0x1ad9   :  { %v3893_v60 = vmul.f32 %v3871_v52, %v3825_v50 }
0x1adb   :  { %v3900_v35 = vmul.f32 %v4515_v9, %v3893_v60 }
0x1add   :  { %v3907_v30 = vadd.f32 %v4516_v37, %v3900_v35 }
0x1adf   :  { %v3917_v55 = vpack.c.bf16 %v3907_v30, %v3906_v43 }
0x1ae1   :  { %4333 = vmatmul.msk.bf16.vlgmr.msra.gmra.mxu1 %vm175_vm0, %v3917_v55 }
0x1ae9   :  { %v3840_v11 = vpop.xlane.xlu0 %3839 }
0x1aea   :  { %v3846_v59 = vmul.f32 %v3840_v11, %v5128_v14 }
0x1aec   :  { %v3850_v29 = vadd.f32 1e-05, %v3846_v59 }
0x1aee   :  { %4757 = vrsqrt.f32 %v3850_v29  ;;  %vm3878_vm13 = vweird.f32 %v3850_v29 }
0x1af1   :  { %v3843_v61 = vpop.xlane.xlu1 %3842 }
0x1af2   :  { %v3847_v57 = vmul.f32 %v3843_v61, %v5128_v14 }
0x1af4   :  { %v4758_v4 = vpop.eup %4757  ;;  %v3851_v16 = vadd.f32 1e-05, %v3847_v57 }
0x1af5   :  { %v3873_v63 = vmul.f32 %v4758_v4, %v3850_v29  ;;  %vm3879_vm12 = vweird.f32 %v4758_v4 }
0x1af6   :  { %4759 = vrsqrt.f32 %v3851_v16  ;;  %vm3880_vm15 = vmor %vm3878_vm13, %vm3879_vm12  ;;  %vm3888_vm2 = vweird.f32 %v3851_v16 }
0x1af7   :  { %v3874_v0 = vmul.f32 %v4758_v4, %v3873_v63 }
0x1af9   :  { %v3875_v34 = vmul.f32 0.5, %v3874_v0 }
0x1afb   :  { %v3876_v1 = vsub.f32 1.5, %v3875_v34 }
0x1afc   :  { %v4760_v62 = vpop.eup %4759 }
0x1afd   :  { %v3877_v53 = vmul.f32 %v4758_v4, %v3876_v1  ;;  %v3883_v5 = vmul.f32 %v4760_v62, %v3851_v16  ;;  %vm3889_vm1 = vweird.f32 %v4760_v62 }
0x1afe   :  { %vm3890_vm3 = vmor %vm3888_vm2, %vm3889_vm1 }
0x1aff   :  { %v3884_v50 = vmul.f32 %v4760_v62, %v3883_v5  ;;  %v3881_v46 = vsel %vm3880_vm15, %v4758_v4, %v3877_v53 }
0x1b00   :  { %v3894_v14 = vmul.f32 %v3881_v46, %v6347_v33 }
0x1b01   :  { %v3885_v18 = vmul.f32 0.5, %v3884_v50 }
0x1b02   :  { %v3901_v7 = vmul.f32 %v4515_v9, %v3894_v14 }
0x1b03   :  { %v3886_v21 = vsub.f32 1.5, %v3885_v18 }
0x1b04   :  { %v3908_v41 = vadd.f32 %v4516_v37, %v3901_v7 }
0x1b05   :  { %v3887_v8 = vmul.f32 %v4760_v62, %v3886_v21 }
0x1b07   :  { %v3891_v20 = vsel %vm3890_vm3, %v4760_v62, %v3887_v8 }
0x1b08   :  { %v3895_v10 = vmul.f32 %v3891_v20, %v6354_v3 }
0x1b0a   :  { %v3902_v26 = vmul.f32 %v4515_v9, %v3895_v10  ;;  %v4518_v9 = vld [vmem:[%s6403_s11 + $0x1] ss:$0 sm:$0xff]  ;;  %s5013_s11 = smov [#allocation16]  }
0x1b0b   :  { %s4053_s23 = sshll.u32 %s5013_s11, 4  ;;  %s4054_s23 = int_to_ptr.vmem [resolvable:$true] %s4053_s23 }
0x1b0c   :  { %v3909_v49 = vadd.f32 %v4516_v37, %v3902_v26 }
0x1b0e   :  { %v3918_v45 = vpack.c.bf16 %v3909_v49, %v3908_v41 }
0x1b10   :  { %4334 = vmatmul.msk.bf16.gmra.mxu1 %vm175_vm0, %v3918_v45 }
0x1b5e   :  { %v3957_v33 = vpop.f32.mrf.mxu1 }
0x1b5f   :  { %v3958_v25 = vadd.f32 %v4517_v31, %v3957_v33 }
0x1b61   :  { %v3971_v54 = vmul.f32 0.01, %v3958_v25  ;;  %vm3967_vm4 = vcmp.gt.f32.partialorder %v3958_v25, 0.0 }
0x1b63   :  { %v3975_v32 = vsel %vm3967_vm4, %v3958_v25, %v3971_v54 }
0x1b66   :  { %v3959_v3 = vpop.f32.mrf.mxu1 }
0x1b67   :  { %v3960_v19 = vadd.f32 %v4517_v31, %v3959_v3 }
0x1b69   :  { %vm3968_vm5 = vcmp.gt.f32.partialorder %v3960_v19, 0.0  ;;  %v3972_v36 = vmul.f32 0.01, %v3960_v19 }
0x1b6b   :  { %v3976_v42 = vsel %vm3968_vm5, %v3960_v19, %v3972_v36 }
0x1b6c   :  { %v3986_v12 = vpack.c.bf16 %v3976_v42, %v3975_v32 }
0x1b6e   :  { %4347 = vmatmul.msk.bf16.vlgmr.msrb.gmra.mxu3 %vm175_vm0, %v3986_v12 }
0x1b8d   :  { %v3962_v28 = vpop.f32.mrf.mxu1 }
0x1b8e   :  { %v3963_v47 = vadd.f32 %v4517_v31, %v3962_v28 }
0x1b90   :  { %v3973_v24 = vmul.f32 0.01, %v3963_v47  ;;  %vm3969_vm7 = vcmp.gt.f32.partialorder %v3963_v47, 0.0 }
0x1b92   :  { %v3977_v6 = vsel %vm3969_vm7, %v3963_v47, %v3973_v24 }
0x1b95   :  { %v3964_v23 = vpop.f32.mrf.mxu1 }
0x1b96   :  { %v3965_v38 = vadd.f32 %v4517_v31, %v3964_v23 }
0x1b98   :  { %vm3970_vm14 = vcmp.gt.f32.partialorder %v3965_v38, 0.0  ;;  %v3974_v40 = vmul.f32 0.01, %v3965_v38 }
0x1b9a   :  { %v3978_v51 = vsel %vm3970_vm14, %v3965_v38, %v3974_v40 }
0x1b9b   :  { %v3987_v58 = vpack.c.bf16 %v3978_v51, %v3977_v6 }
0x1b9d   :  { %4348 = vmatmul.msk.bf16.gmra.mxu3 %vm175_vm0, %v3987_v58 }
0x1bf1   :  { %v4021_v2 = vpop.f32.mrf.mxu3 }
0x1bf2   :  { %v4031_v17 = vadd.f32 %v4021_v2, %v6320_v27 }
0x1bf4   :  { %v4040_v52 = vadd.f32 %v4518_v9, %v4031_v17 }
0x1bf6   :  { %4044 = vst.msk [vmem:[#allocation16] sm:$0xff] %vm175_vm0, %v4040_v52 }
0x1bf9   :  { %v4023_v37 = vpop.f32.mrf.mxu3 }
0x1bfa   :  { %v4032_v22 = vadd.f32 %v4023_v37, %v6325_v13 }
0x1bfc   :  { %v4041_v60 = vadd.f32 %v4518_v9, %v4032_v22 }
0x1bfe   :  { %4045 = vst.msk [vmem:[#allocation16 + $0x8] sm:$0xff] %vm175_vm0, %v4041_v60 }
0x1c20   :  { %v4026_v35 = vpop.f32.mrf.mxu3 }
0x1c21   :  { %v4033_v43 = vadd.f32 %v4026_v35, %v6330_v56 }
0x1c23   :  { %v4042_v30 = vadd.f32 %v4518_v9, %v4033_v43 }
0x1c25   :  { %4047 = vst.msk [vmem:[#allocation16 + $0x10] sm:$0xff] %vm175_vm0, %v4042_v30 }
0x1c28   :  { %v4028_v55 = vpop.f32.mrf.mxu3 }
0x1c29   :  { %v4034_v27 = vadd.f32 %v4028_v55, %v6335_v48 }
0x1c2b   :  { %v4043_v11 = vadd.f32 %v4518_v9, %v4034_v27 }
0x1c2d   :  { %4048 = vst.msk [vmem:[#allocation16 + $0x18] sm:$0xff] %vm175_vm0, %v4043_v11 }
0x1c2e   :  { %4061 = dma.vmem_to_hbm [thread:$0]  %s4054_s23, 512, %s4056_s10, [#allocation4], %s4997_s17, %s4997_s17, %s4998_s18  }
0x1c2f   :  { %4991 = dma.done.wait [#allocation4], 512  }
0x1c30   :  { %4992 = vsyncadd [#allocation4], 4294966784 }
0x1c31   :  { %4066 = vsyncpa [#allocation3], 1 }
0x1c32   :  { %4067 = vsyncpa [#allocation6], 1 }
0x1c33   :  { %4068 = vsyncpa [#allocation9], 1 }
0x1c34   :  { %4069 = vsyncpa [#allocation12], 1 }
0x1c35   :  { %4070 = vsyncpa [#allocation15], 1 }
0x1c36   :  { %4071 = vsyncpa [#allocation4], 1 }

</bundles_post_ra>
